<compile_context>
chip_gen: v7x
topology: tpu7x:2x2x1
jax: 0.10.0
libtpu: 0.0.40
codegen_flags: <defaults>
</compile_context>

<pallas_src>
import functools

import jax
import jax.numpy as jnp
from jax.experimental import pallas as pl
from jax.experimental.pallas import tpu as pltpu

EPS = 1e-5  # InstanceNorm2d default eps


def pack_upconv_weights(w):
    """Pack PyTorch ConvTranspose2d weights (Cin, Cout, 4, 4) for the kernel.

    Returns a dense (4, 4, Cin, Cout) bf16 tensor indexed by
      [phase p = 2*r + s, tap t = 2*ai + ci] -> w[:, :, 3 - r - 2*ai, 3 - s - 2*ci]
    so that output sub-pixel (2i+r, 2j+s) = sum_{ai,ci} x_pad[i+r+ai, j+s+ci, :] @ packed[p, t].
    Pure function of the weights: call once per weight update, not per forward.
    """
    phases = []
    for r in (0, 1):
        for s in (0, 1):
            taps = []
            for ai in (0, 1):
                for ci in (0, 1):
                    ky = 3 - r - 2 * ai
                    kx = 3 - s - 2 * ci
                    taps.append(w[:, :, ky, kx])
            phases.append(jnp.stack(taps, axis=0))
    return jnp.stack(phases, axis=0).astype(jnp.bfloat16)  # (4, 4, Cin, Cout)


def _conv_phases(xw, w_ref, th, W, cin, cout):
    """Conv-transpose for a window of `th` input rows.

    xw:    (th+2, W+2, Cin) bf16 padded input window (loaded value).
    w_ref: (4, 4, Cin, Cout) bf16 packed weights.
    Returns (th*W, 4*Cout) f32, phase-packed along the channel (lane) axis.

    16 small dense MXU matmuls with f32 accumulation.  Short fixed trip count,
    fully unrolled; only one tap slice + one per-phase accumulator live at a
    time (no 9-slab im2col concat, bounded live ranges).
    """
    phases = []
    for r in (0, 1):
        for s in (0, 1):
            acc = None
            for ai in (0, 1):
                for ci in (0, 1):
                    a, c = r + ai, s + ci
                    tap = xw[a:a + th, c:c + W, :].reshape(th * W, cin)
                    part = jnp.dot(tap, w_ref[2 * r + s, 2 * ai + ci],
                                   preferred_element_type=jnp.float32)
                    acc = part if acc is None else acc + part
            phases.append(acc)
    return jnp.concatenate(phases, axis=-1)  # (th*W, 4*Cout)


def _fold_phase_stats(row_sum, row_sq, cout, n_tot):
    """Per-channel scale/shift from phase-packed per-column sums (f32)."""
    csum = row_sum[:, 0:cout]
    csq = row_sq[:, 0:cout]
    for p in range(1, 4):
        csum = csum + row_sum[:, p * cout:(p + 1) * cout]
        csq = csq + row_sq[:, p * cout:(p + 1) * cout]
    mean = csum * (1.0 / n_tot)
    # TODO(synk): sum/sum-sq stats are cancellation-prone for very large spatial
    # extents; move to a centered second pass if that regime shows up.
    var = jnp.maximum(csq * (1.0 / n_tot) - mean * mean, 0.0)
    inv = jax.lax.rsqrt(var + EPS)
    scale = jnp.concatenate([inv] * 4, axis=-1)           # (1, 4*Cout)
    shift = jnp.concatenate([mean * inv] * 4, axis=-1)    # (1, 4*Cout)
    return scale, shift


def _fused_kernel(x_ref, w_ref, o_ref, *, H, W, cin, cout):
    """Single-pass path: whole sample resident (small shapes)."""
    xw = x_ref[0]                                          # (H+2, W+2, Cin)
    y = _conv_phases(xw, w_ref, H, W, cin, cout)           # (H*W, 4*Cout) f32
    row_sum = jnp.sum(y, axis=0, keepdims=True)
    row_sq = jnp.sum(y * y, axis=0, keepdims=True)
    scale, shift = _fold_phase_stats(row_sum, row_sq, cout, 4.0 * H * W)
    o_ref[0] = jnp.maximum(y * scale - shift, 0.0).astype(o_ref.dtype)


def _conv_stats_kernel(x_ref, w_ref, y_ref, stats_ref, *, th, W, cin, cout):
    """Tiled pass A: conv for one row tile + per-channel sum / sum-sq accumulation."""
    t = pl.program_id(1)

    @pl.when(t == 0)
    def _init():
        stats_ref[...] = jnp.zeros_like(stats_ref)

    xw = x_ref[0, pl.ds(t * th, th + 2), :, :]             # (th+2, W+2, Cin)
    y = _conv_phases(xw, w_ref, th, W, cin, cout)          # (th*W, 4*Cout) f32
    y_ref[0] = y.astype(y_ref.dtype)                       # bf16 phase-packed store
    row_sum = jnp.sum(y, axis=0, keepdims=True)            # (1, 4*Cout)
    row_sq = jnp.sum(y * y, axis=0, keepdims=True)
    stats_ref[0] = stats_ref[0] + jnp.concatenate([row_sum, row_sq], axis=0)


def _norm_kernel(stats_ref, y_ref, o_ref, *, n_tot, cout):
    """Tiled pass B: normalize + ReLU one row tile (one read of y, one store)."""
    row_sum = stats_ref[0, 0:1, :]
    row_sq = stats_ref[0, 1:2, :]
    scale, shift = _fold_phase_stats(row_sum, row_sq, cout, n_tot)
    y = y_ref[0].astype(jnp.float32)
    o_ref[0] = jnp.maximum(y * scale - shift, 0.0).astype(o_ref.dtype)


def upconv_block(x, enc_ip, w_packed, bias=None, *, mode="auto", rows_per_tile=None):
    """x: (N, Cin, H, W); enc_ip: (N, Ce, 2H, 2W); w_packed: pack_upconv_weights(w).

    Returns bf16 (N, Cout + Ce, 2H, 2W) = concat(ReLU(InstanceNorm(convT(x))), enc_ip).
    """
    N, Cin, H, W = x.shape
    assert w_packed.shape[:3] == (4, 4, Cin), w_packed.shape
    Cout = w_packed.shape[-1]

    # Bias is exactly cancelled by InstanceNorm2d(affine=False) mean subtraction;
    # valid ONLY for this norm config (no affine params, no running stats).
    del bias

    # MXU operands in bf16 (accumulation stays f32 in the kernels).
    xp = jnp.pad(x.astype(jnp.bfloat16).transpose(0, 2, 3, 1),
                 ((0, 0), (1, 1), (1, 1), (0, 0)))          # (N, H+2, W+2, Cin)

    if mode == "auto":
        # Rough per-step VMEM residency of the fused path (double-buffered I/O,
        # whole-sample f32 conv values); stay well inside default scoped limits.
        fused_bytes = (2 * (H + 2) * (W + 2) * Cin * 2
                       + 2 * 16 * Cin * Cout * 2
                       + 2 * H * W * 4 * Cout * 4
                       + 2 * H * W * 4 * Cout * 2)
        mode = "fused" if fused_bytes <= 24 * 1024 * 1024 else "tiled"

    if mode == "fused":
        y_packed = pl.pallas_call(
            functools.partial(_fused_kernel, H=H, W=W, cin=Cin, cout=Cout),
            out_shape=jax.ShapeDtypeStruct((N, H * W, 4 * Cout), jnp.bfloat16),
            grid_spec=pltpu.PrefetchScalarGridSpec(
                num_scalar_prefetch=0,
                grid=(N,),
                in_specs=[
                    pl.BlockSpec((1, H + 2, W + 2, Cin), lambda n: (n, 0, 0, 0)),
                    pl.BlockSpec((4, 4, Cin, Cout), lambda n: (0, 0, 0, 0)),
                ],
                out_specs=pl.BlockSpec((1, H * W, 4 * Cout), lambda n: (n, 0, 0)),
            ),
            compiler_params=pltpu.CompilerParams(
                dimension_semantics=("parallel",)),
        )(xp, w_packed)
    else:
        # Row-tile size: target a few hundred matmul rows per step while dividing H.
        th = rows_per_tile or max(1, min(H, 256 // max(W, 1)))
        th = max(1, min(th, H))
        while H % th:
            th -= 1
        n_tiles = H // th

        # Pass A: conv + stats.  The stats output block index is constant across
        # the tile axis -> resident accumulator (init at t == 0), so that axis
        # is "arbitrary"; the sample axis stays "parallel".
        y_conv, stats = pl.pallas_call(
            functools.partial(_conv_stats_kernel, th=th, W=W, cin=Cin, cout=Cout),
            out_shape=(
                jax.ShapeDtypeStruct((N, H * W, 4 * Cout), jnp.bfloat16),
                jax.ShapeDtypeStruct((N, 2, 4 * Cout), jnp.float32),
            ),
            grid_spec=pltpu.PrefetchScalarGridSpec(
                num_scalar_prefetch=0,
                grid=(N, n_tiles),
                in_specs=[
                    pl.BlockSpec((1, H + 2, W + 2, Cin), lambda n, t: (n, 0, 0, 0)),
                    pl.BlockSpec((4, 4, Cin, Cout), lambda n, t: (0, 0, 0, 0)),
                ],
                out_specs=(
                    pl.BlockSpec((1, th * W, 4 * Cout), lambda n, t: (n, t, 0)),
                    pl.BlockSpec((1, 2, 4 * Cout), lambda n, t: (n, 0, 0)),
                ),
            ),
            compiler_params=pltpu.CompilerParams(
                dimension_semantics=("parallel", "arbitrary")),
        )(xp, w_packed)

        # Pass B: normalize + ReLU per tile.
        y_packed = pl.pallas_call(
            functools.partial(_norm_kernel, n_tot=4.0 * H * W, cout=Cout),
            out_shape=jax.ShapeDtypeStruct((N, H * W, 4 * Cout), jnp.bfloat16),
            grid_spec=pltpu.PrefetchScalarGridSpec(
                num_scalar_prefetch=0,
                grid=(N, n_tiles),
                in_specs=[
                    pl.BlockSpec((1, 2, 4 * Cout), lambda n, t: (n, 0, 0)),
                    pl.BlockSpec((1, th * W, 4 * Cout), lambda n, t: (n, t, 0)),
                ],
                out_specs=pl.BlockSpec((1, th * W, 4 * Cout), lambda n, t: (n, t, 0)),
            ),
            compiler_params=pltpu.CompilerParams(
                dimension_semantics=("parallel", "parallel")),
        )(stats, y_conv)

    # Phase-packed (N, HW, 4*Cout) -> NCHW (N, Cout, 2H, 2W), then the skip concat,
    # all in bf16 (halved HBM traffic vs the previous f32 epilogue).
    y = (y_packed.reshape(N, H, W, 2, 2, Cout)
         .transpose(0, 5, 1, 3, 2, 4)
         .reshape(N, Cout, 2 * H, 2 * W))
    return jnp.concatenate([y, enc_ip.astype(y.dtype)], axis=1)


def reference(x, enc_ip, w, b):
    """f32 reference of ConvTranspose2d(k=4,s=2,p=1) + bias + InstanceNorm + ReLU + concat.

    Uses the same bf16-quantized conv operands the kernel consumes, so the
    comparison isolates kernel correctness from the intended precision choice.
    The bias IS applied here (the kernel omits it) to validate its absorption
    by the affine-free instance normalization.
    """
    x = x.astype(jnp.bfloat16).astype(jnp.float32)
    w = w.astype(jnp.bfloat16).astype(jnp.float32)
    N, Cin, H, W = x.shape
    Cout = w.shape[1]
    OH, OW = 2 * H, 2 * W
    y_full = jnp.zeros((N, Cout, OH + 2, OW + 2), jnp.float32)
    for ky in range(4):
        for kx in range(4):
            contrib = jnp.einsum('nchw,cd->ndhw', x, w[:, :, ky, kx])
            y_full = y_full.at[:, :, ky:ky + 2 * H:2, kx:kx + 2 * W:2].add(contrib)
    y = y_full[:, :, 1:1 + OH, 1:1 + OW] + b[None, :, None, None]
    mean = y.mean(axis=(2, 3), keepdims=True)
    var = ((y - mean) ** 2).mean(axis=(2, 3), keepdims=True)
    y = jnp.maximum((y - mean) * jax.lax.rsqrt(var + EPS), 0.0)
    return jnp.concatenate([y, enc_ip], axis=1)


if __name__ == "__main__":
    N, Cin, Cout = 2, 4, 32        # 4*Cout = 128 -> lane-dense stores
    H = W = 16                     # input spatial; output spatial = 32
    key = jax.random.PRNGKey(0)
    k1, k2, k3, k4 = jax.random.split(key, 4)

    x = jax.random.normal(k1, (N, Cin, H, W), jnp.float32)
    enc_ip = jax.random.normal(k2, (N, Cout, 2 * H, 2 * W), jnp.float32)
    weight = 0.1 * jax.random.normal(k3, (Cin, Cout, 4, 4), jnp.float32)  # PyTorch layout
    bias = 0.1 * jax.random.normal(k4, (Cout,), jnp.float32)

    # Weight repack is hoisted out of the per-call path (pure function of w).
    w_packed = jax.block_until_ready(pack_upconv_weights(weight))

    ref = jax.block_until_ready(reference(x, enc_ip, weight, bias))

    # Fused single-pass path (auto-selected at these small shapes).
    out_fused = jax.block_until_ready(upconv_block(x, enc_ip, w_packed, bias))
    # HW-row-tiled two-pass InstanceNorm path (what large / v7x shapes select).
    out_tiled = jax.block_until_ready(
        upconv_block(x, enc_ip, w_packed, bias, mode="tiled", rows_per_tile=4))

    assert out_fused.shape == (N, 2 * Cout, 2 * H, 2 * W), out_fused.shape
    assert out_tiled.shape == (N, 2 * Cout, 2 * H, 2 * W), out_tiled.shape
    for out in (out_fused, out_tiled):
        err = float(jnp.max(jnp.abs(out.astype(jnp.float32) - ref)))
        assert err < 6e-2, err     # bf16 output/skip quantization bound
    print("KERNEL_OK")
</pallas_src>

<mosaic_0001>
module attributes {stable_mosaic.version = 11 : i64} {
  func.func @_fused_kernel(%arg0: i32, %arg1: memref<1x18x18x4xbf16, #tpu.memory_space<vmem>>, %arg2: memref<4x4x4x32xbf16, #tpu.memory_space<vmem>>, %arg3: memref<1x256x128xbf16, #tpu.memory_space<vmem>>) attributes {dimension_semantics = [#tpu.dimension_semantics<parallel>], iteration_bounds = array<i64: 2>, scalar_prefetch = 0 : i64, scratch_operands = 0 : i64, tpu.core_type = #tpu.core_type<tc>, window_params = [{transform_indices = @transform_0, window_bounds = array<i64: 1, 18, 18, 4>}, {pipeline_mode = #tpu.pipeline_mode<synchronous>, transform_indices = @transform_1, window_bounds = array<i64: 4, 4, 4, 32>}, {transform_indices = @transform_2, window_bounds = array<i64: 1, 256, 128>}]} {
    %c0 = arith.constant 0 : index
    %c0_0 = arith.constant 0 : index
    %c0_1 = arith.constant 0 : index
    %c0_2 = arith.constant 0 : index
    %0 = vector.load %arg1[%c0, %c0_0, %c0_1, %c0_2] : memref<1x18x18x4xbf16, #tpu.memory_space<vmem>>, vector<1x18x18x4xbf16>
    %1 = vector.shape_cast %0 : vector<1x18x18x4xbf16> to vector<18x18x4xbf16>
    %2 = vector.extract_strided_slice %1 {offsets = [0, 0, 0], sizes = [16, 16, 4], strides = [1, 1, 1]} : vector<18x18x4xbf16> to vector<16x16x4xbf16>
    %3 = vector.shape_cast %2 : vector<16x16x4xbf16> to vector<256x4xbf16>
    %c0_3 = arith.constant 0 : index
    %c0_4 = arith.constant 0 : index
    %c0_5 = arith.constant 0 : index
    %c0_6 = arith.constant 0 : index
    %4 = vector.load %arg2[%c0_3, %c0_4, %c0_5, %c0_6] : memref<4x4x4x32xbf16, #tpu.memory_space<vmem>>, vector<1x1x4x32xbf16>
    %5 = vector.shape_cast %4 : vector<1x1x4x32xbf16> to vector<4x32xbf16>
    %cst = arith.constant dense<0.000000e+00> : vector<256x32xf32>
    %6 = tpu.matmul %3, %5, %cst {dimension_numbers = #tpu.dot_dimension_numbers<[1], [0], [0], [1], [0, 0, 1, 1], [], []>} : vector<256x4xbf16>, vector<4x32xbf16>, vector<256x32xf32> -> vector<256x32xf32>
    %7 = vector.extract_strided_slice %1 {offsets = [0, 1, 0], sizes = [16, 16, 4], strides = [1, 1, 1]} : vector<18x18x4xbf16> to vector<16x16x4xbf16>
    %8 = vector.shape_cast %7 : vector<16x16x4xbf16> to vector<256x4xbf16>
    %c0_7 = arith.constant 0 : index
    %c1 = arith.constant 1 : index
    %c0_8 = arith.constant 0 : index
    %c0_9 = arith.constant 0 : index
    %9 = vector.load %arg2[%c0_7, %c1, %c0_8, %c0_9] : memref<4x4x4x32xbf16, #tpu.memory_space<vmem>>, vector<1x1x4x32xbf16>
    %10 = vector.shape_cast %9 : vector<1x1x4x32xbf16> to vector<4x32xbf16>
    %cst_10 = arith.constant dense<0.000000e+00> : vector<256x32xf32>
    %11 = tpu.matmul %8, %10, %cst_10 {dimension_numbers = #tpu.dot_dimension_numbers<[1], [0], [0], [1], [0, 0, 1, 1], [], []>} : vector<256x4xbf16>, vector<4x32xbf16>, vector<256x32xf32> -> vector<256x32xf32>
    %12 = arith.addf %6, %11 : vector<256x32xf32>
    %13 = vector.extract_strided_slice %1 {offsets = [1, 0, 0], sizes = [16, 16, 4], strides = [1, 1, 1]} : vector<18x18x4xbf16> to vector<16x16x4xbf16>
    %14 = vector.shape_cast %13 : vector<16x16x4xbf16> to vector<256x4xbf16>
    %c0_11 = arith.constant 0 : index
    %c2 = arith.constant 2 : index
    %c0_12 = arith.constant 0 : index
    %c0_13 = arith.constant 0 : index
    %15 = vector.load %arg2[%c0_11, %c2, %c0_12, %c0_13] : memref<4x4x4x32xbf16, #tpu.memory_space<vmem>>, vector<1x1x4x32xbf16>
    %16 = vector.shape_cast %15 : vector<1x1x4x32xbf16> to vector<4x32xbf16>
    %cst_14 = arith.constant dense<0.000000e+00> : vector<256x32xf32>
    %17 = tpu.matmul %14, %16, %cst_14 {dimension_numbers = #tpu.dot_dimension_numbers<[1], [0], [0], [1], [0, 0, 1, 1], [], []>} : vector<256x4xbf16>, vector<4x32xbf16>, vector<256x32xf32> -> vector<256x32xf32>
    %18 = arith.addf %12, %17 : vector<256x32xf32>
    %19 = vector.extract_strided_slice %1 {offsets = [1, 1, 0], sizes = [16, 16, 4], strides = [1, 1, 1]} : vector<18x18x4xbf16> to vector<16x16x4xbf16>
    %20 = vector.shape_cast %19 : vector<16x16x4xbf16> to vector<256x4xbf16>
    %c0_15 = arith.constant 0 : index
    %c3 = arith.constant 3 : index
    %c0_16 = arith.constant 0 : index
    %c0_17 = arith.constant 0 : index
    %21 = vector.load %arg2[%c0_15, %c3, %c0_16, %c0_17] : memref<4x4x4x32xbf16, #tpu.memory_space<vmem>>, vector<1x1x4x32xbf16>
    %22 = vector.shape_cast %21 : vector<1x1x4x32xbf16> to vector<4x32xbf16>
    %cst_18 = arith.constant dense<0.000000e+00> : vector<256x32xf32>
    %23 = tpu.matmul %20, %22, %cst_18 {dimension_numbers = #tpu.dot_dimension_numbers<[1], [0], [0], [1], [0, 0, 1, 1], [], []>} : vector<256x4xbf16>, vector<4x32xbf16>, vector<256x32xf32> -> vector<256x32xf32>
    %24 = arith.addf %18, %23 : vector<256x32xf32>
    %25 = vector.extract_strided_slice %1 {offsets = [0, 1, 0], sizes = [16, 16, 4], strides = [1, 1, 1]} : vector<18x18x4xbf16> to vector<16x16x4xbf16>
    %26 = vector.shape_cast %25 : vector<16x16x4xbf16> to vector<256x4xbf16>
    %c1_19 = arith.constant 1 : index
    %c0_20 = arith.constant 0 : index
    %c0_21 = arith.constant 0 : index
    %c0_22 = arith.constant 0 : index
    %27 = vector.load %arg2[%c1_19, %c0_20, %c0_21, %c0_22] : memref<4x4x4x32xbf16, #tpu.memory_space<vmem>>, vector<1x1x4x32xbf16>
    %28 = vector.shape_cast %27 : vector<1x1x4x32xbf16> to vector<4x32xbf16>
    %cst_23 = arith.constant dense<0.000000e+00> : vector<256x32xf32>
    %29 = tpu.matmul %26, %28, %cst_23 {dimension_numbers = #tpu.dot_dimension_numbers<[1], [0], [0], [1], [0, 0, 1, 1], [], []>} : vector<256x4xbf16>, vector<4x32xbf16>, vector<256x32xf32> -> vector<256x32xf32>
    %30 = vector.extract_strided_slice %1 {offsets = [0, 2, 0], sizes = [16, 16, 4], strides = [1, 1, 1]} : vector<18x18x4xbf16> to vector<16x16x4xbf16>
    %31 = vector.shape_cast %30 : vector<16x16x4xbf16> to vector<256x4xbf16>
    %c1_24 = arith.constant 1 : index
    %c1_25 = arith.constant 1 : index
    %c0_26 = arith.constant 0 : index
    %c0_27 = arith.constant 0 : index
    %32 = vector.load %arg2[%c1_24, %c1_25, %c0_26, %c0_27] : memref<4x4x4x32xbf16, #tpu.memory_space<vmem>>, vector<1x1x4x32xbf16>
    %33 = vector.shape_cast %32 : vector<1x1x4x32xbf16> to vector<4x32xbf16>
    %cst_28 = arith.constant dense<0.000000e+00> : vector<256x32xf32>
    %34 = tpu.matmul %31, %33, %cst_28 {dimension_numbers = #tpu.dot_dimension_numbers<[1], [0], [0], [1], [0, 0, 1, 1], [], []>} : vector<256x4xbf16>, vector<4x32xbf16>, vector<256x32xf32> -> vector<256x32xf32>
    %35 = arith.addf %29, %34 : vector<256x32xf32>
    %36 = vector.extract_strided_slice %1 {offsets = [1, 1, 0], sizes = [16, 16, 4], strides = [1, 1, 1]} : vector<18x18x4xbf16> to vector<16x16x4xbf16>
    %37 = vector.shape_cast %36 : vector<16x16x4xbf16> to vector<256x4xbf16>
    %c1_29 = arith.constant 1 : index
    %c2_30 = arith.constant 2 : index
    %c0_31 = arith.constant 0 : index
    %c0_32 = arith.constant 0 : index
    %38 = vector.load %arg2[%c1_29, %c2_30, %c0_31, %c0_32] : memref<4x4x4x32xbf16, #tpu.memory_space<vmem>>, vector<1x1x4x32xbf16>
    %39 = vector.shape_cast %38 : vector<1x1x4x32xbf16> to vector<4x32xbf16>
    %cst_33 = arith.constant dense<0.000000e+00> : vector<256x32xf32>
    %40 = tpu.matmul %37, %39, %cst_33 {dimension_numbers = #tpu.dot_dimension_numbers<[1], [0], [0], [1], [0, 0, 1, 1], [], []>} : vector<256x4xbf16>, vector<4x32xbf16>, vector<256x32xf32> -> vector<256x32xf32>
    %41 = arith.addf %35, %40 : vector<256x32xf32>
    %42 = vector.extract_strided_slice %1 {offsets = [1, 2, 0], sizes = [16, 16, 4], strides = [1, 1, 1]} : vector<18x18x4xbf16> to vector<16x16x4xbf16>
    %43 = vector.shape_cast %42 : vector<16x16x4xbf16> to vector<256x4xbf16>
    %c1_34 = arith.constant 1 : index
    %c3_35 = arith.constant 3 : index
    %c0_36 = arith.constant 0 : index
    %c0_37 = arith.constant 0 : index
    %44 = vector.load %arg2[%c1_34, %c3_35, %c0_36, %c0_37] : memref<4x4x4x32xbf16, #tpu.memory_space<vmem>>, vector<1x1x4x32xbf16>
    %45 = vector.shape_cast %44 : vector<1x1x4x32xbf16> to vector<4x32xbf16>
    %cst_38 = arith.constant dense<0.000000e+00> : vector<256x32xf32>
    %46 = tpu.matmul %43, %45, %cst_38 {dimension_numbers = #tpu.dot_dimension_numbers<[1], [0], [0], [1], [0, 0, 1, 1], [], []>} : vector<256x4xbf16>, vector<4x32xbf16>, vector<256x32xf32> -> vector<256x32xf32>
    %47 = arith.addf %41, %46 : vector<256x32xf32>
    %48 = vector.extract_strided_slice %1 {offsets = [1, 0, 0], sizes = [16, 16, 4], strides = [1, 1, 1]} : vector<18x18x4xbf16> to vector<16x16x4xbf16>
    %49 = vector.shape_cast %48 : vector<16x16x4xbf16> to vector<256x4xbf16>
    %c2_39 = arith.constant 2 : index
    %c0_40 = arith.constant 0 : index
    %c0_41 = arith.constant 0 : index
    %c0_42 = arith.constant 0 : index
    %50 = vector.load %arg2[%c2_39, %c0_40, %c0_41, %c0_42] : memref<4x4x4x32xbf16, #tpu.memory_space<vmem>>, vector<1x1x4x32xbf16>
    %51 = vector.shape_cast %50 : vector<1x1x4x32xbf16> to vector<4x32xbf16>
    %cst_43 = arith.constant dense<0.000000e+00> : vector<256x32xf32>
    %52 = tpu.matmul %49, %51, %cst_43 {dimension_numbers = #tpu.dot_dimension_numbers<[1], [0], [0], [1], [0, 0, 1, 1], [], []>} : vector<256x4xbf16>, vector<4x32xbf16>, vector<256x32xf32> -> vector<256x32xf32>
    %53 = vector.extract_strided_slice %1 {offsets = [1, 1, 0], sizes = [16, 16, 4], strides = [1, 1, 1]} : vector<18x18x4xbf16> to vector<16x16x4xbf16>
    %54 = vector.shape_cast %53 : vector<16x16x4xbf16> to vector<256x4xbf16>
    %c2_44 = arith.constant 2 : index
    %c1_45 = arith.constant 1 : index
    %c0_46 = arith.constant 0 : index
    %c0_47 = arith.constant 0 : index
    %55 = vector.load %arg2[%c2_44, %c1_45, %c0_46, %c0_47] : memref<4x4x4x32xbf16, #tpu.memory_space<vmem>>, vector<1x1x4x32xbf16>
    %56 = vector.shape_cast %55 : vector<1x1x4x32xbf16> to vector<4x32xbf16>
    %cst_48 = arith.constant dense<0.000000e+00> : vector<256x32xf32>
    %57 = tpu.matmul %54, %56, %cst_48 {dimension_numbers = #tpu.dot_dimension_numbers<[1], [0], [0], [1], [0, 0, 1, 1], [], []>} : vector<256x4xbf16>, vector<4x32xbf16>, vector<256x32xf32> -> vector<256x32xf32>
    %58 = arith.addf %52, %57 : vector<256x32xf32>
    %59 = vector.extract_strided_slice %1 {offsets = [2, 0, 0], sizes = [16, 16, 4], strides = [1, 1, 1]} : vector<18x18x4xbf16> to vector<16x16x4xbf16>
    %60 = vector.shape_cast %59 : vector<16x16x4xbf16> to vector<256x4xbf16>
    %c2_49 = arith.constant 2 : index
    %c2_50 = arith.constant 2 : index
    %c0_51 = arith.constant 0 : index
    %c0_52 = arith.constant 0 : index
    %61 = vector.load %arg2[%c2_49, %c2_50, %c0_51, %c0_52] : memref<4x4x4x32xbf16, #tpu.memory_space<vmem>>, vector<1x1x4x32xbf16>
    %62 = vector.shape_cast %61 : vector<1x1x4x32xbf16> to vector<4x32xbf16>
    %cst_53 = arith.constant dense<0.000000e+00> : vector<256x32xf32>
    %63 = tpu.matmul %60, %62, %cst_53 {dimension_numbers = #tpu.dot_dimension_numbers<[1], [0], [0], [1], [0, 0, 1, 1], [], []>} : vector<256x4xbf16>, vector<4x32xbf16>, vector<256x32xf32> -> vector<256x32xf32>
    %64 = arith.addf %58, %63 : vector<256x32xf32>
    %65 = vector.extract_strided_slice %1 {offsets = [2, 1, 0], sizes = [16, 16, 4], strides = [1, 1, 1]} : vector<18x18x4xbf16> to vector<16x16x4xbf16>
    %66 = vector.shape_cast %65 : vector<16x16x4xbf16> to vector<256x4xbf16>
    %c2_54 = arith.constant 2 : index
    %c3_55 = arith.constant 3 : index
    %c0_56 = arith.constant 0 : index
    %c0_57 = arith.constant 0 : index
    %67 = vector.load %arg2[%c2_54, %c3_55, %c0_56, %c0_57] : memref<4x4x4x32xbf16, #tpu.memory_space<vmem>>, vector<1x1x4x32xbf16>
    %68 = vector.shape_cast %67 : vector<1x1x4x32xbf16> to vector<4x32xbf16>
    %cst_58 = arith.constant dense<0.000000e+00> : vector<256x32xf32>
    %69 = tpu.matmul %66, %68, %cst_58 {dimension_numbers = #tpu.dot_dimension_numbers<[1], [0], [0], [1], [0, 0, 1, 1], [], []>} : vector<256x4xbf16>, vector<4x32xbf16>, vector<256x32xf32> -> vector<256x32xf32>
    %70 = arith.addf %64, %69 : vector<256x32xf32>
    %71 = vector.extract_strided_slice %1 {offsets = [1, 1, 0], sizes = [16, 16, 4], strides = [1, 1, 1]} : vector<18x18x4xbf16> to vector<16x16x4xbf16>
    %72 = vector.shape_cast %71 : vector<16x16x4xbf16> to vector<256x4xbf16>
    %c3_59 = arith.constant 3 : index
    %c0_60 = arith.constant 0 : index
    %c0_61 = arith.constant 0 : index
    %c0_62 = arith.constant 0 : index
    %73 = vector.load %arg2[%c3_59, %c0_60, %c0_61, %c0_62] : memref<4x4x4x32xbf16, #tpu.memory_space<vmem>>, vector<1x1x4x32xbf16>
    %74 = vector.shape_cast %73 : vector<1x1x4x32xbf16> to vector<4x32xbf16>
    %cst_63 = arith.constant dense<0.000000e+00> : vector<256x32xf32>
    %75 = tpu.matmul %72, %74, %cst_63 {dimension_numbers = #tpu.dot_dimension_numbers<[1], [0], [0], [1], [0, 0, 1, 1], [], []>} : vector<256x4xbf16>, vector<4x32xbf16>, vector<256x32xf32> -> vector<256x32xf32>
    %76 = vector.extract_strided_slice %1 {offsets = [1, 2, 0], sizes = [16, 16, 4], strides = [1, 1, 1]} : vector<18x18x4xbf16> to vector<16x16x4xbf16>
    %77 = vector.shape_cast %76 : vector<16x16x4xbf16> to vector<256x4xbf16>
    %c3_64 = arith.constant 3 : index
    %c1_65 = arith.constant 1 : index
    %c0_66 = arith.constant 0 : index
    %c0_67 = arith.constant 0 : index
    %78 = vector.load %arg2[%c3_64, %c1_65, %c0_66, %c0_67] : memref<4x4x4x32xbf16, #tpu.memory_space<vmem>>, vector<1x1x4x32xbf16>
    %79 = vector.shape_cast %78 : vector<1x1x4x32xbf16> to vector<4x32xbf16>
    %cst_68 = arith.constant dense<0.000000e+00> : vector<256x32xf32>
    %80 = tpu.matmul %77, %79, %cst_68 {dimension_numbers = #tpu.dot_dimension_numbers<[1], [0], [0], [1], [0, 0, 1, 1], [], []>} : vector<256x4xbf16>, vector<4x32xbf16>, vector<256x32xf32> -> vector<256x32xf32>
    %81 = arith.addf %75, %80 : vector<256x32xf32>
    %82 = vector.extract_strided_slice %1 {offsets = [2, 1, 0], sizes = [16, 16, 4], strides = [1, 1, 1]} : vector<18x18x4xbf16> to vector<16x16x4xbf16>
    %83 = vector.shape_cast %82 : vector<16x16x4xbf16> to vector<256x4xbf16>
    %c3_69 = arith.constant 3 : index
    %c2_70 = arith.constant 2 : index
    %c0_71 = arith.constant 0 : index
    %c0_72 = arith.constant 0 : index
    %84 = vector.load %arg2[%c3_69, %c2_70, %c0_71, %c0_72] : memref<4x4x4x32xbf16, #tpu.memory_space<vmem>>, vector<1x1x4x32xbf16>
    %85 = vector.shape_cast %84 : vector<1x1x4x32xbf16> to vector<4x32xbf16>
    %cst_73 = arith.constant dense<0.000000e+00> : vector<256x32xf32>
    %86 = tpu.matmul %83, %85, %cst_73 {dimension_numbers = #tpu.dot_dimension_numbers<[1], [0], [0], [1], [0, 0, 1, 1], [], []>} : vector<256x4xbf16>, vector<4x32xbf16>, vector<256x32xf32> -> vector<256x32xf32>
    %87 = arith.addf %81, %86 : vector<256x32xf32>
    %88 = vector.extract_strided_slice %1 {offsets = [2, 2, 0], sizes = [16, 16, 4], strides = [1, 1, 1]} : vector<18x18x4xbf16> to vector<16x16x4xbf16>
    %89 = vector.shape_cast %88 : vector<16x16x4xbf16> to vector<256x4xbf16>
    %c3_74 = arith.constant 3 : index
    %c3_75 = arith.constant 3 : index
    %c0_76 = arith.constant 0 : index
    %c0_77 = arith.constant 0 : index
    %90 = vector.load %arg2[%c3_74, %c3_75, %c0_76, %c0_77] : memref<4x4x4x32xbf16, #tpu.memory_space<vmem>>, vector<1x1x4x32xbf16>
    %91 = vector.shape_cast %90 : vector<1x1x4x32xbf16> to vector<4x32xbf16>
    %cst_78 = arith.constant dense<0.000000e+00> : vector<256x32xf32>
    %92 = tpu.matmul %89, %91, %cst_78 {dimension_numbers = #tpu.dot_dimension_numbers<[1], [0], [0], [1], [0, 0, 1, 1], [], []>} : vector<256x4xbf16>, vector<4x32xbf16>, vector<256x32xf32> -> vector<256x32xf32>
    %93 = arith.addf %87, %92 : vector<256x32xf32>
    %94 = tpu.concatenate %24, %47, %70, %93 in 1 : vector<256x32xf32>, vector<256x32xf32>, vector<256x32xf32>, vector<256x32xf32> -> vector<256x128xf32>
    %cst_79 = arith.constant dense<0.000000e+00> : vector<128xf32>
    %95 = vector.multi_reduction <add>, %94, %cst_79 [0] : vector<256x128xf32> to vector<128xf32>
    %96 = vector.shape_cast %95 : vector<128xf32> to vector<1x128xf32>
    %97 = arith.mulf %94, %94 : vector<256x128xf32>
    %cst_80 = arith.constant dense<0.000000e+00> : vector<128xf32>
    %98 = vector.multi_reduction <add>, %97, %cst_80 [0] : vector<256x128xf32> to vector<128xf32>
    %99 = vector.shape_cast %98 : vector<128xf32> to vector<1x128xf32>
    %100 = vector.extract_strided_slice %96 {offsets = [0, 0], sizes = [1, 32], strides = [1, 1]} : vector<1x128xf32> to vector<1x32xf32>
    %101 = vector.extract_strided_slice %99 {offsets = [0, 0], sizes = [1, 32], strides = [1, 1]} : vector<1x128xf32> to vector<1x32xf32>
    %102 = vector.extract_strided_slice %96 {offsets = [0, 32], sizes = [1, 32], strides = [1, 1]} : vector<1x128xf32> to vector<1x32xf32>
    %103 = arith.addf %100, %102 : vector<1x32xf32>
    %104 = vector.extract_strided_slice %99 {offsets = [0, 32], sizes = [1, 32], strides = [1, 1]} : vector<1x128xf32> to vector<1x32xf32>
    %105 = arith.addf %101, %104 : vector<1x32xf32>
    %106 = vector.extract_strided_slice %96 {offsets = [0, 64], sizes = [1, 32], strides = [1, 1]} : vector<1x128xf32> to vector<1x32xf32>
    %107 = arith.addf %103, %106 : vector<1x32xf32>
    %108 = vector.extract_strided_slice %99 {offsets = [0, 64], sizes = [1, 32], strides = [1, 1]} : vector<1x128xf32> to vector<1x32xf32>
    %109 = arith.addf %105, %108 : vector<1x32xf32>
    %110 = vector.extract_strided_slice %96 {offsets = [0, 96], sizes = [1, 32], strides = [1, 1]} : vector<1x128xf32> to vector<1x32xf32>
    %111 = arith.addf %107, %110 : vector<1x32xf32>
    %112 = vector.extract_strided_slice %99 {offsets = [0, 96], sizes = [1, 32], strides = [1, 1]} : vector<1x128xf32> to vector<1x32xf32>
    %113 = arith.addf %109, %112 : vector<1x32xf32>
    %cst_81 = arith.constant 9.765625E-4 : f32
    %114 = vector.broadcast %cst_81 : f32 to vector<1x32xf32>
    %115 = arith.mulf %111, %114 : vector<1x32xf32>
    %cst_82 = arith.constant 9.765625E-4 : f32
    %116 = vector.broadcast %cst_82 : f32 to vector<1x32xf32>
    %117 = arith.mulf %113, %116 : vector<1x32xf32>
    %118 = arith.mulf %115, %115 : vector<1x32xf32>
    %119 = arith.subf %117, %118 : vector<1x32xf32>
    %cst_83 = arith.constant 0.000000e+00 : f32
    %120 = vector.broadcast %cst_83 : f32 to vector<1x32xf32>
    %121 = arith.maximumf %119, %120 : vector<1x32xf32>
    %cst_84 = arith.constant 9.99999974E-6 : f32
    %122 = vector.broadcast %cst_84 : f32 to vector<1x32xf32>
    %123 = arith.addf %121, %122 : vector<1x32xf32>
    %124 = math.rsqrt %123 : vector<1x32xf32>
    %125 = tpu.concatenate %124, %124, %124, %124 in 1 : vector<1x32xf32>, vector<1x32xf32>, vector<1x32xf32>, vector<1x32xf32> -> vector<1x128xf32>
    %126 = arith.mulf %115, %124 : vector<1x32xf32>
    %127 = tpu.concatenate %126, %126, %126, %126 in 1 : vector<1x32xf32>, vector<1x32xf32>, vector<1x32xf32>, vector<1x32xf32> -> vector<1x128xf32>
    %128 = vector.broadcast %125 : vector<1x128xf32> to vector<256x128xf32>
    %129 = arith.mulf %94, %128 : vector<256x128xf32>
    %130 = vector.broadcast %127 : vector<1x128xf32> to vector<256x128xf32>
    %131 = arith.subf %129, %130 : vector<256x128xf32>
    %cst_85 = arith.constant 0.000000e+00 : f32
    %132 = vector.broadcast %cst_85 : f32 to vector<256x128xf32>
    %133 = arith.maximumf %131, %132 : vector<256x128xf32>
    %134 = arith.truncf %133 : vector<256x128xf32> to vector<256x128xbf16>
    %c0_86 = arith.constant 0 : index
    %c0_87 = arith.constant 0 : index
    %c0_88 = arith.constant 0 : index
    %135 = vector.load %arg3[%c0_86, %c0_87, %c0_88] : memref<1x256x128xbf16, #tpu.memory_space<vmem>>, vector<1x256x128xbf16>
    %136 = vector.shape_cast %135 : vector<1x256x128xbf16> to vector<256x128xbf16>
    %137 = vector.shape_cast %134 : vector<256x128xbf16> to vector<1x256x128xbf16>
    tpu.vector_store %arg3[%c0_86, %c0_87, %c0_88], %137 {strides = array<i32>} : memref<1x256x128xbf16, #tpu.memory_space<vmem>>, vector<1x256x128xbf16>,
    return
  }
  func.func @transform_0(%arg0: i32) -> (i32, i32, i32, i32) {
    %c0_i32 = arith.constant 0 : i32
    %c0_i32_0 = arith.constant 0 : i32
    %c0_i32_1 = arith.constant 0 : i32
    %c0_i32_2 = arith.constant 0 : i32
    return %arg0, %c0_i32, %c0_i32_0, %c0_i32_1 : i32, i32, i32, i32
  }
  func.func @transform_1(%arg0: i32) -> (i32, i32, i32, i32) {
    %c0_i32 = arith.constant 0 : i32
    %c0_i32_0 = arith.constant 0 : i32
    %c0_i32_1 = arith.constant 0 : i32
    %c0_i32_2 = arith.constant 0 : i32
    %c0_i32_3 = arith.constant 0 : i32
    return %c0_i32, %c0_i32_0, %c0_i32_1, %c0_i32_2 : i32, i32, i32, i32
  }
  func.func @transform_2(%arg0: i32) -> (i32, i32, i32) {
    %c0_i32 = arith.constant 0 : i32
    %c0_i32_0 = arith.constant 0 : i32
    %c0_i32_1 = arith.constant 0 : i32
    return %arg0, %c0_i32, %c0_i32_0 : i32, i32, i32
  }
}

</mosaic_0001>

<bundles_post_ra>
// kernel: tpu_custom_call.1
= control target key start
LH: loop header
LB: loop body
LE: loop exit
PB: predicated region body
PF: predicated region fallthrough
CT: control target
= control target key end

     0   :  { %7 = vsyncpa [#allocation3], 0  ;;  %s8903_s0 = inlined_call_operand.vmem [shape: bf16[2,18,18,4], index: 0, kind: input, shape index: {}]   ;;  %s8904_s1 = inlined_call_operand.vmem [shape: bf16[4,4,4,32], index: 1, kind: input, shape index: {}]   ;;  %s8905_s2 = inlined_call_operand.hbm [shape: bf16[2,256,128], index: 2, kind: output, shape index: {}]  }
   0x1   :  { %9 = vsyncpa [#allocation3 + $0x1], 0  ;;  %s6919_s9 = smov 0   ;;  %s6921_s10 = smov 0  }
   0x2   :  { %s6923_s11 = smov 0   ;;  %s6925_s12 = smov 0  }
   0x3 LB: > { %s6940_s13 = sadd.s32 4294967295, %s6897_s12   ;;  %s5041_s14 = sadd.s32 4294967294, %s6897_s12   ;;  %s6897_s12 = sphi %s6925_s12, %s9041_s12   ;;  %s6893_s11 = sphi %s6923_s11, %s9040_s11   ;;  %s6889_s10 = sphi %s6921_s10, %s9039_s10   ;;  %s6885_s9 = sphi %s6919_s9, %s9038_s9  }
   0x4   : > { %s6944_s15 = sadd.s32 1, %s6897_s12   ;;  %s69_s16 = sadd.s32 1, %s6893_s11 }
   0x5   : > { %s66_s17 = ssub.s32 %s6897_s12, %s6944_s15  ;;  %p79_p0 = scmp.ne.s32.totalorder %s6893_s11, %s6889_s10 }
   0x6   : > { %p67_p1 = scmp.eq.s32.totalorder %s66_s17, 0  ;;  %p80_p2 = scmp.eq.s32.totalorder %s6940_s13, 1 }
   0x7   : > { %p85_p3 = scmp.ne.s32.totalorder %s6889_s10, %s6885_s9  ;;  %p86_p4 = scmp.eq.s32.totalorder %s5041_s14, 1 }
   0x8   : > { %s6955_s18 = scalar_select %p67_p1, %s6893_s11, %s69_s16  }
   0x9   : > { %p6957_p5 = por %p80_p2, %p79_p0  ;;  %p6961_p6 = por %p86_p4, %p85_p3 }
   0xa   : > { %p5044_p7 = scmp.ge.s32.totalorder %s6897_s12, 1  ;;  %p115_p8 = scmp.lt.s32.totalorder %s6897_s12, 3 }
   0xc   : > { %p116_p9 = pnand %p5044_p7, %p115_p8 }
   0xe   : > { %119 = sbr.rel (%p116_p9) target bundleno = 1312 (0x520), region = 28 }
  0x15   : > { %vm684_vm0 = vcmask 1041408   ;;  %v5165_v0 = vld [vmem:[%s8904_s1 + $0xa] sm:$0x3]  ;;  %p137_p10 = scmp.lt.s32.totalorder %s6940_s13, 1  ;;  %v5148_v2 = vld [vmem:[%s8904_s1 + $0x8] sm:$0x3] }
  0x16   : > { %6759 = vmatprep.subr.msk.bf16.mxu1 %vm684_vm0, %v5165_v0  ;;  %v1807_v1 = vsel %vm684_vm0, %v5165_v0, 0  ;;  %v5047_v3 = vld [vmem:[%s8904_s1 + $0x2] sm:$0x3]  ;;  %vm1593_vm1 = vcmask 1042432   ;;  %vm1594_vm2 = vcmask 1046532   ;;  %vm635_vm3 = vcmask 31744  }
  0x17   : > { %5964 = vmatpush3.bf16.msra.mxu1 %v1807_v1  ;;  %s138_s27 = scalar_select %p137_p10, %s6940_s13, 1  ;;  %6755 = vmatprep.subr.msk.bf16.mxu0 %vm684_vm0, %v5047_v3  ;;  %v686_v4 = vsel %vm684_vm0, %v5047_v3, 0  ;;  %v197_v5 = vld [vmem:[%s8904_s1] sm:$0x3]  ;;  %vm6992_vm4 = vmor %vm1593_vm1, %vm1594_vm2  ;;  %v6997_v7 = vsel %vm684_vm0, %v5148_v2, 0  ;;  %vm4436_vm8 = vcmask 261120  }
  0x18   : > { %6760 = vmatprep.subr.msk.bf16.mxu1 %vm684_vm0, %v5148_v2  ;;  %5828 = vmatpush3.bf16.msra.mxu0 %v686_v4  ;;  %vm198_vm5 = vsmask.f32 3328  ;;  %vm199_vm6 = vsmask.f32 7440  ;;  %v7012_v15 = vsel %vm684_vm0, %v197_v5, 0  ;;  %s6899_s21 = smov 32  }
  0x19   : > { %s6771_s30 = smul.u32 216, %s138_s27  ;;  %6756 = vmatprep.subr.msk.bf16.mxu0 %vm684_vm0, %v197_v5  ;;  %vm7044_vm7 = vmor %vm198_vm5, %vm199_vm6  ;;  %v7058_v61 = vld [vmem:[%s8904_s1 + $0xc] sm:$0x3]  ;;  %s6901_s22 = smov 64   ;;  %vm4469_vm9 = vcmask 523264   ;;  %vm4502_vm10 = vcmask 785408  }
  0x1a   : > { %s134_s23 = sand.u32 1, %s6889_s10   ;;  %s5459_s25 = sshll.u32 %s6940_s13, 11 }
  0x1b   : > { %s6990_s5 = scalar_lea.vmem %s8903_s0, %s6771_s30  ;;  %s5045_s24 = sshll.u32 %s134_s23, 7 }
  0x1c   : > { %v7000_v8 = vld [vmem:[%s6990_s5] sm:$0xf]  ;;  %v7003_v9 = vld [vmem:[%s6990_s5 + $0x4] sm:$0xf]  ;;  %v145_v10 = vld [vmem:[%s6990_s5 + $0x8] sm:$0x1]  ;;  %s8842_s29 = scalar_lea.hbm %s8905_s2, %s5459_s25 }
  0x1d   : > { %v5149_v11 = vrot.slane %v7000_v8, 9  ;;  %v1598_v12 = vrot.slane %v7003_v9, 5  ;;  %v1601_v13 = vrot.slane %v145_v10, 5  ;;  %v7009_v14 = vld [vmem:[%s6990_s5 + $0xc] sm:$0xf]  ;;  %v202_v19 = vshrl.u32 %v7000_v8, 16 }
  0x1e   : > { %v7015_v16 = vld [vmem:[%s6990_s5 + $0x10] sm:$0xf]  ;;  %v226_v17 = vshrl.u32 %v7009_v14, 16  ;;  %v229_v18 = vshll.u32 %v7009_v14, 16  ;;  %v148_v23 = vld [vmem:[%s6990_s5 + $0x14] sm:$0x1] }
  0x1f   : > { %v1599_v21 = vsel %vm6992_vm4, %v5149_v11, %v1598_v12  ;;  %v1600_v22 = vrot.slane %v1598_v12, 4  ;;  %v235_v24 = vshll.u32 %v7015_v16, 16  ;;  %v239_v25 = vshrl.u32 %v7015_v16, 16  ;;  %v7032_v38 = vld [vmem:[%s6990_s5 + $0x18] sm:$0xf]  ;;  %s8832_s26 = scalar_lea.vmem [#allocation2], %s5045_s24 }
  0x20   : > { %v228_v26 = vrot.slane %v226_v17, 4  ;;  %v231_v27 = vrot.slane %v229_v18, 5  ;;  %v245_v28 = vshll.u32 %v148_v23, 16  ;;  %v5150_v29 = vrot.slane %v7009_v14, 9  ;;  %v7049_v51 = vld [vmem:[%s6990_s5 + $0x1c] sm:$0xf] }
  0x21   : > { %v1602_v30 = vsel %vm6992_vm4, %v1600_v22, %v1601_v13  ;;  %v237_v31 = vrot.slane %v235_v24, 5  ;;  %v241_v32 = vrot.slane %v239_v25, 4  ;;  %v1605_v33 = vrot.slane %v7015_v16, 5  ;;  %v151_v0 = vld [vmem:[%s6990_s5 + $0x20] sm:$0x1]  ;;  %s4979_s27 = sshll.u32 %s8832_s26, 4  ;;  %s8848_s27 = int_to_ptr.vmem [resolvable:$true] %s4979_s27 }
  0x22   : > { %v5166_v34 = vcombine.low %v1599_v21, %v1602_v30  ;;  %v247_v35 = vrot.slane %v245_v28, 5  ;;  %v1608_v36 = vrot.slane %v148_v23, 5  ;;  %v204_v37 = vrot.slane %v202_v19, 4  ;;  %v7073_v18 = vld [vmem:[%s6990_s5 + $0x24] sm:$0xf]  ;;  %s8860_s30 = scalar_lea.sflag [#allocation3], %s134_s23 }
  0x23   : > { %v1606_v39 = vsel %vm6992_vm4, %v5150_v29, %v1605_v33  ;;  %v1607_v40 = vrot.slane %v1605_v33, 4  ;;  %v205_v41 = vshll.u32 %v7000_v8, 16  ;;  %v211_v42 = vshll.u32 %v7003_v9, 16  ;;  %v7081_v23 = vld [vmem:[%s6990_s5 + $0x28] sm:$0xf]  ;;  %s6835_s3 = scalar_lea.vmem %s8848_s27, 2048 }
  0x24   : > { %5965 = vmatprep.mubr.msk.bf16.mxu1 %vm635_vm3, %v5166_v34  ;;  %v215_v43 = vshrl.u32 %v7003_v9, 16  ;;  %v221_v44 = vshll.u32 %v145_v10, 16  ;;  %v232_v45 = vor.u32 %v231_v27, %v228_v26  ;;  %v242_v46 = vor.u32 %v241_v32, %v237_v31  ;;  %p6836_p11 = scmp.ne.s32.totalorder %s8848_s27, %s6835_s3  ;;  %s6902_s4 = smov [#allocation2]  }
  0x25   : > { %v1609_v47 = vsel %vm6992_vm4, %v1607_v40, %v1608_v36  ;;  %v207_v49 = vrot.slane %v205_v41, 5  ;;  %v213_v50 = vrot.slane %v211_v42, 5  ;;  %v250_v52 = vshrl.u32 %v7032_v38, 16  ;;  %v7096_v36 = vld [vmem:[%s8904_s1 + $0x4] sm:$0x3]  ;;  %s6839_s6 = sshll.u32 %s6902_s4, 4  ;;  %s6840_s6 = int_to_ptr.vmem [resolvable:$false] %s6839_s6 }
  0x26   : > { %v7052_v53 = vcombine.low %v1606_v39, %v1609_v47  ;;  %v217_v54 = vrot.slane %v215_v43, 4  ;;  %v223_v55 = vrot.slane %v221_v44, 5  ;;  %v233_v56 = vrot.slane %v232_v45, 4  ;;  %v154_v39 = vld [vmem:[%s6990_s5 + $0x2c] sm:$0x1]  ;;  %p6837_p12 = pnand %p6836_p11, %p6957_p5  ;;  %s6841_s7 = scalar_lea.vmem %s6840_s6, 4096 }
  0x27   : > { %v208_v57 = vor.u32 %v207_v49, %v204_v37  ;;  %v243_v58 = vrot.slane %v242_v46, 4  ;;  %v252_v59 = vrot.slane %v250_v52, 4  ;;  %v253_v60 = vshll.u32 %v7032_v38, 16  ;;  %v7111_v47 = vld [vmem:[%s6990_s5 + $0x30] sm:$0xf]  ;;  %p6842_p0 = scmp.lt.s32.totalorder %s8848_s27, %s6840_s6  ;;  %p6843_p1 = scmp.lt.s32.totalorder %s6841_s7, %s6835_s3 }
  0x28   : > { %8957 = vst [vmem:[#allocation5_spill] sm:$0xff] %v7052_v53  ;;  %5966 = vmatmul.mubr.msk.bf16.vlgmr.msra.gmra.mrb[0].mxu1 %vm635_vm3, %v7052_v53  ;;  %v218_v62 = vor.u32 %v217_v54, %v213_v50  ;;  %v238_v63 = vsel %vm7044_vm7, %v233_v56, %v237_v31  ;;  %v259_v1 = vshll.u32 %v7049_v51, 16  ;;  %v263_v2 = vshrl.u32 %v7049_v51, 16  ;;  %p6838_p13 = pneg %p6837_p12 }
  0x29   : > { %5998 = vmatpush3.bf16.msra.mxu1 %v6997_v7  ;;  %v209_v3 = vrot.slane %v208_v57, 4  ;;  %v248_v4 = vsel %vm7044_vm7, %v243_v58, %v247_v35  ;;  %v255_v5 = vrot.slane %v253_v60, 5  ;;  %v269_v10 = vshll.u32 %v151_v0, 16  ;;  %p6844_p2 = por %p6843_p1, %p6842_p0 }
  0x2a   : > { %v219_v11 = vrot.slane %v218_v62, 4  ;;  %v7070_v12 = vcombine.low %v238_v63, %v248_v4  ;;  %v261_v13 = vrot.slane %v259_v1, 5  ;;  %v265_v17 = vrot.slane %v263_v2, 4  ;;  %6761 = vmatprep.subr.msk.bf16.mxu1 %vm684_vm0, %v7058_v61 }
  0x2b   : > { %v214_v19 = vsel %vm7044_vm7, %v209_v3, %v213_v50  ;;  %v256_v7 = vor.u32 %v255_v5, %v252_v59  ;;  %v271_v21 = vrot.slane %v269_v10, 5  ;;  %v5151_v22 = vrot.slane %v7032_v38, 9  ;;  %v157_v10 = vld [vmem:[%s6990_s5 + $0x38] sm:$0x1]  ;;  %p6845_p3 = pnand %p6844_p2, %p6838_p13 }
  0x2c   : > { %v224_v24 = vsel %vm7044_vm7, %v219_v11, %v223_v55  ;;  %v266_v25 = vor.u32 %v265_v17, %v261_v13  ;;  %v1612_v26 = vrot.slane %v7049_v51, 5  ;;  %v1615_v27 = vrot.slane %v151_v0, 5  ;;  %v7119_v55 = vld [vmem:[%s6990_s5 + $0x34] sm:$0xf] }
  0x2d   : > { %v7086_v28 = vcombine.low %v214_v19, %v224_v24  ;;  %v257_v29 = vrot.slane %v256_v7, 4  ;;  %v274_v30 = vshrl.u32 %v7073_v18, 16  ;;  %v277_v31 = vshll.u32 %v7073_v18, 16 }
  0x2e   : > { %v267_v32 = vrot.slane %v266_v25, 4  ;;  %v1613_v33 = vsel %vm6992_vm4, %v5151_v22, %v1612_v26  ;;  %v1614_v34 = vrot.slane %v1612_v26, 4  ;;  %v283_v35 = vshll.u32 %v7081_v23, 16  ;;  %v7141_v22 = vld [vmem:[%s6990_s5 + $0x3c] sm:$0xf] }
  0x2f   : > { %5829 = vmatprep.mubr.msk.bf16.mxu0 %vm635_vm3, %v7086_v28  ;;  %v262_v37 = vsel %vm7044_vm7, %v257_v29, %v261_v13  ;;  %v276_v40 = vrot.slane %v274_v30, 4  ;;  %v279_v41 = vrot.slane %v277_v31, 5  ;;  %v287_v42 = vshrl.u32 %v7081_v23, 16  ;;  %8959 = vst [vmem:[#allocation7_spill] sm:$0xff] %v7141_v22  ;;  %v7149_v29 = vld [vmem:[%s6990_s5 + $0x40] sm:$0xf] }
  0x30   : > { %5830 = vmatmul.mubr.msk.bf16.vlgmr.msra.gmra.mrb[0].mxu0 %vm635_vm3, %v7070_v12  ;;  %v272_v43 = vsel %vm7044_vm7, %v267_v32, %v271_v21  ;;  %v1616_v44 = vsel %vm6992_vm4, %v1614_v34, %v1615_v27  ;;  %v285_v45 = vrot.slane %v283_v35, 5  ;;  %v293_v46 = vshll.u32 %v154_v39, 16 }
  0x31   : > { %v7113_v49 = vcombine.low %v262_v37, %v272_v43  ;;  %v7115_v50 = vcombine.low %v1613_v33, %v1616_v44  ;;  %5862 = vmatpush3.bf16.msra.mxu0 %v7012_v15  ;;  %v280_v52 = vor.u32 %v279_v41, %v276_v40  ;;  %v289_v54 = vrot.slane %v287_v42, 4 }
  0x32   : > { %v295_v56 = vrot.slane %v293_v46, 5  ;;  %v5152_v57 = vrot.slane %v7073_v18, 9  ;;  %v1619_v58 = vrot.slane %v7081_v23, 5  ;;  %v1622_v59 = vrot.slane %v154_v39, 5  ;;  %6757 = vmatprep.subr.msk.bf16.mxu0 %vm684_vm0, %v7096_v36 }
  0x33   : > { %8958 = vst [vmem:[#allocation6_spill] sm:$0xff] %v7115_v50  ;;  %5969 = vmatprep.mubr.msk.bf16.mxu1 %vm635_vm3, %v7115_v50  ;;  %v281_v60 = vrot.slane %v280_v52, 4  ;;  %v290_v62 = vor.u32 %v289_v54, %v285_v45  ;;  %5833 = vmatprep.mubr.msk.bf16.mxu0 %vm635_vm3, %v7113_v49  ;;  %v298_v15 = vshrl.u32 %v7111_v47, 16  ;;  %v301_v63 = vshll.u32 %v7111_v47, 16 }
  0x34   : > { %v1620_v0 = vsel %vm6992_vm4, %v5152_v57, %v1619_v58  ;;  %v1621_v1 = vrot.slane %v1619_v58, 4  ;;  %v307_v2 = vshll.u32 %v7119_v55, 16  ;;  %v311_v3 = vshrl.u32 %v7119_v55, 16 }
  0x35   : > { %v286_v4 = vsel %vm7044_vm7, %v281_v60, %v285_v45  ;;  %v291_v5 = vrot.slane %v290_v62, 4  ;;  %v300_v11 = vrot.slane %v298_v15, 4  ;;  %v303_v13 = vrot.slane %v301_v63, 5  ;;  %v160_v45 = vld [vmem:[%s6990_s5 + $0x44] sm:$0x1] }
  0x36   : > { %v1623_v17 = vsel %vm6992_vm4, %v1621_v1, %v1622_v59  ;;  %v309_v19 = vrot.slane %v307_v2, 5  ;;  %v313_v7 = vrot.slane %v311_v3, 4  ;;  %v317_v21 = vshll.u32 %v157_v10, 16  ;;  %v7172_v60 = vld [vmem:[%s6990_s5 + $0x48] sm:$0xf] }
  0x37   : > { %v296_v24 = vsel %vm7044_vm7, %v291_v5, %v295_v56  ;;  %v7145_v25 = vcombine.low %v1620_v0, %v1623_v17  ;;  %v304_v26 = vor.u32 %v303_v13, %v300_v11  ;;  %v5153_v27 = vrot.slane %v7111_v47, 9  ;;  %v7179_v1 = vld [vmem:[%s6990_s5 + $0x4c] sm:$0xf] }
  0x38   : > { %v7151_v30 = vcombine.low %v286_v4, %v296_v24  ;;  %v314_v31 = vor.u32 %v313_v7, %v309_v19  ;;  %v319_v32 = vrot.slane %v317_v21, 5  ;;  %v1626_v33 = vrot.slane %v7119_v55, 5 }
  0x39   : > { %8960 = vst [vmem:[#allocation8_spill] sm:$0xff] %v7145_v25  ;;  %5970 = vmatmul.mubr.msk.bf16.gmra.mrb[4].mxu1 %vm635_vm3, %v7145_v25  ;;  %v305_v34 = vrot.slane %v304_v26, 4  ;;  %v1629_v35 = vrot.slane %v157_v10, 5  ;;  %v322_v37 = vshrl.u32 %v7141_v22, 16  ;;  %v325_v39 = vshll.u32 %v7141_v22, 16 }
  0x3a   : > { %5834 = vmatmul.mubr.msk.bf16.gmra.mrb[4].mxu0 %vm635_vm3, %v7151_v30  ;;  %v315_v40 = vrot.slane %v314_v31, 4  ;;  %v1627_v41 = vsel %vm6992_vm4, %v5153_v27, %v1626_v33  ;;  %v1628_v42 = vrot.slane %v1626_v33, 4  ;;  %v331_v43 = vshll.u32 %v7149_v29, 16  ;;  %v163_v31 = vld [vmem:[%s6990_s5 + $0x50] sm:$0x1] }
  0x3b   : > { %v310_v44 = vsel %vm7044_vm7, %v305_v34, %v309_v19  ;;  %v324_v46 = vrot.slane %v322_v37, 4  ;;  %v327_v52 = vrot.slane %v325_v39, 5  ;;  %v335_v54 = vshrl.u32 %v7149_v29, 16 }
  0x3c   : > { %v320_v56 = vsel %vm7044_vm7, %v315_v40, %v319_v32  ;;  %v1630_v57 = vsel %vm6992_vm4, %v1628_v42, %v1629_v35  ;;  %v333_v58 = vrot.slane %v331_v43, 5  ;;  %v341_v59 = vshll.u32 %v160_v45, 16  ;;  %v7199_v40 = vld [vmem:[%s6990_s5 + $0x54] sm:$0xf] }
  0x3d   : > { %v7174_v62 = vcombine.low %v310_v44, %v320_v56  ;;  %v7176_v15 = vcombine.low %v1627_v41, %v1630_v57  ;;  %v328_v63 = vor.u32 %v327_v52, %v324_v46  ;;  %v337_v0 = vrot.slane %v335_v54, 4 }
  0x3e   : > { %v343_v2 = vrot.slane %v341_v59, 5  ;;  %v5154_v3 = vrot.slane %v7141_v22, 9  ;;  %v1633_v4 = vrot.slane %v7149_v29, 5  ;;  %v1636_v5 = vrot.slane %v160_v45, 5  ;;  %v7207_v45 = vld [vmem:[%s6990_s5 + $0x58] sm:$0xf] }
  0x3f   : > { %8961 = vst [vmem:[#allocation9_spill] sm:$0xff] %v7176_v15  ;;  %5973 = vmatprep.mubr.msk.bf16.mxu1 %vm635_vm3, %v7176_v15  ;;  %v329_v10 = vrot.slane %v328_v63, 4  ;;  %v338_v11 = vor.u32 %v337_v0, %v333_v58  ;;  %5837 = vmatprep.mubr.msk.bf16.mxu0 %vm635_vm3, %v7174_v62  ;;  %v346_v13 = vshrl.u32 %v7172_v60, 16  ;;  %v349_v17 = vshll.u32 %v7172_v60, 16 }
  0x40   : > { %v1634_v19 = vsel %vm6992_vm4, %v5154_v3, %v1633_v4  ;;  %v1635_v7 = vrot.slane %v1633_v4, 4  ;;  %v355_v21 = vshll.u32 %v7179_v1, 16  ;;  %v359_v24 = vshrl.u32 %v7179_v1, 16 }
  0x41   : > { %v334_v26 = vsel %vm7044_vm7, %v329_v10, %v333_v58  ;;  %v339_v27 = vrot.slane %v338_v11, 4  ;;  %v348_v32 = vrot.slane %v346_v13, 4  ;;  %v351_v33 = vrot.slane %v349_v17, 5  ;;  %v166_v10 = vld [vmem:[%s6990_s5 + $0x5c] sm:$0x1] }
  0x42   : > { %v1637_v34 = vsel %vm6992_vm4, %v1635_v7, %v1636_v5  ;;  %v357_v35 = vrot.slane %v355_v21, 5  ;;  %v361_v37 = vrot.slane %v359_v24, 4  ;;  %v365_v39 = vshll.u32 %v163_v31, 16 }
  0x43   : > { %v344_v41 = vsel %vm7044_vm7, %v339_v27, %v343_v2  ;;  %v7203_v42 = vcombine.low %v1634_v19, %v1637_v34  ;;  %v352_v43 = vor.u32 %v351_v33, %v348_v32  ;;  %v5155_v44 = vrot.slane %v7172_v60, 9  ;;  %v7237_v34 = vld [vmem:[%s6990_s5 + $0x64] sm:$0xf] }
  0x44   : > { %v7209_v46 = vcombine.low %v334_v26, %v344_v41  ;;  %v362_v52 = vor.u32 %v361_v37, %v357_v35  ;;  %v367_v54 = vrot.slane %v365_v39, 5  ;;  %v1640_v56 = vrot.slane %v7179_v1, 5  ;;  %v7230_v26 = vld [vmem:[%s6990_s5 + $0x60] sm:$0xf] }
  0x45   : > { %8962 = vst [vmem:[#allocation10_spill] sm:$0xff] %v7203_v42  ;;  %5974 = vmatmul.mubr.msk.bf16.gmra.mrb[8].mxu1 %vm635_vm3, %v7203_v42  ;;  %v353_v57 = vrot.slane %v352_v43, 4  ;;  %v1643_v58 = vrot.slane %v163_v31, 5  ;;  %v370_v59 = vshrl.u32 %v7199_v40, 16  ;;  %v373_v63 = vshll.u32 %v7199_v40, 16 }
  0x46   : > { %8963 = vst [vmem:[#allocation11_spill] sm:$0xff] %v7209_v46  ;;  %5838 = vmatmul.mubr.msk.bf16.gmra.mrb[8].mxu0 %vm635_vm3, %v7209_v46  ;;  %v363_v0 = vrot.slane %v362_v52, 4  ;;  %v1641_v2 = vsel %vm6992_vm4, %v5155_v44, %v1640_v56  ;;  %v1642_v3 = vrot.slane %v1640_v56, 4  ;;  %v379_v4 = vshll.u32 %v7207_v45, 16 }
  0x47   : > { %v358_v5 = vsel %vm7044_vm7, %v353_v57, %v357_v35  ;;  %v372_v11 = vrot.slane %v370_v59, 4  ;;  %v375_v13 = vrot.slane %v373_v63, 5  ;;  %v383_v17 = vshrl.u32 %v7207_v45, 16 }
  0x48   : > { %v368_v19 = vsel %vm7044_vm7, %v363_v0, %v367_v54  ;;  %v1644_v7 = vsel %vm6992_vm4, %v1642_v3, %v1643_v58  ;;  %v381_v21 = vrot.slane %v379_v4, 5  ;;  %v389_v24 = vshll.u32 %v166_v10, 16 }
  0x49   : > { %v7232_v27 = vcombine.low %v358_v5, %v368_v19  ;;  %v7234_v31 = vcombine.low %v1641_v2, %v1644_v7  ;;  %v376_v32 = vor.u32 %v375_v13, %v372_v11  ;;  %v385_v33 = vrot.slane %v383_v17, 4  ;;  %v169_v2 = vld [vmem:[%s6990_s5 + $0x68] sm:$0x1]  ;;  %v7257_v17 = vld [vmem:[%s6990_s5 + $0x6c] sm:$0xf] }
  0x4a   : > { %v391_v35 = vrot.slane %v389_v24, 5  ;;  %v5156_v37 = vrot.slane %v7199_v40, 9  ;;  %v1647_v39 = vrot.slane %v7207_v45, 5  ;;  %v1650_v41 = vrot.slane %v166_v10, 5 }
  0x4b   : > { %8964 = vst [vmem:[#allocation12_spill] sm:$0xff] %v7232_v27  ;;  %8965 = vst [vmem:[#allocation13_spill] sm:$0xff] %v7234_v31  ;;  %5977 = vmatprep.mubr.msk.bf16.mxu1 %vm635_vm3, %v7234_v31  ;;  %v377_v43 = vrot.slane %v376_v32, 4  ;;  %v386_v44 = vor.u32 %v385_v33, %v381_v21  ;;  %5841 = vmatprep.mubr.msk.bf16.mxu0 %vm635_vm3, %v7232_v27  ;;  %v394_v52 = vshrl.u32 %v7230_v26, 16  ;;  %v397_v54 = vshll.u32 %v7230_v26, 16 }
  0x4c   : > { %v1648_v56 = vsel %vm6992_vm4, %v5156_v37, %v1647_v39  ;;  %v1649_v57 = vrot.slane %v1647_v39, 4  ;;  %v403_v58 = vshll.u32 %v7237_v34, 16  ;;  %v407_v59 = vshrl.u32 %v7237_v34, 16  ;;  %v7265_v32 = vld [vmem:[%s6990_s5 + $0x70] sm:$0xf] }
  0x4d   : > { %v382_v63 = vsel %vm7044_vm7, %v377_v43, %v381_v21  ;;  %v387_v0 = vrot.slane %v386_v44, 4  ;;  %v396_v3 = vrot.slane %v394_v52, 4  ;;  %v399_v4 = vrot.slane %v397_v54, 5 }
  0x4e   : > { %v1651_v5 = vsel %vm6992_vm4, %v1649_v57, %v1650_v41  ;;  %v405_v10 = vrot.slane %v403_v58, 5  ;;  %v409_v11 = vrot.slane %v407_v59, 4  ;;  %v413_v13 = vshll.u32 %v169_v2, 16 }
  0x4f   : > { %v392_v19 = vsel %vm7044_vm7, %v387_v0, %v391_v35  ;;  %v7261_v7 = vcombine.low %v1648_v56, %v1651_v5  ;;  %v400_v24 = vor.u32 %v399_v4, %v396_v3  ;;  %v5157_v21 = vrot.slane %v7230_v26, 9 }
  0x50   : > { %v7267_v33 = vcombine.low %v382_v63, %v392_v19  ;;  %v410_v37 = vor.u32 %v409_v11, %v405_v10  ;;  %v415_v39 = vrot.slane %v413_v13, 5  ;;  %v1654_v41 = vrot.slane %v7237_v34, 5  ;;  %v172_v63 = vld [vmem:[%s6990_s5 + $0x74] sm:$0x1]  ;;  %v7288_v19 = vld [vmem:[%s6990_s5 + $0x78] sm:$0xf] }
  0x51   : > { %8966 = vst [vmem:[#allocation14_spill] sm:$0xff] %v7261_v7  ;;  %5978 = vmatmul.mubr.msk.bf16.gmra.mrb[12].mxu1 %vm635_vm3, %v7261_v7  ;;  %v401_v43 = vrot.slane %v400_v24, 4  ;;  %v1657_v44 = vrot.slane %v169_v2, 5  ;;  %v418_v35 = vshrl.u32 %v7257_v17, 16  ;;  %v421_v52 = vshll.u32 %v7257_v17, 16 }
  0x52   : > { %8967 = vst [vmem:[#allocation15_spill] sm:$0xff] %v7267_v33  ;;  %5842 = vmatmul.mubr.msk.bf16.gmra.mrb[12].mxu0 %vm635_vm3, %v7267_v33  ;;  %v411_v54 = vrot.slane %v410_v37, 4  ;;  %v1655_v56 = vsel %vm6992_vm4, %v5157_v21, %v1654_v41  ;;  %v1656_v57 = vrot.slane %v1654_v41, 4  ;;  %v427_v58 = vshll.u32 %v7265_v32, 16  ;;  %v7295_v41 = vld [vmem:[%s6990_s5 + $0x7c] sm:$0xf] }
  0x53   : > { %v406_v59 = vsel %vm7044_vm7, %v401_v43, %v405_v10  ;;  %v420_v0 = vrot.slane %v418_v35, 4  ;;  %v423_v2 = vrot.slane %v421_v52, 5  ;;  %v431_v3 = vshrl.u32 %v7265_v32, 16 }
  0x54   : > { %v416_v4 = vsel %vm7044_vm7, %v411_v54, %v415_v39  ;;  %v1658_v5 = vsel %vm6992_vm4, %v1656_v57, %v1657_v44  ;;  %v429_v11 = vrot.slane %v427_v58, 5  ;;  %v437_v13 = vshll.u32 %v172_v63, 16 }
  0x55   : > { %v7290_v24 = vcombine.low %v406_v59, %v416_v4  ;;  %v7292_v21 = vcombine.low %v1655_v56, %v1658_v5  ;;  %v424_v10 = vor.u32 %v423_v2, %v420_v0  ;;  %v433_v37 = vrot.slane %v431_v3, 4  ;;  %v175_v4 = vld [vmem:[%s6990_s5 + $0x80] sm:$0x1] }
  0x56   : > { %v439_v43 = vrot.slane %v437_v13, 5  ;;  %v5158_v35 = vrot.slane %v7257_v17, 9  ;;  %v1661_v39 = vrot.slane %v7265_v32, 5  ;;  %v1664_v52 = vrot.slane %v172_v63, 5 }
  0x57   : > { %8968 = vst [vmem:[#allocation16_spill] sm:$0xff] %v7290_v24  ;;  %8969 = vst [vmem:[#allocation17_spill] sm:$0xff] %v7292_v21  ;;  %5981 = vmatprep.mubr.msk.bf16.mxu1 %vm635_vm3, %v7292_v21  ;;  %v425_v44 = vrot.slane %v424_v10, 4  ;;  %v434_v54 = vor.u32 %v433_v37, %v429_v11  ;;  %5845 = vmatprep.mubr.msk.bf16.mxu0 %vm635_vm3, %v7290_v24  ;;  %v442_v56 = vshrl.u32 %v7288_v19, 16  ;;  %v445_v57 = vshll.u32 %v7288_v19, 16 }
  0x58   : > { %v1662_v58 = vsel %vm6992_vm4, %v5158_v35, %v1661_v39  ;;  %v1663_v59 = vrot.slane %v1661_v39, 4  ;;  %v451_v0 = vshll.u32 %v7295_v41, 16  ;;  %v455_v63 = vshrl.u32 %v7295_v41, 16  ;;  %v7315_v35 = vld [vmem:[%s6990_s5 + $0x84] sm:$0xf] }
  0x59   : > { %v430_v2 = vsel %vm7044_vm7, %v425_v44, %v429_v11  ;;  %v435_v3 = vrot.slane %v434_v54, 4  ;;  %v444_v5 = vrot.slane %v442_v56, 4  ;;  %v447_v13 = vrot.slane %v445_v57, 5  ;;  %v7323_v44 = vld [vmem:[%s6990_s5 + $0x88] sm:$0xf] }
  0x5a   : > { %v1665_v10 = vsel %vm6992_vm4, %v1663_v59, %v1664_v52  ;;  %v453_v37 = vrot.slane %v451_v0, 5  ;;  %v457_v20 = vrot.slane %v455_v63, 4  ;;  %v461_v21 = vshll.u32 %v175_v4, 16 }
  0x5b   : > { %v440_v39 = vsel %vm7044_vm7, %v435_v3, %v439_v43  ;;  %v7319_v7 = vcombine.low %v1662_v58, %v1665_v10  ;;  %v448_v31 = vor.u32 %v447_v13, %v444_v5  ;;  %v5159_v11 = vrot.slane %v7288_v19, 9  ;;  %v178_v3 = vld [vmem:[%s6990_s5 + $0x8c] sm:$0x1] }
  0x5c   : > { %v7325_v54 = vcombine.low %v430_v2, %v440_v39  ;;  %v458_v56 = vor.u32 %v457_v20, %v453_v37  ;;  %v463_v52 = vrot.slane %v461_v21, 5  ;;  %v1668_v57 = vrot.slane %v7295_v41, 5 }
  0x5d   : > { %8970 = vst [vmem:[#allocation18_spill] sm:$0xff] %v7319_v7  ;;  %5982 = vmatmul.mubr.msk.bf16.gmra.mrb[16].mxu1 %vm635_vm3, %v7319_v7  ;;  %v449_v59 = vrot.slane %v448_v31, 4  ;;  %v1671_v0 = vrot.slane %v175_v4, 5  ;;  %v466_v43 = vshrl.u32 %v7315_v35, 16  ;;  %v469_v58 = vshll.u32 %v7315_v35, 16 }
  0x5e   : > { %8971 = vst [vmem:[#allocation19_spill] sm:$0xff] %v7325_v54  ;;  %5846 = vmatmul.mubr.msk.bf16.gmra.mrb[16].mxu0 %vm635_vm3, %v7325_v54  ;;  %v459_v63 = vrot.slane %v458_v56, 4  ;;  %v1669_v20 = vsel %vm6992_vm4, %v5159_v11, %v1668_v57  ;;  %v1670_v21 = vrot.slane %v1668_v57, 4  ;;  %v475_v2 = vshll.u32 %v7323_v44, 16  ;;  %v7346_v57 = vld [vmem:[%s6990_s5 + $0x90] sm:$0xf] }
  0x5f   : > { %v454_v31 = vsel %vm7044_vm7, %v449_v59, %v453_v37  ;;  %v468_v4 = vrot.slane %v466_v43, 4  ;;  %v471_v5 = vrot.slane %v469_v58, 5  ;;  %v479_v13 = vshrl.u32 %v7323_v44, 16  ;;  %v7353_v43 = vld [vmem:[%s6990_s5 + $0x94] sm:$0xf] }
  0x60   : > { %v464_v10 = vsel %vm7044_vm7, %v459_v63, %v463_v52  ;;  %v1672_v39 = vsel %vm6992_vm4, %v1670_v21, %v1671_v0  ;;  %v477_v56 = vrot.slane %v475_v2, 5  ;;  %v485_v11 = vshll.u32 %v178_v3, 16 }
  0x61   : > { %v7348_v7 = vcombine.low %v454_v31, %v464_v10  ;;  %v7350_v42 = vcombine.low %v1669_v20, %v1672_v39  ;;  %v472_v37 = vor.u32 %v471_v5, %v468_v4  ;;  %v481_v59 = vrot.slane %v479_v13, 4  ;;  %v181_v39 = vld [vmem:[%s6990_s5 + $0x98] sm:$0x1] }
  0x62   : > { %v487_v58 = vrot.slane %v485_v11, 5  ;;  %v5160_v15 = vrot.slane %v7315_v35, 9  ;;  %v1675_v52 = vrot.slane %v7323_v44, 5  ;;  %v1678_v63 = vrot.slane %v178_v3, 5 }
  0x63   : > { %8972 = vst [vmem:[#allocation20_spill] sm:$0xff] %v7348_v7  ;;  %8973 = vst [vmem:[#allocation21_spill] sm:$0xff] %v7350_v42  ;;  %5985 = vmatprep.mubr.msk.bf16.mxu1 %vm635_vm3, %v7350_v42  ;;  %v473_v0 = vrot.slane %v472_v37, 4  ;;  %v482_v21 = vor.u32 %v481_v59, %v477_v56  ;;  %5849 = vmatprep.mubr.msk.bf16.mxu0 %vm635_vm3, %v7348_v7  ;;  %v490_v20 = vshrl.u32 %v7346_v57, 16  ;;  %v493_v2 = vshll.u32 %v7346_v57, 16 }
  0x64   : > { %v1676_v31 = vsel %vm6992_vm4, %v5160_v15, %v1675_v52  ;;  %v1677_v4 = vrot.slane %v1675_v52, 4  ;;  %v499_v5 = vshll.u32 %v7353_v43, 16  ;;  %v503_v3 = vshrl.u32 %v7353_v43, 16  ;;  %v7373_v15 = vld [vmem:[%s6990_s5 + $0x9c] sm:$0xf] }
  0x65   : > { %v478_v13 = vsel %vm7044_vm7, %v473_v0, %v477_v56  ;;  %v483_v10 = vrot.slane %v482_v21, 4  ;;  %v492_v11 = vrot.slane %v490_v20, 4  ;;  %v495_v37 = vrot.slane %v493_v2, 5  ;;  %v7381_v0 = vld [vmem:[%s6990_s5 + $0xa0] sm:$0xf] }
  0x66   : > { %v1679_v59 = vsel %vm6992_vm4, %v1677_v4, %v1678_v63  ;;  %v501_v42 = vrot.slane %v499_v5, 5  ;;  %v505_v25 = vrot.slane %v503_v3, 4  ;;  %v509_v50 = vshll.u32 %v181_v39, 16 }
  0x67   : > { %v488_v52 = vsel %vm7044_vm7, %v483_v10, %v487_v58  ;;  %v7377_v53 = vcombine.low %v1676_v31, %v1679_v59  ;;  %v496_v7 = vor.u32 %v495_v37, %v492_v11  ;;  %v5161_v56 = vrot.slane %v7346_v57, 9  ;;  %v184_v10 = vld [vmem:[%s6990_s5 + $0xa4] sm:$0x1] }
  0x68   : > { %v7383_v21 = vcombine.low %v478_v13, %v488_v52  ;;  %v506_v20 = vor.u32 %v505_v25, %v501_v42  ;;  %v511_v63 = vrot.slane %v509_v50, 5  ;;  %v1682_v2 = vrot.slane %v7353_v43, 5 }
  0x69   : > { %8974 = vst [vmem:[#allocation22_spill] sm:$0xff] %v7377_v53  ;;  %5986 = vmatmul.mubr.msk.bf16.gmra.mrb[20].mxu1 %vm635_vm3, %v7377_v53  ;;  %v497_v4 = vrot.slane %v496_v7, 4  ;;  %v1685_v5 = vrot.slane %v181_v39, 5  ;;  %v514_v58 = vshrl.u32 %v7373_v15, 16  ;;  %v517_v31 = vshll.u32 %v7373_v15, 16 }
  0x6a   : > { %8975 = vst [vmem:[#allocation23_spill] sm:$0xff] %v7383_v21  ;;  %5850 = vmatmul.mubr.msk.bf16.gmra.mrb[20].mxu0 %vm635_vm3, %v7383_v21  ;;  %v507_v3 = vrot.slane %v506_v20, 4  ;;  %v1683_v25 = vsel %vm6992_vm4, %v5161_v56, %v1682_v2  ;;  %v1684_v50 = vrot.slane %v1682_v2, 4  ;;  %v523_v13 = vshll.u32 %v7381_v0, 16  ;;  %v7404_v2 = vld [vmem:[%s6990_s5 + $0xa8] sm:$0xf] }
  0x6b   : > { %v502_v7 = vsel %vm7044_vm7, %v497_v4, %v501_v42  ;;  %v516_v39 = vrot.slane %v514_v58, 4  ;;  %v519_v11 = vrot.slane %v517_v31, 5  ;;  %v527_v37 = vshrl.u32 %v7381_v0, 16  ;;  %v7411_v58 = vld [vmem:[%s6990_s5 + $0xac] sm:$0xf] }
  0x6c   : > { %v512_v59 = vsel %vm7044_vm7, %v507_v3, %v511_v63  ;;  %v1686_v52 = vsel %vm6992_vm4, %v1684_v50, %v1685_v5  ;;  %v525_v20 = vrot.slane %v523_v13, 5  ;;  %v533_v56 = vshll.u32 %v184_v10, 16 }
  0x6d   : > { %v7406_v53 = vcombine.low %v502_v7, %v512_v59  ;;  %v7408_v21 = vcombine.low %v1683_v25, %v1686_v52  ;;  %v520_v42 = vor.u32 %v519_v11, %v516_v39  ;;  %v529_v4 = vrot.slane %v527_v37, 4  ;;  %v187_v52 = vld [vmem:[%s6990_s5 + $0xb0] sm:$0x1] }
  0x6e   : > { %v535_v31 = vrot.slane %v533_v56, 5  ;;  %v5162_v54 = vrot.slane %v7373_v15, 9  ;;  %v1689_v63 = vrot.slane %v7381_v0, 5  ;;  %v1692_v3 = vrot.slane %v184_v10, 5 }
  0x6f   : > { %8976 = vst [vmem:[#allocation24_spill] sm:$0xff] %v7406_v53  ;;  %8977 = vst [vmem:[#allocation25_spill] sm:$0xff] %v7408_v21  ;;  %5989 = vmatprep.mubr.msk.bf16.mxu1 %vm635_vm3, %v7408_v21  ;;  %v521_v5 = vrot.slane %v520_v42, 4  ;;  %v530_v50 = vor.u32 %v529_v4, %v525_v20  ;;  %5853 = vmatprep.mubr.msk.bf16.mxu0 %vm635_vm3, %v7406_v53  ;;  %v538_v25 = vshrl.u32 %v7404_v2, 16  ;;  %v541_v13 = vshll.u32 %v7404_v2, 16 }
  0x70   : > { %v1690_v7 = vsel %vm6992_vm4, %v5162_v54, %v1689_v63  ;;  %v1691_v39 = vrot.slane %v1689_v63, 4  ;;  %v547_v11 = vshll.u32 %v7411_v58, 16  ;;  %v551_v10 = vshrl.u32 %v7411_v58, 16  ;;  %v188_v54 = vld [vmem:[%s6990_s5 + $0xb4] sm:$0xf] }
  0x71   : > { %v526_v37 = vsel %vm7044_vm7, %v521_v5, %v525_v20  ;;  %v531_v59 = vrot.slane %v530_v50, 4  ;;  %v540_v56 = vrot.slane %v538_v25, 4  ;;  %v543_v42 = vrot.slane %v541_v13, 5  ;;  %v189_v20 = vld [vmem:[%s6990_s5 + $0xb8] sm:$0xf] }
  0x72   : > { %v1693_v4 = vsel %vm6992_vm4, %v1691_v39, %v1692_v3  ;;  %v549_v21 = vrot.slane %v547_v11, 5  ;;  %v553_v53 = vrot.slane %v551_v10, 4  ;;  %v557_v24 = vshll.u32 %v187_v52, 16 }
  0x73   : > { %v536_v63 = vsel %vm7044_vm7, %v531_v59, %v535_v31  ;;  %v7433_v33 = vcombine.low %v1690_v7, %v1693_v4  ;;  %v544_v27 = vor.u32 %v543_v42, %v540_v56  ;;  %v5163_v46 = vrot.slane %v7404_v2, 9 }
  0x74   : > { %v7437_v5 = vcombine.low %v526_v37, %v536_v63  ;;  %v554_v50 = vor.u32 %v553_v53, %v549_v21  ;;  %v559_v25 = vrot.slane %v557_v24, 5  ;;  %v1696_v3 = vrot.slane %v7411_v58, 5  ;;  %v190_v24 = vld [vmem:[%s6990_s5 + $0xbc] sm:$0x1] }
  0x75   : > { %8978 = vst [vmem:[#allocation26_spill] sm:$0xff] %v7433_v33  ;;  %5990 = vmatmul.mubr.msk.bf16.gmra.mrb[24].mxu1 %vm635_vm3, %v7433_v33  ;;  %v545_v13 = vrot.slane %v544_v27, 4  ;;  %v1699_v39 = vrot.slane %v187_v52, 5  ;;  %v562_v11 = vshrl.u32 %v188_v54, 16  ;;  %v565_v31 = vshll.u32 %v188_v54, 16 }
  0x76   : > { %8979 = vst [vmem:[#allocation27_spill] sm:$0xff] %v7437_v5  ;;  %5854 = vmatmul.mubr.msk.bf16.gmra.mrb[24].mxu0 %vm635_vm3, %v7437_v5  ;;  %v555_v7 = vrot.slane %v554_v50, 4  ;;  %v1697_v10 = vsel %vm6992_vm4, %v5163_v46, %v1696_v3  ;;  %v1698_v37 = vrot.slane %v1696_v3, 4  ;;  %v571_v59 = vshll.u32 %v189_v20, 16 }
  0x77   : > { %v550_v53 = vsel %vm7044_vm7, %v545_v13, %v549_v21  ;;  %v564_v56 = vrot.slane %v562_v11, 4  ;;  %v567_v42 = vrot.slane %v565_v31, 5  ;;  %v575_v4 = vshrl.u32 %v189_v20, 16 }
  0x78   : > { %v560_v27 = vsel %vm7044_vm7, %v555_v7, %v559_v25  ;;  %v1700_v52 = vsel %vm6992_vm4, %v1698_v37, %v1699_v39  ;;  %v573_v63 = vrot.slane %v571_v59, 5  ;;  %v581_v50 = vshll.u32 %v190_v24, 16 }
  0x79   : > { %v7453_v33 = vcombine.low %v550_v53, %v560_v27  ;;  %v7455_v46 = vcombine.low %v1697_v10, %v1700_v52  ;;  %v568_v3 = vor.u32 %v567_v42, %v564_v56  ;;  %v577_v5 = vrot.slane %v575_v4, 4 }
  0x7a   : > { %v5164_v22 = vrot.slane %v188_v54, 9  ;;  %v1703_v21 = vrot.slane %v189_v20, 5  ;;  %v1706_v13 = vrot.slane %v190_v24, 5  ;;  %v583_v25 = vrot.slane %v581_v50, 5 }
  0x7b   : > { %5993 = vmatprep.mubr.msk.bf16.mxu1 %vm635_vm3, %v7455_v46  ;;  %v569_v11 = vrot.slane %v568_v3, 4  ;;  %v578_v31 = vor.u32 %v577_v5, %v573_v63  ;;  %5857 = vmatprep.mubr.msk.bf16.mxu0 %vm635_vm3, %v7453_v33  ;;  %v7467_v59 = vcombine.low %v7172_v60, %v7179_v1  ;;  %v7473_v5 = vcombine.low %v7199_v40, %v7207_v45  ;;  %v5321_v3 = vld [vmem:[%s8904_s1 + $0x1a] sm:$0x3] }
  0x7c   : > { %v1704_v39 = vsel %vm6992_vm4, %v5164_v22, %v1703_v21  ;;  %v1705_v7 = vrot.slane %v1703_v21, 4  ;;  %v7477_v24 = vcombine.low %v7230_v26, %v7237_v34  ;;  %v7481_v22 = vcombine.low %v7257_v17, %v7265_v32  ;;  %v5251_v21 = vld [vmem:[%s8904_s1 + $0x12] sm:$0x3] }
  0x7d   : > { %v574_v10 = vsel %vm7044_vm7, %v569_v11, %v573_v63  ;;  %v579_v37 = vrot.slane %v578_v31, 4  ;;  %v7489_v1 = vcombine.low %v7288_v19, %v7295_v41  ;;  %v7493_v40 = vcombine.low %v7315_v35, %v7323_v44 }
  0x7e   : > { %v1707_v53 = vsel %vm6992_vm4, %v1705_v7, %v1706_v13  ;;  %v7499_v26 = vcombine.low %v7346_v57, %v7353_v43  ;;  %v7503_v34 = vcombine.low %v7373_v15, %v7381_v0  ;;  %v7507_v17 = vcombine.low %v7404_v2, %v7411_v58  ;;  %v8990_v43 = vld [vmem:[#allocation27_spill] sm:$0xff]  ;;  %v7604_v15 = vld [vmem:[%s6990_s5 + $0xc0] sm:$0xf]  ;;  %v7607_v0 = vld [vmem:[%s6990_s5 + $0xc4] sm:$0xf] }
  0x7f   : > { %v584_v56 = vsel %vm7044_vm7, %v579_v37, %v583_v25  ;;  %v7485_v60 = vcombine.low %v1704_v39, %v1707_v53  ;;  %v7511_v32 = vcombine.low %v188_v54, %v189_v20  ;;  %v8980_v19 = vcombine.low %v7000_v8, %v7003_v9  ;;  %v5232_v8 = vld [vmem:[%s8904_s1 + $0xe] sm:$0x3]  ;;  %v5130_v9 = vld [vmem:[%s8904_s1 + $0x6] sm:$0x3]  ;;  %v193_v2 = vld [vmem:[%s6990_s5 + $0xc8] sm:$0x1] }
  0x80   : > { %v7495_v45 = vcombine.low %v574_v10, %v584_v56  ;;  %v7523_v41 = vcombine.low %v7009_v14, %v7015_v16  ;;  %v2137_v35 = vsel %vm684_vm0, %v7058_v61, 0  ;;  %v1152_v44 = vsel %vm684_vm0, %v7096_v36, 0  ;;  %v8982_v61 = vld [vmem:[#allocation11_spill] sm:$0xff] }
  0x81   : > { %5994 = vmatmul.mubr.msk.bf16.gmra.mrb[28].mxu1 %vm635_vm3, %v7485_v60  ;;  %v7531_v57 = vcombine.low %v7032_v38, %v7049_v51  ;;  %v7551_v14 = vcombine.low %v7073_v18, %v7081_v23  ;;  %v7555_v16 = vcombine.low %v7111_v47, %v7119_v55  ;;  %v8981_v38 = vld [vmem:[#allocation7_spill] sm:$0xff]  ;;  %v8983_v18 = vld [vmem:[#allocation12_spill] sm:$0xff]  ;;  %v5231_v58 = vrot.slane %v7604_v15, 9 }
  0x82   : > { %5858 = vmatmul.mubr.msk.bf16.gmra.mrb[28].mxu0 %vm635_vm3, %v7495_v45  ;;  %5999 = vmatprep.mubr.msk.bf16.mxu1 %vm635_vm3, %v7086_v28  ;;  %v7567_v51 = vcombine.low %v8981_v38, %v7149_v29  ;;  %v8984_v23 = vld [vmem:[#allocation15_spill] sm:$0xff]  ;;  %v8985_v28 = vld [vmem:[#allocation16_spill] sm:$0xff]  ;;  %v2335_v54 = vrot.slane %v7607_v0, 5  ;;  %v2338_v20 = vrot.slane %v193_v2, 5  ;;  %v2349_v63 = vsel %vm684_vm0, %v5232_v8, 0 }
  0x83   : > { %5863 = vmatprep.mubr.msk.bf16.mxu0 %vm635_vm3, %v8980_v19  ;;  %v8986_v36 = vld [vmem:[#allocation19_spill] sm:$0xff]  ;;  %v8987_v47 = vld [vmem:[#allocation20_spill] sm:$0xff]  ;;  %v1380_v50 = vsel %vm684_vm0, %v5130_v9, 0  ;;  %v1348_v13 = vshrl.u32 %v7604_v15, 16  ;;  %v1351_v11 = vshll.u32 %v7604_v15, 16  ;;  %v1357_v31 = vshll.u32 %v7607_v0, 16 }
  0x84   : > { %v8988_v55 = vld [vmem:[#allocation23_spill] sm:$0xff]  ;;  %v8989_v29 = vld [vmem:[#allocation24_spill] sm:$0xff]  ;;  %v2336_v42 = vsel %vm6992_vm4, %v5231_v58, %v2335_v54  ;;  %v2337_v4 = vrot.slane %v2335_v54, 4  ;;  %v1361_v25 = vshrl.u32 %v7607_v0, 16  ;;  %v1367_v19 = vshll.u32 %v193_v2, 16  ;;  %v8991_v54 = vld [vmem:[#allocation5_spill] sm:$0xff] }
  0x85   : > { %v1350_v39 = vrot.slane %v1348_v13, 4  ;;  %v1353_v7 = vrot.slane %v1351_v11, 5  ;;  %v1359_v10 = vrot.slane %v1357_v31, 5  ;;  %v7710_v58 = vcombine.low %v7604_v15, %v7607_v0  ;;  %v5320_v15 = vld [vmem:[%s8904_s1 + $0x18] sm:$0x3]  ;;  %v8998_v13 = vld [vmem:[#allocation17_spill] sm:$0xff] }
  0x86   : > { %v2339_v27 = vsel %vm6992_vm4, %v2337_v4, %v2338_v20  ;;  %v1363_v37 = vrot.slane %v1361_v25, 4  ;;  %v3315_v20 = vsel %vm684_vm0, %v5321_v3, 0  ;;  %v8992_v4 = vld [vmem:[#allocation6_spill] sm:$0xff]  ;;  %v5250_v0 = vld [vmem:[%s8904_s1 + $0x10] sm:$0x3]  ;;  %v9000_v31 = vld [vmem:[#allocation21_spill] sm:$0xff] }
  0x87   : > { %v7622_v52 = vcombine.low %v2336_v42, %v2339_v27  ;;  %v1354_v53 = vor.u32 %v1353_v7, %v1350_v39  ;;  %v2549_v42 = vsel %vm684_vm0, %v5251_v21, 0  ;;  %v8993_v27 = vld [vmem:[#allocation8_spill] sm:$0xff]  ;;  %v8999_v11 = vld [vmem:[#allocation18_spill] sm:$0xff]  ;;  %v9002_v39 = vld [vmem:[#allocation25_spill] sm:$0xff] }
  0x88   : > { %v1364_v56 = vor.u32 %v1363_v37, %v1359_v10  ;;  %v9001_v25 = vld [vmem:[#allocation22_spill] sm:$0xff]  ;;  %v2713_v37 = vsel %vm684_vm0, %v5250_v0, 0 }
  0x89   : > { %6000 = vmatmul.mubr.msk.bf16.vlgmr.msra.gmra.mrb[0].mxu1 %vm635_vm3, %v7070_v12  ;;  %v9003_v7 = vld [vmem:[#allocation26_spill] sm:$0xff] }
  0x8a   : > { %6032 = vmatpush3.bf16.msra.mxu1 %v2137_v35  ;;  %5864 = vmatmul.mubr.msk.bf16.vlgmr.msra.gmra.mrb[0].mxu0 %vm635_vm3, %v7523_v41  ;;  %v1355_v35 = vrot.slane %v1354_v53, 4  ;;  %v5354_v53 = vld [vmem:[%s8904_s1 + $0x1c] sm:$0x3] }
  0x8b   : > { %6003 = vmatprep.mubr.msk.bf16.mxu1 %vm635_vm3, %v7113_v49  ;;  %5896 = vmatpush3.bf16.msra.mxu0 %v1152_v44  ;;  %v1365_v44 = vrot.slane %v1364_v56, 4  ;;  %v5284_v56 = vld [vmem:[%s8904_s1 + $0x14] sm:$0x3] }
  0x8c   : > { %5867 = vmatprep.mubr.msk.bf16.mxu0 %vm635_vm3, %v7531_v57  ;;  %6762 = vmatprep.subr.msk.bf16.mxu1 %vm684_vm0, %v5232_v8  ;;  %v1369_v8 = vrot.slane %v1367_v19, 5  ;;  %v3645_v19 = vsel %vm684_vm0, %v5354_v53, 0 }
  0x8d   : > { %6758 = vmatprep.subr.msk.bf16.mxu0 %vm684_vm0, %v5130_v9  ;;  %v1360_v9 = vsel %vm7044_vm7, %v1355_v35, %v1359_v10  ;;  %v3479_v10 = vsel %vm684_vm0, %v5320_v15, 0  ;;  %v2887_v35 = vsel %vm684_vm0, %v5284_v56, 0 }
  0x8e   : > { %v1370_v38 = vsel %vm7044_vm7, %v1365_v44, %v1369_v8  ;;  %v5372_v44 = vld [vmem:[%s8904_s1 + $0x1e] sm:$0x3] }
  0x8f   : > { %v7706_v2 = vcombine.low %v1360_v9, %v1370_v38 }
  0x91   : > { %6004 = vmatmul.mubr.msk.bf16.gmra.mrb[4].mxu1 %vm635_vm3, %v7151_v30 }
  0x92   : > { %5868 = vmatmul.mubr.msk.bf16.gmra.mrb[4].mxu0 %vm635_vm3, %v7551_v14  ;;  %6007 = vmatprep.mubr.msk.bf16.mxu1 %vm635_vm3, %v7174_v62 }
  0x93   : > { %5871 = vmatprep.mubr.msk.bf16.mxu0 %vm635_vm3, %v7555_v16 }
  0x99   : > { %6008 = vmatmul.mubr.msk.bf16.gmra.mrb[8].mxu1 %vm635_vm3, %v8982_v61 }
  0x9a   : > { %5872 = vmatmul.mubr.msk.bf16.gmra.mrb[8].mxu0 %vm635_vm3, %v7567_v51  ;;  %6011 = vmatprep.mubr.msk.bf16.mxu1 %vm635_vm3, %v8983_v18 }
  0x9b   : > { %5875 = vmatprep.mubr.msk.bf16.mxu0 %vm635_vm3, %v7467_v59 }
  0xa1   : > { %6012 = vmatmul.mubr.msk.bf16.gmra.mrb[12].mxu1 %vm635_vm3, %v8984_v23 }
  0xa2   : > { %5876 = vmatmul.mubr.msk.bf16.gmra.mrb[12].mxu0 %vm635_vm3, %v7473_v5  ;;  %6015 = vmatprep.mubr.msk.bf16.mxu1 %vm635_vm3, %v8985_v28 }
  0xa3   : > { %5879 = vmatprep.mubr.msk.bf16.mxu0 %vm635_vm3, %v7477_v24 }
  0xa9   : > { %6016 = vmatmul.mubr.msk.bf16.gmra.mrb[16].mxu1 %vm635_vm3, %v8986_v36 }
  0xaa   : > { %5880 = vmatmul.mubr.msk.bf16.gmra.mrb[16].mxu0 %vm635_vm3, %v7481_v22  ;;  %6019 = vmatprep.mubr.msk.bf16.mxu1 %vm635_vm3, %v8987_v47 }
  0xab   : > { %5883 = vmatprep.mubr.msk.bf16.mxu0 %vm635_vm3, %v7489_v1 }
  0xb1   : > { %6020 = vmatmul.mubr.msk.bf16.gmra.mrb[20].mxu1 %vm635_vm3, %v8988_v55 }
  0xb2   : > { %5884 = vmatmul.mubr.msk.bf16.gmra.mrb[20].mxu0 %vm635_vm3, %v7493_v40  ;;  %6023 = vmatprep.mubr.msk.bf16.mxu1 %vm635_vm3, %v8989_v29 }
  0xb3   : > { %5887 = vmatprep.mubr.msk.bf16.mxu0 %vm635_vm3, %v7499_v26 }
  0xb9   : > { %6024 = vmatmul.mubr.msk.bf16.gmra.mrb[24].mxu1 %vm635_vm3, %v8990_v43 }
  0xba   : > { %5888 = vmatmul.mubr.msk.bf16.gmra.mrb[24].mxu0 %vm635_vm3, %v7503_v34  ;;  %6027 = vmatprep.mubr.msk.bf16.mxu1 %vm635_vm3, %v7453_v33 }
  0xbb   : > { %5891 = vmatprep.mubr.msk.bf16.mxu0 %vm635_vm3, %v7507_v17 }
  0xc1   : > { %6028 = vmatmul.mubr.msk.bf16.gmra.mrb[28].mxu1 %vm635_vm3, %v7495_v45 }
  0xc2   : > { %5892 = vmatmul.mubr.msk.bf16.gmra.mrb[28].mxu0 %vm635_vm3, %v7511_v32  ;;  %6033 = vmatprep.mubr.msk.bf16.mxu1 %vm635_vm3, %v7070_v12 }
  0xc3   : > { %5897 = vmatprep.mubr.msk.bf16.mxu0 %vm635_vm3, %v7523_v41 }
  0xc9   : > { %6034 = vmatmul.mubr.msk.bf16.vlgmr.msra.gmra.mrb[0].mxu1 %vm635_vm3, %v7113_v49 }
  0xca   : > { %6066 = vmatpush3.bf16.msra.mxu1 %v2349_v63  ;;  %5898 = vmatmul.mubr.msk.bf16.vlgmr.msra.gmra.mrb[0].mxu0 %vm635_vm3, %v7531_v57  ;;  %v8994_v63 = vld [vmem:[#allocation9_spill] sm:$0xff] }
  0xcb   : > { %6037 = vmatprep.mubr.msk.bf16.mxu1 %vm635_vm3, %v7151_v30  ;;  %5930 = vmatpush3.bf16.msra.mxu0 %v1380_v50  ;;  %v8995_v50 = vld [vmem:[#allocation10_spill] sm:$0xff] }
  0xcc   : > { %5901 = vmatprep.mubr.msk.bf16.mxu0 %vm635_vm3, %v7551_v14  ;;  %6767 = vmatprep.subr.msk.bf16.mxu1 %vm684_vm0, %v5321_v3  ;;  %v8996_v3 = vld [vmem:[#allocation13_spill] sm:$0xff] }
  0xcd   : > { %6763 = vmatprep.subr.msk.bf16.mxu0 %vm684_vm0, %v5251_v21  ;;  %v8997_v21 = vld [vmem:[#allocation14_spill] sm:$0xff] }
  0xd1   : > { %6038 = vmatmul.mubr.msk.bf16.gmra.mrb[4].mxu1 %vm635_vm3, %v7174_v62 }
  0xd2   : > { %5902 = vmatmul.mubr.msk.bf16.gmra.mrb[4].mxu0 %vm635_vm3, %v7555_v16  ;;  %6041 = vmatprep.mubr.msk.bf16.mxu1 %vm635_vm3, %v8982_v61 }
  0xd3   : > { %5905 = vmatprep.mubr.msk.bf16.mxu0 %vm635_vm3, %v7567_v51 }
  0xd9   : > { %6042 = vmatmul.mubr.msk.bf16.gmra.mrb[8].mxu1 %vm635_vm3, %v8983_v18 }
  0xda   : > { %5906 = vmatmul.mubr.msk.bf16.gmra.mrb[8].mxu0 %vm635_vm3, %v7467_v59  ;;  %6045 = vmatprep.mubr.msk.bf16.mxu1 %vm635_vm3, %v8984_v23 }
  0xdb   : > { %5909 = vmatprep.mubr.msk.bf16.mxu0 %vm635_vm3, %v7473_v5 }
  0xe1   : > { %6046 = vmatmul.mubr.msk.bf16.gmra.mrb[12].mxu1 %vm635_vm3, %v8985_v28 }
  0xe2   : > { %5910 = vmatmul.mubr.msk.bf16.gmra.mrb[12].mxu0 %vm635_vm3, %v7477_v24  ;;  %6049 = vmatprep.mubr.msk.bf16.mxu1 %vm635_vm3, %v8986_v36 }
  0xe3   : > { %5913 = vmatprep.mubr.msk.bf16.mxu0 %vm635_vm3, %v7481_v22 }
  0xe9   : > { %6050 = vmatmul.mubr.msk.bf16.gmra.mrb[16].mxu1 %vm635_vm3, %v8987_v47 }
  0xea   : > { %5914 = vmatmul.mubr.msk.bf16.gmra.mrb[16].mxu0 %vm635_vm3, %v7489_v1  ;;  %6053 = vmatprep.mubr.msk.bf16.mxu1 %vm635_vm3, %v8988_v55 }
  0xeb   : > { %5917 = vmatprep.mubr.msk.bf16.mxu0 %vm635_vm3, %v7493_v40 }
  0xf1   : > { %6054 = vmatmul.mubr.msk.bf16.gmra.mrb[20].mxu1 %vm635_vm3, %v8989_v29 }
  0xf2   : > { %5918 = vmatmul.mubr.msk.bf16.gmra.mrb[20].mxu0 %vm635_vm3, %v7499_v26  ;;  %6057 = vmatprep.mubr.msk.bf16.mxu1 %vm635_vm3, %v8990_v43 }
  0xf3   : > { %5921 = vmatprep.mubr.msk.bf16.mxu0 %vm635_vm3, %v7503_v34 }
  0xf9   : > { %6058 = vmatmul.mubr.msk.bf16.gmra.mrb[24].mxu1 %vm635_vm3, %v7453_v33 }
  0xfa   : > { %5922 = vmatmul.mubr.msk.bf16.gmra.mrb[24].mxu0 %vm635_vm3, %v7507_v17  ;;  %6061 = vmatprep.mubr.msk.bf16.mxu1 %vm635_vm3, %v7495_v45 }
  0xfb   : > { %5925 = vmatprep.mubr.msk.bf16.mxu0 %vm635_vm3, %v7511_v32 }
 0x101   : > { %6062 = vmatmul.mubr.msk.bf16.gmra.mrb[28].mxu1 %vm635_vm3, %v7706_v2 }
 0x102   : > { %5926 = vmatmul.mubr.msk.bf16.gmra.mrb[28].mxu0 %vm635_vm3, %v7710_v58  ;;  %6067 = vmatprep.mubr.msk.bf16.mxu1 %vm635_vm3, %v8991_v54 }
 0x103   : > { %5931 = vmatprep.mubr.msk.bf16.mxu0 %vm635_vm3, %v7070_v12 }
 0x109   : > { %6068 = vmatmul.mubr.msk.bf16.vlgmr.msra.gmra.mrb[0].mxu1 %vm635_vm3, %v8992_v4 }
 0x10a   : > { %6236 = vmatpush3.bf16.msra.mxu1 %v3315_v20  ;;  %5932 = vmatmul.mubr.msk.bf16.vlgmr.msra.gmra.mrb[0].mxu0 %vm635_vm3, %v7113_v49 }
 0x10b   : > { %6071 = vmatprep.mubr.msk.bf16.mxu1 %vm635_vm3, %v8993_v27  ;;  %6100 = vmatpush3.bf16.msra.mxu0 %v2549_v42 }
 0x10c   : > { %5935 = vmatprep.mubr.msk.bf16.mxu0 %vm635_vm3, %v7151_v30  ;;  %6768 = vmatprep.subr.msk.bf16.mxu1 %vm684_vm0, %v5320_v15 }
 0x10d   : > { %6764 = vmatprep.subr.msk.bf16.mxu0 %vm684_vm0, %v5250_v0 }
 0x111   : > { %6072 = vmatmul.mubr.msk.bf16.gmra.mrb[4].mxu1 %vm635_vm3, %v8994_v63 }
 0x112   : > { %5936 = vmatmul.mubr.msk.bf16.gmra.mrb[4].mxu0 %vm635_vm3, %v7174_v62  ;;  %6075 = vmatprep.mubr.msk.bf16.mxu1 %vm635_vm3, %v8995_v50 }
 0x113   : > { %5939 = vmatprep.mubr.msk.bf16.mxu0 %vm635_vm3, %v8982_v61 }
 0x119   : > { %6076 = vmatmul.mubr.msk.bf16.gmra.mrb[8].mxu1 %vm635_vm3, %v8996_v3 }
 0x11a   : > { %5940 = vmatmul.mubr.msk.bf16.gmra.mrb[8].mxu0 %vm635_vm3, %v8983_v18  ;;  %6079 = vmatprep.mubr.msk.bf16.mxu1 %vm635_vm3, %v8997_v21 }
 0x11b   : > { %5943 = vmatprep.mubr.msk.bf16.mxu0 %vm635_vm3, %v8984_v23 }
 0x121   : > { %6080 = vmatmul.mubr.msk.bf16.gmra.mrb[12].mxu1 %vm635_vm3, %v8998_v13 }
 0x122   : > { %5944 = vmatmul.mubr.msk.bf16.gmra.mrb[12].mxu0 %vm635_vm3, %v8985_v28  ;;  %6083 = vmatprep.mubr.msk.bf16.mxu1 %vm635_vm3, %v8999_v11 }
 0x123   : > { %5947 = vmatprep.mubr.msk.bf16.mxu0 %vm635_vm3, %v8986_v36 }
 0x129   : > { %6084 = vmatmul.mubr.msk.bf16.gmra.mrb[16].mxu1 %vm635_vm3, %v9000_v31 }
 0x12a   : > { %5948 = vmatmul.mubr.msk.bf16.gmra.mrb[16].mxu0 %vm635_vm3, %v8987_v47  ;;  %6087 = vmatprep.mubr.msk.bf16.mxu1 %vm635_vm3, %v9001_v25 }
 0x12b   : > { %5951 = vmatprep.mubr.msk.bf16.mxu0 %vm635_vm3, %v8988_v55 }
 0x131   : > { %6088 = vmatmul.mubr.msk.bf16.gmra.mrb[20].mxu1 %vm635_vm3, %v9002_v39 }
 0x132   : > { %5952 = vmatmul.mubr.msk.bf16.gmra.mrb[20].mxu0 %vm635_vm3, %v8989_v29  ;;  %6091 = vmatprep.mubr.msk.bf16.mxu1 %vm635_vm3, %v9003_v7 }
 0x133   : > { %5955 = vmatprep.mubr.msk.bf16.mxu0 %vm635_vm3, %v8990_v43 }
 0x139   : > { %6092 = vmatmul.mubr.msk.bf16.gmra.mrb[24].mxu1 %vm635_vm3, %v7455_v46 }
 0x13a   : > { %5956 = vmatmul.mubr.msk.bf16.gmra.mrb[24].mxu0 %vm635_vm3, %v7453_v33  ;;  %6095 = vmatprep.mubr.msk.bf16.mxu1 %vm635_vm3, %v7485_v60 }
 0x13b   : > { %5959 = vmatprep.mubr.msk.bf16.mxu0 %vm635_vm3, %v7495_v45 }
 0x141   : > { %6096 = vmatmul.mubr.msk.bf16.gmra.mrb[28].mxu1 %vm635_vm3, %v7622_v52 }
 0x142   : > { %5960 = vmatmul.mubr.msk.bf16.gmra.mrb[28].mxu0 %vm635_vm3, %v7706_v2  ;;  %6237 = vmatprep.mubr.msk.bf16.mxu1 %vm635_vm3, %v8991_v54 }
 0x143   : > { %6101 = vmatprep.mubr.msk.bf16.mxu0 %vm635_vm3, %v7070_v12 }
 0x149   : > { %6238 = vmatmul.mubr.msk.bf16.vlgmr.msra.gmra.mrb[32].mxu1 %vm635_vm3, %v8992_v4 }
 0x14a   : > { %6270 = vmatpush3.bf16.msra.mxu1 %v3479_v10  ;;  %6102 = vmatmul.mubr.msk.bf16.vlgmr.msra.gmra.mrb[32].mxu0 %vm635_vm3, %v7113_v49 }
 0x14b   : > { %6241 = vmatprep.mubr.msk.bf16.mxu1 %vm635_vm3, %v8993_v27  ;;  %6134 = vmatpush3.bf16.msra.mxu0 %v2713_v37  ;;  %v7998_v37 = vld [vmem:[%s6990_s5 + $0xd0] sm:$0xf] }
 0x14c   : > { %6105 = vmatprep.mubr.msk.bf16.mxu0 %vm635_vm3, %v7151_v30  ;;  %6769 = vmatprep.subr.msk.bf16.mxu1 %vm684_vm0, %v5354_v53 }
 0x14d   : > { %6765 = vmatprep.subr.msk.bf16.mxu0 %vm684_vm0, %v5284_v56 }
 0x151   : > { %6242 = vmatmul.mubr.msk.bf16.gmra.mrb[36].mxu1 %vm635_vm3, %v8994_v63 }
 0x152   : > { %6106 = vmatmul.mubr.msk.bf16.gmra.mrb[36].mxu0 %vm635_vm3, %v7174_v62  ;;  %6245 = vmatprep.mubr.msk.bf16.mxu1 %vm635_vm3, %v8995_v50 }
 0x153   : > { %6109 = vmatprep.mubr.msk.bf16.mxu0 %vm635_vm3, %v8982_v61 }
 0x159   : > { %6246 = vmatmul.mubr.msk.bf16.gmra.mrb[40].mxu1 %vm635_vm3, %v8996_v3 }
 0x15a   : > { %6110 = vmatmul.mubr.msk.bf16.gmra.mrb[40].mxu0 %vm635_vm3, %v8983_v18  ;;  %6249 = vmatprep.mubr.msk.bf16.mxu1 %vm635_vm3, %v8997_v21 }
 0x15b   : > { %6113 = vmatprep.mubr.msk.bf16.mxu0 %vm635_vm3, %v8984_v23 }
 0x161   : > { %6250 = vmatmul.mubr.msk.bf16.gmra.mrb[44].mxu1 %vm635_vm3, %v8998_v13 }
 0x162   : > { %6114 = vmatmul.mubr.msk.bf16.gmra.mrb[44].mxu0 %vm635_vm3, %v8985_v28  ;;  %6253 = vmatprep.mubr.msk.bf16.mxu1 %vm635_vm3, %v8999_v11 }
 0x163   : > { %6117 = vmatprep.mubr.msk.bf16.mxu0 %vm635_vm3, %v8986_v36 }
 0x169   : > { %6254 = vmatmul.mubr.msk.bf16.gmra.mrb[48].mxu1 %vm635_vm3, %v9000_v31 }
 0x16a   : > { %6118 = vmatmul.mubr.msk.bf16.gmra.mrb[48].mxu0 %vm635_vm3, %v8987_v47  ;;  %6257 = vmatprep.mubr.msk.bf16.mxu1 %vm635_vm3, %v9001_v25 }
 0x16b   : > { %6121 = vmatprep.mubr.msk.bf16.mxu0 %vm635_vm3, %v8988_v55 }
 0x171   : > { %6258 = vmatmul.mubr.msk.bf16.gmra.mrb[52].mxu1 %vm635_vm3, %v9002_v39 }
 0x172   : > { %6122 = vmatmul.mubr.msk.bf16.gmra.mrb[52].mxu0 %vm635_vm3, %v8989_v29  ;;  %6261 = vmatprep.mubr.msk.bf16.mxu1 %vm635_vm3, %v9003_v7 }
 0x173   : > { %6125 = vmatprep.mubr.msk.bf16.mxu0 %vm635_vm3, %v8990_v43 }
 0x179   : > { %6262 = vmatmul.mubr.msk.bf16.gmra.mrb[56].mxu1 %vm635_vm3, %v7455_v46 }
 0x17a   : > { %6126 = vmatmul.mubr.msk.bf16.gmra.mrb[56].mxu0 %vm635_vm3, %v7453_v33  ;;  %6265 = vmatprep.mubr.msk.bf16.mxu1 %vm635_vm3, %v7485_v60 }
 0x17b   : > { %6129 = vmatprep.mubr.msk.bf16.mxu0 %vm635_vm3, %v7495_v45 }
 0x181   : > { %6266 = vmatmul.mubr.msk.bf16.gmra.mrb[60].mxu1 %vm635_vm3, %v7622_v52 }
 0x182   : > { %6130 = vmatmul.mubr.msk.bf16.gmra.mrb[60].mxu0 %vm635_vm3, %v7706_v2  ;;  %6271 = vmatprep.mubr.msk.bf16.mxu1 %vm635_vm3, %v7070_v12  ;;  %v5302_v12 = vld [vmem:[%s8904_s1 + $0x16] sm:$0x3] }
 0x183   : > { %6135 = vmatprep.mubr.msk.bf16.mxu0 %vm635_vm3, %v7523_v41  ;;  %v3857_v41 = vsel %vm684_vm0, %v5372_v44, 0  ;;  %v3115_v8 = vsel %vm684_vm0, %v5302_v12, 0 }
 0x189   : > { %6272 = vmatmul.mubr.msk.bf16.vlgmr.msra.gmra.mrb[32].mxu1 %vm635_vm3, %v7113_v49 }
 0x18a   : > { %6304 = vmatpush3.bf16.msra.mxu1 %v3645_v19  ;;  %6136 = vmatmul.mubr.msk.bf16.vlgmr.msra.gmra.mrb[32].mxu0 %vm635_vm3, %v7531_v57  ;;  %v3092_v19 = vshll.u32 %v7998_v37, 16 }
 0x18b   : > { %6275 = vmatprep.mubr.msk.bf16.mxu1 %vm635_vm3, %v7151_v30  ;;  %6168 = vmatpush3.bf16.msra.mxu0 %v2887_v35  ;;  %v3096_v35 = vshrl.u32 %v7998_v37, 16 }
 0x18c   : > { %6139 = vmatprep.mubr.msk.bf16.mxu0 %vm635_vm3, %v7551_v14  ;;  %6770 = vmatprep.subr.msk.bf16.mxu1 %vm684_vm0, %v5372_v44 }
 0x18d   : > { %6766 = vmatprep.subr.msk.bf16.mxu0 %vm684_vm0, %v5302_v12 }
 0x191   : > { %6276 = vmatmul.mubr.msk.bf16.gmra.mrb[36].mxu1 %vm635_vm3, %v7174_v62 }
 0x192   : > { %6140 = vmatmul.mubr.msk.bf16.gmra.mrb[36].mxu0 %vm635_vm3, %v7555_v16  ;;  %6279 = vmatprep.mubr.msk.bf16.mxu1 %vm635_vm3, %v8982_v61 }
 0x193   : > { %6143 = vmatprep.mubr.msk.bf16.mxu0 %vm635_vm3, %v7567_v51 }
 0x199   : > { %6280 = vmatmul.mubr.msk.bf16.gmra.mrb[40].mxu1 %vm635_vm3, %v8983_v18 }
 0x19a   : > { %6144 = vmatmul.mubr.msk.bf16.gmra.mrb[40].mxu0 %vm635_vm3, %v7467_v59  ;;  %6283 = vmatprep.mubr.msk.bf16.mxu1 %vm635_vm3, %v8984_v23 }
 0x19b   : > { %6147 = vmatprep.mubr.msk.bf16.mxu0 %vm635_vm3, %v7473_v5 }
 0x1a1   : > { %6284 = vmatmul.mubr.msk.bf16.gmra.mrb[44].mxu1 %vm635_vm3, %v8985_v28 }
 0x1a2   : > { %6148 = vmatmul.mubr.msk.bf16.gmra.mrb[44].mxu0 %vm635_vm3, %v7477_v24  ;;  %6287 = vmatprep.mubr.msk.bf16.mxu1 %vm635_vm3, %v8986_v36 }
 0x1a3   : > { %6151 = vmatprep.mubr.msk.bf16.mxu0 %vm635_vm3, %v7481_v22 }
 0x1a9   : > { %6288 = vmatmul.mubr.msk.bf16.gmra.mrb[48].mxu1 %vm635_vm3, %v8987_v47 }
 0x1aa   : > { %6152 = vmatmul.mubr.msk.bf16.gmra.mrb[48].mxu0 %vm635_vm3, %v7489_v1  ;;  %6291 = vmatprep.mubr.msk.bf16.mxu1 %vm635_vm3, %v8988_v55 }
 0x1ab   : > { %6155 = vmatprep.mubr.msk.bf16.mxu0 %vm635_vm3, %v7493_v40 }
 0x1b1   : > { %6292 = vmatmul.mubr.msk.bf16.gmra.mrb[52].mxu1 %vm635_vm3, %v8989_v29 }
 0x1b2   : > { %6156 = vmatmul.mubr.msk.bf16.gmra.mrb[52].mxu0 %vm635_vm3, %v7499_v26  ;;  %6295 = vmatprep.mubr.msk.bf16.mxu1 %vm635_vm3, %v8990_v43 }
 0x1b3   : > { %6159 = vmatprep.mubr.msk.bf16.mxu0 %vm635_vm3, %v7503_v34 }
 0x1b9   : > { %6296 = vmatmul.mubr.msk.bf16.gmra.mrb[56].mxu1 %vm635_vm3, %v7453_v33 }
 0x1ba   : > { %6160 = vmatmul.mubr.msk.bf16.gmra.mrb[56].mxu0 %vm635_vm3, %v7507_v17  ;;  %6299 = vmatprep.mubr.msk.bf16.mxu1 %vm635_vm3, %v7495_v45 }
 0x1bb   : > { %6163 = vmatprep.mubr.msk.bf16.mxu0 %vm635_vm3, %v7511_v32 }
 0x1c1   : > { %6300 = vmatmul.mubr.msk.bf16.gmra.mrb[60].mxu1 %vm635_vm3, %v7706_v2 }
 0x1c2   : > { %6164 = vmatmul.mubr.msk.bf16.gmra.mrb[60].mxu0 %vm635_vm3, %v7710_v58  ;;  %6305 = vmatprep.mubr.msk.bf16.mxu1 %vm635_vm3, %v7113_v49 }
 0x1c3   : > { %6169 = vmatprep.mubr.msk.bf16.mxu0 %vm635_vm3, %v7531_v57 }
 0x1c9   : > { %6306 = vmatmul.mubr.msk.bf16.vlgmr.msra.gmra.mrb[32].mxu1 %vm635_vm3, %v7151_v30 }
 0x1ca   : > { %6338 = vmatpush3.bf16.msra.mxu1 %v3857_v41  ;;  %6170 = vmatmul.mubr.msk.bf16.vlgmr.msra.gmra.mrb[32].mxu0 %vm635_vm3, %v7551_v14 }
 0x1cb   : > { %6309 = vmatprep.mubr.msk.bf16.mxu1 %vm635_vm3, %v7174_v62  ;;  %6202 = vmatpush3.bf16.msra.mxu0 %v3115_v8 }
 0x1cc   : > { %6173 = vmatprep.mubr.msk.bf16.mxu0 %vm635_vm3, %v7555_v16 }
 0x1d1   : > { %6310 = vmatmul.mubr.msk.bf16.gmra.mrb[36].mxu1 %vm635_vm3, %v8982_v61 }
 0x1d2   : > { %6174 = vmatmul.mubr.msk.bf16.gmra.mrb[36].mxu0 %vm635_vm3, %v7567_v51  ;;  %6313 = vmatprep.mubr.msk.bf16.mxu1 %vm635_vm3, %v8983_v18 }
 0x1d3   : > { %6177 = vmatprep.mubr.msk.bf16.mxu0 %vm635_vm3, %v7467_v59 }
 0x1d9   : > { %6314 = vmatmul.mubr.msk.bf16.gmra.mrb[40].mxu1 %vm635_vm3, %v8984_v23 }
 0x1da   : > { %6178 = vmatmul.mubr.msk.bf16.gmra.mrb[40].mxu0 %vm635_vm3, %v7473_v5  ;;  %6317 = vmatprep.mubr.msk.bf16.mxu1 %vm635_vm3, %v8985_v28 }
 0x1db   : > { %6181 = vmatprep.mubr.msk.bf16.mxu0 %vm635_vm3, %v7477_v24 }
 0x1dc   : > { %v6069_v57 = vpop.f32.mrb[0].mxu1 }
 0x1dd   : > { %4088 = vrot.lane.b32.xlu0 %v6069_v57, %s6899_s21  ;;  %v2385_v14 = vpop.f32.mrb[1].mxu1  ;;  %v7969_v16 = vpop.f32.mrb[0].mxu0 }
 0x1de   : > { %v6070_v59 = vpop.f32.mrb[2].mxu1  ;;  %v7971_v51 = vpop.f32.mrb[1].mxu0 }
 0x1df   : > { %v2388_v9 = vpop.f32.mrb[3].mxu1  ;;  %v7973_v38 = vpop.f32.mrb[2].mxu0 }
 0x1e0   : > { %v7975_v5 = vpop.f32.mrb[3].mxu0 }
 0x1e1   : > { %6318 = vmatmul.mubr.msk.bf16.gmra.mrb[44].mxu1 %vm635_vm3, %v8986_v36  ;;  %4084 = vrot.lane.b32.xlu0 %v2385_v14, %s6899_s21 }
 0x1e2   : > { %6182 = vmatmul.mubr.msk.bf16.gmra.mrb[44].mxu0 %vm635_vm3, %v7481_v22  ;;  %6321 = vmatprep.mubr.msk.bf16.mxu1 %vm635_vm3, %v8987_v47  ;;  %v7995_v22 = vld [vmem:[%s6990_s5 + $0xcc] sm:$0xf] }
 0x1e3   : > { %6185 = vmatprep.mubr.msk.bf16.mxu0 %vm635_vm3, %v7489_v1  ;;  %v3083_v1 = vshrl.u32 %v7995_v22, 16  ;;  %v3086_v56 = vshll.u32 %v7995_v22, 16  ;;  %v5285_v48 = vcombine.low %v7995_v22, %v7998_v37 }
 0x1e4   : > { %v6073_v24 = vpop.f32.mrb[4].mxu1 }
 0x1e5   : > { %4090 = vrot.lane.b32.xlu0 %v6070_v59, %s6899_s21  ;;  %4096 = vrot.lane.b32.xlu1 %v6073_v24, %s6899_s21  ;;  %v2401_v54 = vpop.f32.mrb[5].mxu1  ;;  %v7988_v20 = vpop.f32.mrb[4].mxu0  ;;  %v3085_v57 = vrot.slane %v3083_v1, 4  ;;  %v3088_v14 = vrot.slane %v3086_v56, 5  ;;  %v3094_v59 = vrot.slane %v3092_v19, 5 }
 0x1e6   : > { %v6074_v42 = vpop.f32.mrb[6].mxu1  ;;  %v7990_v15 = vpop.f32.mrb[5].mxu0 }
 0x1e7   : > { %v2404_v0 = vpop.f32.mrb[7].mxu1  ;;  %v7992_v10 = vpop.f32.mrb[6].mxu0 }
 0x1e8   : > { %9004 = vst [vmem:[#allocation7_spill] sm:$0xff] %v7992_v10  ;;  %v8000_v53 = vpop.f32.mrb[7].mxu0  ;;  %v8025_v10 = vld [vmem:[%s6990_s5 + $0xd4] sm:$0x1]  ;;  %s6900_s5 = smov 96  }
 0x1e9   : > { %6322 = vmatmul.mubr.msk.bf16.gmra.mrb[48].mxu1 %vm635_vm3, %v8988_v55  ;;  %4086 = vrot.lane.b32.xlu0 %v2388_v9, %s6899_s21  ;;  %v3098_v9 = vrot.slane %v3096_v35, 4  ;;  %v3102_v56 = vshll.u32 %v8025_v10, 16 }
 0x1ea   : > { %4092 = vrot.lane.b32.xlu1 %v2401_v54, %s6899_s21  ;;  %6186 = vmatmul.mubr.msk.bf16.gmra.mrb[48].mxu0 %vm635_vm3, %v7493_v40 }
 0x1eb   : > { %6325 = vmatprep.mubr.msk.bf16.mxu1 %vm635_vm3, %v8989_v29  ;;  %6189 = vmatprep.mubr.msk.bf16.mxu0 %vm635_vm3, %v7499_v26  ;;  %v3099_v1 = vor.u32 %v3098_v9, %v3094_v59 }
 0x1ec   : > { %v6077_v44 = vpop.f32.mrb[8].mxu1 }
 0x1ed   : > { %4098 = vrot.lane.b32.xlu0 %v6074_v42, %s6899_s21  ;;  %v2417_v12 = vpop.f32.mrb[9].mxu1  ;;  %v8017_v40 = vpop.f32.mrb[8].mxu0  ;;  %v3089_v42 = vor.u32 %v3088_v14, %v3085_v57  ;;  %v3100_v57 = vrot.slane %v3099_v1, 4  ;;  %v3104_v14 = vrot.slane %v3102_v56, 5 }
 0x1ee   : > { %9005 = vst [vmem:[#allocation11_spill] sm:$0xff] %v8017_v40  ;;  %4104 = vrot.lane.b32.xlu1 %v6077_v44, %s6899_s21  ;;  %v6078_v41 = vpop.f32.mrb[10].mxu1  ;;  %v8020_v8 = vpop.f32.mrb[9].mxu0 }
 0x1ef   : > { %9006 = vst [vmem:[#allocation12_spill] sm:$0xff] %v8020_v8  ;;  %v2420_v24 = vpop.f32.mrb[11].mxu1  ;;  %v8022_v54 = vpop.f32.mrb[10].mxu0 }
 0x1f0   : > { %v8027_v26 = vpop.f32.mrb[11].mxu0 }
 0x1f1   : > { %6326 = vmatmul.mubr.msk.bf16.gmra.mrb[52].mxu1 %vm635_vm3, %v8990_v43  ;;  %4094 = vrot.lane.b32.xlu0 %v2404_v0, %s6899_s21 }
 0x1f2   : > { %4100 = vrot.lane.b32.xlu1 %v2417_v12, %s6899_s21  ;;  %6190 = vmatmul.mubr.msk.bf16.gmra.mrb[52].mxu0 %vm635_vm3, %v7503_v34  ;;  %v3090_v12 = vrot.slane %v3089_v42, 4 }
 0x1f3   : > { %6329 = vmatprep.mubr.msk.bf16.mxu1 %vm635_vm3, %v7453_v33  ;;  %6193 = vmatprep.mubr.msk.bf16.mxu0 %vm635_vm3, %v7507_v17 }
 0x1f4   : > { %v6081_v19 = vpop.f32.mrb[12].mxu1  ;;  %v3095_v17 = vsel %vm7044_vm7, %v3090_v12, %v3094_v59 }
 0x1f5   : > { %4106 = vrot.lane.b32.xlu0 %v6078_v41, %s6899_s21  ;;  %v2433_v35 = vpop.f32.mrb[13].mxu1  ;;  %v8041_v0 = vpop.f32.mrb[12].mxu0  ;;  %v3105_v41 = vsel %vm7044_vm7, %v3100_v57, %v3104_v14 }
 0x1f6   : > { %4112 = vrot.lane.b32.xlu1 %v6081_v19, %s6899_s21  ;;  %v6082_v44 = vpop.f32.mrb[14].mxu1  ;;  %v8044_v34 = vpop.f32.mrb[13].mxu0  ;;  %v8067_v56 = vcombine.low %v3095_v17, %v3105_v41 }
 0x1f7   : > { %v2436_v9 = vpop.f32.mrb[15].mxu1  ;;  %v8046_v40 = vpop.f32.mrb[14].mxu0 }
 0x1f8   : > { %v8048_v8 = vpop.f32.mrb[15].mxu0 }
 0x1f9   : > { %6330 = vmatmul.mubr.msk.bf16.gmra.mrb[56].mxu1 %vm635_vm3, %v7495_v45  ;;  %4102 = vrot.lane.b32.xlu0 %v2420_v24, %s6899_s21 }
 0x1fa   : > { %4108 = vrot.lane.b32.xlu1 %v2433_v35, %s6899_s21  ;;  %6194 = vmatmul.mubr.msk.bf16.gmra.mrb[56].mxu0 %vm635_vm3, %v7511_v32 }
 0x1fb   : > { %6333 = vmatprep.mubr.msk.bf16.mxu1 %vm635_vm3, %v7706_v2  ;;  %6197 = vmatprep.mubr.msk.bf16.mxu0 %vm635_vm3, %v7710_v58 }
 0x1fc   : > { %v6085_v42 = vpop.f32.mrb[16].mxu1 }
 0x1fd   : > { %4114 = vrot.lane.b32.xlu0 %v6082_v44, %s6899_s21  ;;  %v2449_v24 = vpop.f32.mrb[17].mxu1  ;;  %v8065_v1 = vpop.f32.mrb[16].mxu0 }
 0x1fe   : > { %4120 = vrot.lane.b32.xlu1 %v6085_v42, %s6899_s21  ;;  %v6086_v32 = vpop.f32.mrb[18].mxu1  ;;  %v8070_v59 = vpop.f32.mrb[17].mxu0 }
 0x1ff   : > { %v2452_v19 = vpop.f32.mrb[19].mxu1  ;;  %v8074_v35 = vpop.f32.mrb[18].mxu0 }
 0x200   : > { %v8076_v58 = vpop.f32.mrb[19].mxu0 }
 0x201   : > { %6334 = vmatmul.mubr.msk.bf16.gmra.mrb[60].mxu1 %vm635_vm3, %v8067_v56  ;;  %4110 = vrot.lane.b32.xlu0 %v2436_v9, %s6899_s21 }
 0x202   : > { %4116 = vrot.lane.b32.xlu1 %v2449_v24, %s6899_s21  ;;  %6198 = vmatmul.mubr.msk.bf16.gmra.mrb[60].mxu0 %vm635_vm3, %v5285_v48 }
 0x203   : > { %6339 = vmatprep.mubr.msk.bf16.mxu1 %vm635_vm3, %v8992_v4  ;;  %6203 = vmatprep.mubr.msk.bf16.mxu0 %vm635_vm3, %v7113_v49 }
 0x204   : > { %v6089_v44 = vpop.f32.mrb[20].mxu1 }
 0x205   : > { %4122 = vrot.lane.b32.xlu0 %v6086_v32, %s6899_s21  ;;  %v2465_v12 = vpop.f32.mrb[21].mxu1  ;;  %v8088_v57 = vpop.f32.mrb[20].mxu0 }
 0x206   : > { %4128 = vrot.lane.b32.xlu1 %v6089_v44, %s6899_s21  ;;  %v6090_v14 = vpop.f32.mrb[22].mxu1  ;;  %v8091_v9 = vpop.f32.mrb[21].mxu0 }
 0x207   : > { %v2468_v17 = vpop.f32.mrb[23].mxu1  ;;  %v8093_v41 = vpop.f32.mrb[22].mxu0 }
 0x208   : > { %v8095_v42 = vpop.f32.mrb[23].mxu0 }
 0x209   : > { %6340 = vmatmul.mubr.msk.bf16.vlgmr.msra.gmra.mrb[32].mxu1 %vm635_vm3, %v8993_v27  ;;  %4118 = vrot.lane.b32.xlu0 %v2452_v19, %s6899_s21 }
 0x20a   : > { %4124 = vrot.lane.b32.xlu1 %v2465_v12, %s6899_s21  ;;  %6204 = vmatmul.mubr.msk.bf16.vlgmr.msra.gmra.mrb[32].mxu0 %vm635_vm3, %v7151_v30 }
 0x20b   : > { %6343 = vmatprep.mubr.msk.bf16.mxu1 %vm635_vm3, %v8994_v63  ;;  %6207 = vmatprep.mubr.msk.bf16.mxu0 %vm635_vm3, %v7174_v62 }
 0x20c   : > { %v6093_v49 = vpop.f32.mrb[24].mxu1 }
 0x20d   : > { %4130 = vrot.lane.b32.xlu0 %v6090_v14, %s6899_s21  ;;  %v2481_v4 = vpop.f32.mrb[25].mxu1  ;;  %v8108_v24 = vpop.f32.mrb[24].mxu0 }
 0x20e   : > { %4136 = vrot.lane.b32.xlu1 %v6093_v49, %s6899_s21  ;;  %v6094_v27 = vpop.f32.mrb[26].mxu1  ;;  %v8111_v32 = vpop.f32.mrb[25].mxu0 }
 0x20f   : > { %v2484_v48 = vpop.f32.mrb[27].mxu1  ;;  %v8113_v19 = vpop.f32.mrb[26].mxu0 }
 0x210   : > { %v8115_v30 = vpop.f32.mrb[27].mxu0 }
 0x211   : > { %6344 = vmatmul.mubr.msk.bf16.gmra.mrb[36].mxu1 %vm635_vm3, %v8995_v50  ;;  %4126 = vrot.lane.b32.xlu0 %v2468_v17, %s6899_s21 }
 0x212   : > { %4132 = vrot.lane.b32.xlu1 %v2481_v4, %s6899_s21  ;;  %6208 = vmatmul.mubr.msk.bf16.gmra.mrb[36].mxu0 %vm635_vm3, %v8982_v61 }
 0x213   : > { %6347 = vmatprep.mubr.msk.bf16.mxu1 %vm635_vm3, %v8996_v3  ;;  %6211 = vmatprep.mubr.msk.bf16.mxu0 %vm635_vm3, %v8983_v18  ;;  %v3843_v18 = vrot.slane %v7998_v37, 5 }
 0x214   : > { %v6097_v62 = vpop.f32.mrb[28].mxu1 }
 0x215   : > { %4138 = vrot.lane.b32.xlu0 %v6094_v27, %s6899_s21  ;;  %v2497_v63 = vpop.f32.mrb[29].mxu1  ;;  %v8128_v44 = vpop.f32.mrb[28].mxu0 }
 0x216   : > { %4144 = vrot.lane.b32.xlu1 %v6097_v62, %s6899_s21  ;;  %v6098_v50 = vpop.f32.mrb[30].mxu1  ;;  %v8131_v12 = vpop.f32.mrb[29].mxu0 }
 0x217   : > { %9007 = vst [vmem:[#allocation15_spill] sm:$0xff] %v8131_v12  ;;  %v2500_v14 = vpop.f32.mrb[31].mxu1  ;;  %v8133_v17 = vpop.f32.mrb[30].mxu0 }
 0x218   : > { %v8135_v61 = vpop.f32.mrb[31].mxu0 }
 0x219   : > { %9008 = vst [vmem:[#allocation16_spill] sm:$0xff] %v8135_v61  ;;  %6348 = vmatmul.mubr.msk.bf16.gmra.mrb[40].mxu1 %vm635_vm3, %v8997_v21  ;;  %4134 = vrot.lane.b32.xlu0 %v2484_v48, %s6899_s21 }
 0x21a   : > { %4140 = vrot.lane.b32.xlu1 %v2497_v63, %s6899_s21  ;;  %6212 = vmatmul.mubr.msk.bf16.gmra.mrb[40].mxu0 %vm635_vm3, %v8984_v23  ;;  %v5371_v23 = vrot.slane %v7995_v22, 9 }
 0x21b   : > { %6351 = vmatprep.mubr.msk.bf16.mxu1 %vm635_vm3, %v8998_v13  ;;  %6215 = vmatprep.mubr.msk.bf16.mxu0 %vm635_vm3, %v8985_v28  ;;  %v3845_v28 = vrot.slane %v3843_v18, 4 }
 0x21d   : > { %4146 = vrot.lane.b32.xlu0 %v6098_v50, %s6899_s21 }
 0x221   : > { %6352 = vmatmul.mubr.msk.bf16.gmra.mrb[44].mxu1 %vm635_vm3, %v8999_v11  ;;  %4142 = vrot.lane.b32.xlu0 %v2500_v14, %s6899_s21 }
 0x222   : > { %6216 = vmatmul.mubr.msk.bf16.gmra.mrb[44].mxu0 %vm635_vm3, %v8986_v36  ;;  %6355 = vmatprep.mubr.msk.bf16.mxu1 %vm635_vm3, %v9000_v31  ;;  %v3846_v36 = vrot.slane %v8025_v10, 5 }
 0x223   : > { %6219 = vmatprep.mubr.msk.bf16.mxu0 %vm635_vm3, %v8987_v47 }
 0x229   : > { %6356 = vmatmul.mubr.msk.bf16.gmra.mrb[48].mxu1 %vm635_vm3, %v9001_v25 }
 0x22a   : > { %6220 = vmatmul.mubr.msk.bf16.gmra.mrb[48].mxu0 %vm635_vm3, %v8988_v55  ;;  %6359 = vmatprep.mubr.msk.bf16.mxu1 %vm635_vm3, %v9002_v39 }
 0x22b   : > { %6223 = vmatprep.mubr.msk.bf16.mxu0 %vm635_vm3, %v8989_v29 }
 0x231   : > { %6360 = vmatmul.mubr.msk.bf16.gmra.mrb[52].mxu1 %vm635_vm3, %v9003_v7 }
 0x232   : > { %6224 = vmatmul.mubr.msk.bf16.gmra.mrb[52].mxu0 %vm635_vm3, %v8990_v43  ;;  %6363 = vmatprep.mubr.msk.bf16.mxu1 %vm635_vm3, %v7455_v46  ;;  %v3844_v46 = vsel %vm6992_vm4, %v5371_v23, %v3843_v18 }
 0x233   : > { %6227 = vmatprep.mubr.msk.bf16.mxu0 %vm635_vm3, %v7453_v33  ;;  %v3847_v33 = vsel %vm6992_vm4, %v3845_v28, %v3846_v36 }
 0x234   : > { %v5373_v47 = vcombine.low %v3844_v46, %v3847_v33 }
 0x239   : > { %6364 = vmatmul.mubr.msk.bf16.gmra.mrb[56].mxu1 %vm635_vm3, %v7485_v60 }
 0x23a   : > { %6228 = vmatmul.mubr.msk.bf16.gmra.mrb[56].mxu0 %vm635_vm3, %v7495_v45  ;;  %6367 = vmatprep.mubr.msk.bf16.mxu1 %vm635_vm3, %v7622_v52 }
 0x23b   : > { %6231 = vmatprep.mubr.msk.bf16.mxu0 %vm635_vm3, %v7706_v2 }
 0x241   : > { %6368 = vmatmul.mubr.msk.bf16.gmra.mrb[60].mxu1 %vm635_vm3, %v5373_v47 }
 0x242   : > { %6232 = vmatmul.mubr.msk.bf16.gmra.mrb[60].mxu0 %vm635_vm3, %v8067_v56 }
 0x24f   : > { %v8191_v60 = vpop.permute.xlu0 %4088 }
 0x253   : > { %v8193_v45 = vpop.permute.xlu0 %4084 }
 0x257   : > { %v8195_v55 = vpop.permute.xlu0 %4090  ;;  %v8197_v29 = vpop.permute.xlu1 %4096 }
 0x25b   : > { %v8199_v43 = vpop.permute.xlu0 %4086 }
 0x25c   : > { %v8201_v6 = vpop.permute.xlu1 %4092 }
 0x25f   : > { %v8203_v52 = vpop.permute.xlu0 %4098 }
 0x260   : > { %v8205_v2 = vpop.permute.xlu1 %4104 }
 0x263   : > { %v4095_v3 = vpop.permute.xlu0 %4094 }
 0x264   : > { %v8209_v21 = vsel %vm4436_vm8, %v8000_v53, %v4095_v3  ;;  %v8211_v13 = vpop.permute.xlu1 %4100 }
 0x267   : > { %v4107_v11 = vpop.permute.xlu0 %4106 }
 0x268   : > { %v8215_v31 = vsel %vm4436_vm8, %v8022_v54, %v4107_v11  ;;  %v8217_v25 = vpop.permute.xlu1 %4112 }
 0x26b   : > { %v4103_v39 = vpop.permute.xlu0 %4102 }
 0x26c   : > { %v8221_v7 = vsel %vm4436_vm8, %v8027_v26, %v4103_v39  ;;  %v4109_v10 = vpop.permute.xlu1 %4108 }
 0x26d   : > { %v8225_v22 = vsel %vm4436_vm8, %v8044_v34, %v4109_v10 }
 0x26f   : > { %v4115_v37 = vpop.permute.xlu0 %4114 }
 0x270   : > { %v8229_v53 = vsel %vm4436_vm8, %v8046_v40, %v4115_v37  ;;  %v4121_v56 = vpop.permute.xlu1 %4120 }
 0x271   : > { %v8233_v54 = vsel %vm4436_vm8, %v8065_v1, %v4121_v56 }
 0x272   : > { %9009 = vst [vmem:[#allocation19_spill] sm:$0xff] %v8233_v54 }
 0x273   : > { %v4111_v49 = vpop.permute.xlu0 %4110 }
 0x274   : > { %v8237_v26 = vsel %vm4436_vm8, %v8048_v8, %v4111_v49  ;;  %v4117_v4 = vpop.permute.xlu1 %4116 }
 0x275   : > { %v8241_v34 = vsel %vm4436_vm8, %v8070_v59, %v4117_v4 }
 0x277   : > { %v4123_v27 = vpop.permute.xlu0 %4122 }
 0x278   : > { %v8245_v40 = vsel %vm4436_vm8, %v8074_v35, %v4123_v27  ;;  %v4129_v48 = vpop.permute.xlu1 %4128 }
 0x279   : > { %9010 = vst [vmem:[#allocation20_spill] sm:$0xff] %v8245_v40  ;;  %v8249_v1 = vsel %vm4436_vm8, %v8088_v57, %v4129_v48 }
 0x27a   : > { %9011 = vst [vmem:[#allocation23_spill] sm:$0xff] %v8249_v1 }
 0x27b   : > { %v4119_v62 = vpop.permute.xlu0 %4118 }
 0x27c   : > { %v8253_v8 = vsel %vm4436_vm8, %v8076_v58, %v4119_v62  ;;  %v4125_v63 = vpop.permute.xlu1 %4124 }
 0x27d   : > { %v8257_v59 = vsel %vm4436_vm8, %v8091_v9, %v4125_v63 }
 0x27e   : > { %9012 = vst [vmem:[#allocation24_spill] sm:$0xff] %v8257_v59 }
 0x27f   : > { %v4131_v50 = vpop.permute.xlu0 %4130 }
 0x280   : > { %v8261_v35 = vsel %vm4436_vm8, %v8093_v41, %v4131_v50  ;;  %v4137_v14 = vpop.permute.xlu1 %4136 }
 0x281   : > { %9013 = vst [vmem:[#allocation27_spill] sm:$0xff] %v8261_v35  ;;  %v8265_v57 = vsel %vm4436_vm8, %v8108_v24, %v4137_v14 }
 0x282   : > { %9014 = vst [vmem:[#allocation5_spill] sm:$0xff] %v8265_v57 }
 0x283   : > { %v4127_v18 = vpop.permute.xlu0 %4126 }
 0x284   : > { %v8269_v58 = vsel %vm4436_vm8, %v8095_v42, %v4127_v18  ;;  %v4133_v23 = vpop.permute.xlu1 %4132 }
 0x285   : > { %9015 = vst [vmem:[#allocation6_spill] sm:$0xff] %v8269_v58  ;;  %v8273_v9 = vsel %vm4436_vm8, %v8111_v32, %v4133_v23 }
 0x286   : > { %9016 = vst [vmem:[#allocation8_spill] sm:$0xff] %v8273_v9 }
 0x287   : > { %v4139_v28 = vpop.permute.xlu0 %4138 }
 0x288   : > { %v8277_v41 = vsel %vm4436_vm8, %v8113_v19, %v4139_v28  ;;  %v4145_v36 = vpop.permute.xlu1 %4144 }
 0x289   : > { %9017 = vst [vmem:[#allocation9_spill] sm:$0xff] %v8277_v41  ;;  %v8281_v24 = vsel %vm4436_vm8, %v8128_v44, %v4145_v36 }
 0x28a   : > { %9018 = vst [vmem:[#allocation10_spill] sm:$0xff] %v8281_v24 }
 0x28b   : > { %v4135_v46 = vpop.permute.xlu0 %4134 }
 0x28c   : > { %v8285_v42 = vsel %vm4436_vm8, %v8115_v30, %v4135_v46 }
 0x28d   : > { %9019 = vst [vmem:[#allocation13_spill] sm:$0xff] %v8285_v42 }
 0x28f   : > { %v4147_v33 = vpop.permute.xlu0 %4146 }
 0x290   : > { %v8289_v32 = vsel %vm4436_vm8, %v8133_v17, %v4147_v33 }
 0x291   : > { %9020 = vst [vmem:[#allocation14_spill] sm:$0xff] %v8289_v32 }
 0x2dc   : > { %v6341_v47 = vpop.f32.mrb[32].mxu1 }
 0x2dd   : > { %4344 = vrot.lane.b32.xlu1 %v6341_v47, %s6900_s5  ;;  %v3893_v19 = vpop.f32.mrb[33].mxu1  ;;  %v6205_v3 = vpop.f32.mrb[32].mxu0 }
 0x2de   : > { %v6342_v11 = vpop.f32.mrb[34].mxu1  ;;  %v3151_v39 = vpop.f32.mrb[33].mxu0 }
 0x2df   : > { %4346 = vrot.lane.b32.xlu0 %v6342_v11, %s6900_s5  ;;  %v3896_v44 = vpop.f32.mrb[35].mxu1  ;;  %v6206_v10 = vpop.f32.mrb[34].mxu0 }
 0x2e0   : > { %v3154_v37 = vpop.f32.mrb[35].mxu0 }
 0x2e1   : > { %4340 = vrot.lane.b32.xlu1 %v3893_v19, %s6900_s5 }
 0x2e3   : > { %4342 = vrot.lane.b32.xlu0 %v3896_v44, %s6900_s5 }
 0x2e4   : > { %v6345_v30 = vpop.f32.mrb[36].mxu1 }
 0x2e5   : > { %v3909_v17 = vpop.f32.mrb[37].mxu1  ;;  %4216 = vrot.lane.b32.xlu1 %v6205_v3, %s6901_s22  ;;  %v6209_v56 = vpop.f32.mrb[36].mxu0 }
 0x2e6   : > { %v6346_v49 = vpop.f32.mrb[38].mxu1  ;;  %v3167_v4 = vpop.f32.mrb[37].mxu0 }
 0x2e7   : > { %v3912_v27 = vpop.f32.mrb[39].mxu1  ;;  %4218 = vrot.lane.b32.xlu0 %v6206_v10, %s6901_s22  ;;  %v6210_v48 = vpop.f32.mrb[38].mxu0 }
 0x2e8   : > { %v3170_v62 = vpop.f32.mrb[39].mxu0 }
 0x2e9   : > { %4212 = vrot.lane.b32.xlu1 %v3151_v39, %s6901_s22 }
 0x2eb   : > { %4354 = vrot.lane.b32.xlu0 %v6346_v49, %s6900_s5 }
 0x2ec   : > { %v6349_v63 = vpop.f32.mrb[40].mxu1 }
 0x2ed   : > { %v3925_v50 = vpop.f32.mrb[41].mxu1  ;;  %4214 = vrot.lane.b32.xlu1 %v3154_v37, %s6901_s22  ;;  %v6213_v14 = vpop.f32.mrb[40].mxu0 }
 0x2ee   : > { %v6350_v18 = vpop.f32.mrb[42].mxu1  ;;  %v3183_v23 = vpop.f32.mrb[41].mxu0 }
 0x2ef   : > { %v3928_v28 = vpop.f32.mrb[43].mxu1  ;;  %4350 = vrot.lane.b32.xlu0 %v3912_v27, %s6900_s5  ;;  %v6214_v36 = vpop.f32.mrb[42].mxu0 }
 0x2f0   : > { %v3186_v46 = vpop.f32.mrb[43].mxu0 }
 0x2f1   : > { %4352 = vrot.lane.b32.xlu1 %v6345_v30, %s6900_s5 }
 0x2f3   : > { %4226 = vrot.lane.b32.xlu0 %v6210_v48, %s6901_s22 }
 0x2f4   : > { %v6353_v33 = vpop.f32.mrb[44].mxu1 }
 0x2f5   : > { %v3941_v47 = vpop.f32.mrb[45].mxu1  ;;  %4348 = vrot.lane.b32.xlu1 %v3909_v17, %s6900_s5  ;;  %v6217_v19 = vpop.f32.mrb[44].mxu0 }
 0x2f6   : > { %v6354_v3 = vpop.f32.mrb[46].mxu1  ;;  %v3199_v11 = vpop.f32.mrb[45].mxu0 }
 0x2f7   : > { %v3944_v39 = vpop.f32.mrb[47].mxu1  ;;  %4222 = vrot.lane.b32.xlu0 %v3170_v62, %s6901_s22  ;;  %v6218_v44 = vpop.f32.mrb[46].mxu0 }
 0x2f8   : > { %v3202_v10 = vpop.f32.mrb[47].mxu0 }
 0x2f9   : > { %4224 = vrot.lane.b32.xlu1 %v6209_v56, %s6901_s22 }
 0x2fb   : > { %4362 = vrot.lane.b32.xlu0 %v6350_v18, %s6900_s5 }
 0x2fc   : > { %v6357_v37 = vpop.f32.mrb[48].mxu1 }
 0x2fd   : > { %v3957_v30 = vpop.f32.mrb[49].mxu1  ;;  %4220 = vrot.lane.b32.xlu1 %v3167_v4, %s6901_s22  ;;  %v6221_v49 = vpop.f32.mrb[48].mxu0 }
 0x2fe   : > { %v6358_v27 = vpop.f32.mrb[50].mxu1  ;;  %v3215_v48 = vpop.f32.mrb[49].mxu0 }
 0x2ff   : > { %v3960_v17 = vpop.f32.mrb[51].mxu1  ;;  %4358 = vrot.lane.b32.xlu0 %v3928_v28, %s6900_s5  ;;  %v6222_v32 = vpop.f32.mrb[50].mxu0 }
 0x300   : > { %v3218_v24 = vpop.f32.mrb[51].mxu0 }
 0x301   : > { %4360 = vrot.lane.b32.xlu1 %v6349_v63, %s6900_s5 }
 0x303   : > { %4234 = vrot.lane.b32.xlu0 %v6214_v36, %s6901_s22 }
 0x304   : > { %v6361_v62 = vpop.f32.mrb[52].mxu1 }
 0x305   : > { %v3973_v56 = vpop.f32.mrb[53].mxu1  ;;  %4356 = vrot.lane.b32.xlu1 %v3925_v50, %s6900_s5  ;;  %v6225_v18 = vpop.f32.mrb[52].mxu0 }
 0x306   : > { %v6362_v12 = vpop.f32.mrb[54].mxu1  ;;  %v3231_v61 = vpop.f32.mrb[53].mxu0 }
 0x307   : > { %v3976_v4 = vpop.f32.mrb[55].mxu1  ;;  %4230 = vrot.lane.b32.xlu0 %v3186_v46, %s6901_s22  ;;  %v6226_v41 = vpop.f32.mrb[54].mxu0 }
 0x308   : > { %v3234_v57 = vpop.f32.mrb[55].mxu0 }
 0x309   : > { %4232 = vrot.lane.b32.xlu1 %v6213_v14, %s6901_s22 }
 0x30b   : > { %4370 = vrot.lane.b32.xlu0 %v6354_v3, %s6900_s5 }
 0x30c   : > { %v6365_v28 = vpop.f32.mrb[56].mxu1 }
 0x30d   : > { %v3989_v63 = vpop.f32.mrb[57].mxu1  ;;  %4228 = vrot.lane.b32.xlu1 %v3183_v23, %s6901_s22  ;;  %v6229_v36 = vpop.f32.mrb[56].mxu0 }
 0x30e   : > { %v6366_v9 = vpop.f32.mrb[58].mxu1  ;;  %v3247_v42 = vpop.f32.mrb[57].mxu0 }
 0x30f   : > { %v3992_v50 = vpop.f32.mrb[59].mxu1  ;;  %4366 = vrot.lane.b32.xlu0 %v3944_v39, %s6900_s5  ;;  %v6230_v35 = vpop.f32.mrb[58].mxu0 }
 0x310   : > { %v3250_v1 = vpop.f32.mrb[59].mxu0 }
 0x311   : > { %4368 = vrot.lane.b32.xlu1 %v6353_v33, %s6900_s5 }
 0x313   : > { %4242 = vrot.lane.b32.xlu0 %v6218_v44, %s6901_s22 }
 0x314   : > { %v6369_v46 = vpop.f32.mrb[60].mxu1 }
 0x315   : > { %v4005_v14 = vpop.f32.mrb[61].mxu1  ;;  %4364 = vrot.lane.b32.xlu1 %v3941_v47, %s6900_s5  ;;  %v6233_v3 = vpop.f32.mrb[60].mxu0 }
 0x316   : > { %v6370_v58 = vpop.f32.mrb[62].mxu1  ;;  %v3263_v59 = vpop.f32.mrb[61].mxu0 }
 0x317   : > { %v4008_v23 = vpop.f32.mrb[63].mxu1  ;;  %4238 = vrot.lane.b32.xlu0 %v3202_v10, %s6901_s22  ;;  %v6234_v40 = vpop.f32.mrb[62].mxu0 }
 0x318   : > { %v3266_v54 = vpop.f32.mrb[63].mxu0 }
 0x319   : > { %4240 = vrot.lane.b32.xlu1 %v6217_v19, %s6901_s22 }
 0x31b   : > { %4378 = vrot.lane.b32.xlu0 %v6358_v27, %s6900_s5 }
 0x31d   : > { %4236 = vrot.lane.b32.xlu1 %v3199_v11, %s6901_s22 }
 0x31f   : > { %4374 = vrot.lane.b32.xlu0 %v3960_v17, %s6900_s5 }
 0x321   : > { %4376 = vrot.lane.b32.xlu1 %v6357_v37, %s6900_s5 }
 0x323   : > { %4250 = vrot.lane.b32.xlu0 %v6222_v32, %s6901_s22 }
 0x325   : > { %4372 = vrot.lane.b32.xlu1 %v3957_v30, %s6900_s5 }
 0x327   : > { %4246 = vrot.lane.b32.xlu0 %v3218_v24, %s6901_s22 }
 0x329   : > { %4248 = vrot.lane.b32.xlu1 %v6221_v49, %s6901_s22 }
 0x32b   : > { %4386 = vrot.lane.b32.xlu0 %v6362_v12, %s6900_s5  ;;  %v8346_v12 = vpop.permute.xlu1 %4140 }
 0x32d   : > { %4244 = vrot.lane.b32.xlu1 %v3215_v48, %s6901_s22 }
 0x32f   : > { %4382 = vrot.lane.b32.xlu0 %v3976_v4, %s6900_s5 }
 0x331   : > { %4384 = vrot.lane.b32.xlu1 %v6361_v62, %s6900_s5  ;;  %v4441_v62 = vsel %vm4436_vm8, %v7990_v15, %v8201_v6 }
 0x333   : > { %4258 = vrot.lane.b32.xlu0 %v6226_v41, %s6901_s22  ;;  %v4439_v41 = vsel %vm4436_vm8, %v7969_v16, %v8191_v60 }
 0x335   : > { %4380 = vrot.lane.b32.xlu1 %v3973_v56, %s6900_s5 }
 0x337   : > { %4254 = vrot.lane.b32.xlu0 %v3234_v57, %s6901_s22  ;;  %v8349_v57 = vpop.permute.xlu0 %4142 }
 0x339   : > { %4256 = vrot.lane.b32.xlu1 %v6225_v18, %s6901_s22 }
 0x33b   : > { %4394 = vrot.lane.b32.xlu0 %v6366_v9, %s6900_s5 }
 0x33d   : > { %4252 = vrot.lane.b32.xlu1 %v3231_v61, %s6901_s22 }
 0x33f   : > { %4390 = vrot.lane.b32.xlu0 %v3992_v50, %s6900_s5 }
 0x341   : > { %4392 = vrot.lane.b32.xlu1 %v6365_v28, %s6900_s5 }
 0x343   : > { %4266 = vrot.lane.b32.xlu0 %v6230_v35, %s6901_s22 }
 0x345   : > { %4388 = vrot.lane.b32.xlu1 %v3989_v63, %s6900_s5 }
 0x347   : > { %4262 = vrot.lane.b32.xlu0 %v3250_v1, %s6901_s22 }
 0x349   : > { %4264 = vrot.lane.b32.xlu1 %v6229_v36, %s6901_s22 }
 0x34b   : > { %4398 = vrot.lane.b32.xlu0 %v4008_v23, %s6900_s5 }
 0x34d   : > { %4260 = vrot.lane.b32.xlu1 %v3247_v42, %s6901_s22 }
 0x34f   : > { %v4345_v61 = vpop.permute.xlu1 %4344  ;;  %4270 = vrot.lane.b32.xlu0 %v3266_v54, %s6901_s22 }
 0x351   : > { %v4347_v9 = vpop.permute.xlu0 %4346  ;;  %4396 = vrot.lane.b32.xlu1 %v4005_v14, %s6900_s5 }
 0x353   : > { %v4341_v35 = vpop.permute.xlu1 %4340  ;;  %4274 = vrot.lane.b32.xlu0 %v6234_v40, %s6901_s22  ;;  %v4437_v40 = vsel %vm4436_vm8, %v7971_v51, %v8193_v45  ;;  %v4438_v51 = vsel %vm4436_vm8, %v7975_v5, %v8199_v43  ;;  %v4440_v43 = vsel %vm4436_vm8, %v7973_v38, %v8195_v55 }
 0x355   : > { %v4343_v1 = vpop.permute.xlu0 %4342  ;;  %4272 = vrot.lane.b32.xlu1 %v6233_v3, %s6901_s22 }
 0x357   : > { %v4217_v24 = vpop.permute.xlu1 %4216 }
 0x358   : > { %v4472_v42 = vsel %vm4469_vm9, %v4439_v41, %v4217_v24  ;;  %v4443_v41 = vsel %vm4436_vm8, %v7988_v20, %v8197_v29  ;;  %v9022_v20 = vld [vmem:[#allocation12_spill] sm:$0xff] }
 0x359   : > { %v8361_v54 = vsel %vm4502_vm10, %v4472_v42, %v4345_v61  ;;  %v4219_v32 = vpop.permute.xlu0 %4218  ;;  %4268 = vrot.lane.b32.xlu1 %v3263_v59, %s6901_s22  ;;  %v4445_v29 = vsel %vm4436_vm8, %v9022_v20, %v8211_v13 }
 0x35a   : > { %v4473_v18 = vsel %vm4469_vm9, %v4440_v43, %v4219_v32  ;;  %v4574_v36 = vmul.f32 %v8361_v54, %v8361_v54 }
 0x35b   : > { %v4213_v33 = vpop.permute.xlu1 %4212 }
 0x35c   : > { %v4470_v47 = vsel %vm4469_vm9, %v4437_v40, %v4213_v33 }
 0x35d   : > { %v8369_v19 = vsel %vm4502_vm10, %v4470_v47, %v4341_v35  ;;  %v4355_v16 = vpop.permute.xlu0 %4354  ;;  %4400 = vrot.lane.b32.xlu1 %v6369_v46, %s6900_s5  ;;  %v8400_v46 = vsel %vm4502_vm10, %v4473_v18, %v4347_v9 }
 0x35e   : > { %v4572_v17 = vmul.f32 %v8369_v19, %v8369_v19  ;;  %v4575_v14 = vmul.f32 %v8400_v46, %v8400_v46 }
 0x35f   : > { %v4215_v60 = vpop.permute.xlu1 %4214 }
 0x360   : > { %v4471_v10 = vsel %vm4469_vm9, %v4438_v51, %v4215_v60  ;;  %v9021_v60 = vld [vmem:[#allocation7_spill] sm:$0xff] }
 0x361   : > { %v4351_v11 = vpop.permute.xlu0 %4350  ;;  %4402 = vrot.lane.b32.xlu1 %v6370_v58, %s6900_s5  ;;  %v8378_v30 = vsel %vm4502_vm10, %v4471_v10, %v4343_v1 }
 0x362   : > { %v4573_v58 = vmul.f32 %v8378_v30, %v8378_v30  ;;  %v4535_v5 = vadd.f32 %v8378_v30, %v8369_v19 }
 0x363   : > { %v4353_v39 = vpop.permute.xlu1 %4352 }
 0x364   : > { %v4604_v4 = vadd.f32 %v4573_v58, %v4572_v17  ;;  %v4536_v50 = vadd.f32 %v4535_v5, %v8361_v54 }
 0x365   : > { %v4227_v44 = vpop.permute.xlu0 %4226 }
 0x366   : > { %v4605_v15 = vadd.f32 %v4604_v4, %v4574_v36  ;;  %v4537_v23 = vadd.f32 %v4536_v50, %v8400_v46  ;;  %v9023_v50 = vld [vmem:[#allocation11_spill] sm:$0xff] }
 0x367   : > { %v4349_v59 = vpop.permute.xlu1 %4348 }
 0x368   : > { %v4606_v9 = vadd.f32 %v4605_v15, %v4575_v14 }
 0x369   : > { %v4223_v45 = vpop.permute.xlu0 %4222 }
 0x36a   : > { %v4475_v3 = vsel %vm4469_vm9, %v8209_v21, %v4223_v45 }
 0x36b   : > { %v4225_v37 = vpop.permute.xlu1 %4224  ;;  %v8417_v24 = vsel %vm4502_vm10, %v4475_v3, %v4351_v11 }
 0x36c   : > { %v4476_v21 = vsel %vm4469_vm9, %v4443_v41, %v4225_v37  ;;  %v4577_v33 = vmul.f32 %v8417_v24, %v8417_v24 }
 0x36d   : > { %v8380_v49 = vpop.permute.xlu0 %4362  ;;  %v8432_v11 = vsel %vm4502_vm10, %v4476_v21, %v4353_v39 }
 0x36e   : > { %v4578_v58 = vmul.f32 %v8432_v11, %v8432_v11 }
 0x36f   : > { %v4221_v27 = vpop.permute.xlu1 %4220 }
 0x370   : > { %v4474_v28 = vsel %vm4469_vm9, %v4441_v62, %v4221_v27 }
 0x371   : > { %v4359_v48 = vpop.permute.xlu0 %4358  ;;  %v8403_v38 = vsel %vm4502_vm10, %v4474_v28, %v4349_v59  ;;  %v4444_v59 = vsel %vm4436_vm8, %v9021_v60, %v8203_v52 }
 0x372   : > { %v4576_v61 = vmul.f32 %v8403_v38, %v8403_v38  ;;  %v4538_v1 = vadd.f32 %v4537_v23, %v8403_v38  ;;  %v4477_v45 = vsel %vm4469_vm9, %v4444_v59, %v4227_v44 }
 0x373   : > { %v4361_v56 = vpop.permute.xlu1 %4360  ;;  %v8440_v52 = vsel %vm4502_vm10, %v4477_v45, %v4355_v16  ;;  %v4451_v45 = vsel %vm4436_vm8, %v8041_v0, %v8217_v25 }
 0x374   : > { %v4607_v32 = vadd.f32 %v4606_v9, %v4576_v61  ;;  %v4539_v47 = vadd.f32 %v4538_v1, %v8417_v24  ;;  %v4579_v44 = vmul.f32 %v8440_v52, %v8440_v52 }
 0x375   : > { %v4235_v63 = vpop.permute.xlu0 %4234 }
 0x376   : > { %v4608_v10 = vadd.f32 %v4607_v32, %v4577_v33  ;;  %v4540_v17 = vadd.f32 %v4539_v47, %v8432_v11 }
 0x377   : > { %v4357_v55 = vpop.permute.xlu1 %4356 }
 0x378   : > { %v4609_v5 = vadd.f32 %v4608_v10, %v4578_v58  ;;  %v4541_v18 = vadd.f32 %v4540_v17, %v8440_v52 }
 0x379   : > { %v4231_v6 = vpop.permute.xlu0 %4230 }
 0x37a   : > { %v4479_v62 = vsel %vm4469_vm9, %v8221_v7, %v4231_v6  ;;  %v4610_v16 = vadd.f32 %v4609_v5, %v4579_v44 }
 0x37b   : > { %v4233_v35 = vpop.permute.xlu1 %4232  ;;  %v8457_v15 = vsel %vm4502_vm10, %v4479_v62, %v4359_v48 }
 0x37c   : > { %v4581_v23 = vmul.f32 %v8457_v15, %v8457_v15 }
 0x37d   : > { %v8419_v42 = vpop.permute.xlu0 %4370 }
 0x37f   : > { %v4229_v40 = vpop.permute.xlu1 %4228 }
 0x380   : > { %v4478_v37 = vsel %vm4469_vm9, %v4445_v29, %v4229_v40 }
 0x381   : > { %v4367_v51 = vpop.permute.xlu0 %4366  ;;  %v8443_v13 = vsel %vm4502_vm10, %v4478_v37, %v4357_v55  ;;  %v4447_v55 = vsel %vm4436_vm8, %v9023_v50, %v8205_v2  ;;  %v4481_v2 = vsel %vm4469_vm9, %v8215_v31, %v4235_v63 }
 0x382   : > { %v4580_v4 = vmul.f32 %v8443_v13, %v8443_v13  ;;  %v4542_v36 = vadd.f32 %v4541_v18, %v8443_v13  ;;  %v4480_v3 = vsel %vm4469_vm9, %v4447_v55, %v4233_v35  ;;  %v8477_v40 = vsel %vm4502_vm10, %v4481_v2, %v8380_v49 }
 0x383   : > { %v4369_v27 = vpop.permute.xlu1 %4368  ;;  %v8466_v9 = vsel %vm4502_vm10, %v4480_v3, %v4361_v56  ;;  %v4583_v63 = vmul.f32 %v8477_v40, %v8477_v40 }
 0x384   : > { %v4611_v7 = vadd.f32 %v4610_v16, %v4580_v4  ;;  %v4543_v61 = vadd.f32 %v4542_v36, %v8457_v15  ;;  %v4582_v21 = vmul.f32 %v8466_v9, %v8466_v9 }
 0x385   : > { %v4243_v39 = vpop.permute.xlu0 %4242 }
 0x386   : > { %v4612_v48 = vadd.f32 %v4611_v7, %v4581_v23  ;;  %v4544_v32 = vadd.f32 %v4543_v61, %v8466_v9  ;;  %v4485_v0 = vsel %vm4469_vm9, %v8229_v53, %v4243_v39 }
 0x387   : > { %v4365_v43 = vpop.permute.xlu1 %4364  ;;  %v8512_v16 = vsel %vm4502_vm10, %v4485_v0, %v8419_v42 }
 0x388   : > { %v4613_v47 = vadd.f32 %v4612_v48, %v4582_v21  ;;  %v4545_v60 = vadd.f32 %v4544_v32, %v8477_v40  ;;  %v4587_v39 = vmul.f32 %v8512_v16, %v8512_v16 }
 0x389   : > { %v4239_v28 = vpop.permute.xlu0 %4238 }
 0x38a   : > { %v4614_v49 = vadd.f32 %v4613_v47, %v4583_v63  ;;  %v9025_v63 = vld [vmem:[#allocation20_spill] sm:$0xff] }
 0x38b   : > { %v4241_v14 = vpop.permute.xlu1 %4240 }
 0x38c   : > { %v4484_v58 = vsel %vm4469_vm9, %v4451_v45, %v4241_v14 }
 0x38d   : > { %v8460_v6 = vpop.permute.xlu0 %4378  ;;  %v8501_v44 = vsel %vm4502_vm10, %v4484_v58, %v4369_v27 }
 0x38e   : > { %v4586_v18 = vmul.f32 %v8501_v44, %v8501_v44 }
 0x38f   : > { %v4237_v1 = vpop.permute.xlu1 %4236 }
 0x390   : > { %v4482_v41 = vsel %vm4469_vm9, %v8225_v22, %v4237_v1  ;;  %v4483_v22 = vsel %vm4469_vm9, %v8237_v26, %v4239_v28  ;;  %v9024_v1 = vld [vmem:[#allocation19_spill] sm:$0xff] }
 0x391   : > { %v4375_v35 = vpop.permute.xlu0 %4374  ;;  %v8480_v56 = vsel %vm4502_vm10, %v4482_v41, %v4365_v43  ;;  %v8494_v10 = vsel %vm4502_vm10, %v4483_v22, %v4367_v51 }
 0x392   : > { %v4584_v59 = vmul.f32 %v8480_v56, %v8480_v56  ;;  %v4546_v29 = vadd.f32 %v4545_v60, %v8480_v56  ;;  %v4585_v5 = vmul.f32 %v8494_v10, %v8494_v10 }
 0x393   : > { %v4377_v33 = vpop.permute.xlu1 %4376 }
 0x394   : > { %v4615_v26 = vadd.f32 %v4614_v49, %v4584_v59  ;;  %v4547_v43 = vadd.f32 %v4546_v29, %v8494_v10 }
 0x395   : > { %v4251_v31 = vpop.permute.xlu0 %4250 }
 0x396   : > { %v4616_v25 = vadd.f32 %v4615_v26, %v4585_v5  ;;  %v4548_v4 = vadd.f32 %v4547_v43, %v8501_v44  ;;  %v4489_v22 = vsel %vm4469_vm9, %v9025_v63, %v4251_v31 }
 0x397   : > { %v4373_v20 = vpop.permute.xlu1 %4372  ;;  %v8543_v49 = vsel %vm4502_vm10, %v4489_v22, %v8460_v6 }
 0x398   : > { %v4617_v50 = vadd.f32 %v4616_v25, %v4586_v18  ;;  %v4549_v14 = vadd.f32 %v4548_v4, %v8512_v16  ;;  %v4591_v26 = vmul.f32 %v8543_v49, %v8543_v49 }
 0x399   : > { %v4247_v37 = vpop.permute.xlu0 %4246 }
 0x39a   : > { %v4487_v55 = vsel %vm4469_vm9, %v8253_v8, %v4247_v37  ;;  %v4618_v42 = vadd.f32 %v4617_v50, %v4587_v39  ;;  %v9026_v37 = vld [vmem:[#allocation24_spill] sm:$0xff] }
 0x39b   : > { %v4249_v17 = vpop.permute.xlu1 %4248  ;;  %v8526_v23 = vsel %vm4502_vm10, %v4487_v55, %v4375_v35 }
 0x39c   : > { %v4488_v2 = vsel %vm4469_vm9, %v9024_v1, %v4249_v17  ;;  %v4589_v8 = vmul.f32 %v8526_v23, %v8526_v23  ;;  %v9027_v17 = vld [vmem:[#allocation6_spill] sm:$0xff] }
 0x39d   : > { %v4387_v62 = vpop.permute.xlu0 %4386  ;;  %v8534_v32 = vsel %vm4502_vm10, %v4488_v2, %v4377_v33 }
 0x39e   : > { %v4590_v59 = vmul.f32 %v8534_v32, %v8534_v32 }
 0x39f   : > { %v4245_v51 = vpop.permute.xlu1 %4244 }
 0x3a0   : > { %v4486_v28 = vsel %vm4469_vm9, %v8241_v34, %v4245_v51 }
 0x3a1   : > { %v8515_v27 = vsel %vm4502_vm10, %v4486_v28, %v4373_v20  ;;  %v4383_v36 = vpop.permute.xlu0 %4382  ;;  %v9028_v28 = vld [vmem:[#allocation23_spill] sm:$0xff] }
 0x3a2   : > { %v4588_v34 = vmul.f32 %v8515_v27, %v8515_v27  ;;  %v4550_v7 = vadd.f32 %v4549_v14, %v8515_v27 }
 0x3a3   : > { %v4385_v53 = vpop.permute.xlu1 %4384 }
 0x3a4   : > { %v4619_v48 = vadd.f32 %v4618_v42, %v4588_v34  ;;  %v4551_v21 = vadd.f32 %v4550_v7, %v8526_v23  ;;  %v9029_v7 = vld [vmem:[#allocation27_spill] sm:$0xff] }
 0x3a5   : > { %v4259_v3 = vpop.permute.xlu0 %4258 }
 0x3a6   : > { %v4620_v35 = vadd.f32 %v4619_v48, %v4589_v8  ;;  %v4552_v20 = vadd.f32 %v4551_v21, %v8534_v32  ;;  %v9030_v21 = vld [vmem:[#allocation13_spill] sm:$0xff] }
 0x3a7   : > { %v4381_v61 = vpop.permute.xlu1 %4380 }
 0x3a8   : > { %v4621_v45 = vadd.f32 %v4620_v35, %v4590_v59  ;;  %v4553_v43 = vadd.f32 %v4552_v20, %v8543_v49  ;;  %v9031_v35 = vld [vmem:[#allocation8_spill] sm:$0xff] }
 0x3a9   : > { %v4255_v41 = vpop.permute.xlu0 %4254 }
 0x3aa   : > { %v4491_v5 = vsel %vm4469_vm9, %v9027_v17, %v4255_v41  ;;  %v4622_v25 = vadd.f32 %v4621_v45, %v4591_v26  ;;  %v9032_v45 = vld [vmem:[#allocation5_spill] sm:$0xff] }
 0x3ab   : > { %v4257_v47 = vpop.permute.xlu1 %4256  ;;  %v8559_v18 = vsel %vm4502_vm10, %v4491_v5, %v4383_v36 }
 0x3ac   : > { %v4492_v50 = vsel %vm4469_vm9, %v9028_v28, %v4257_v47  ;;  %v4593_v14 = vmul.f32 %v8559_v18, %v8559_v18 }
 0x3ad   : > { %v4395_v60 = vpop.permute.xlu0 %4394  ;;  %v8567_v42 = vsel %vm4502_vm10, %v4492_v50, %v4385_v53 }
 0x3ae   : > { %v4594_v48 = vmul.f32 %v8567_v42, %v8567_v42 }
 0x3af   : > { %v4253_v29 = vpop.permute.xlu1 %4252 }
 0x3b0   : > { %v4490_v33 = vsel %vm4469_vm9, %v9026_v37, %v4253_v29 }
 0x3b1   : > { %v8548_v58 = vsel %vm4502_vm10, %v4490_v33, %v4381_v61  ;;  %v4391_v31 = vpop.permute.xlu0 %4390  ;;  %v4493_v61 = vsel %vm4469_vm9, %v9029_v7, %v4259_v3  ;;  %v9034_v7 = vld [vmem:[#allocation16_spill] sm:$0xff] }
 0x3b2   : > { %v4592_v6 = vmul.f32 %v8548_v58, %v8548_v58  ;;  %v4554_v51 = vadd.f32 %v4553_v43, %v8548_v58  ;;  %v8575_v8 = vsel %vm4502_vm10, %v4493_v61, %v4387_v62  ;;  %v4466_v61 = vsel %vm4436_vm8, %v9034_v7, %v8349_v57 }
 0x3b3   : > { %v4393_v0 = vpop.permute.xlu1 %4392  ;;  %v4595_v22 = vmul.f32 %v8575_v8, %v8575_v8 }
 0x3b4   : > { %v4623_v39 = vadd.f32 %v4622_v25, %v4592_v6  ;;  %v4555_v34 = vadd.f32 %v4554_v51, %v8559_v18  ;;  %v9033_v51 = vld [vmem:[#allocation9_spill] sm:$0xff] }
 0x3b5   : > { %v4267_v4 = vpop.permute.xlu0 %4266 }
 0x3b6   : > { %v4624_v1 = vadd.f32 %v4623_v39, %v4593_v14  ;;  %v4556_v41 = vadd.f32 %v4555_v34, %v8567_v42  ;;  %v4497_v28 = vsel %vm4469_vm9, %v9033_v51, %v4267_v4  ;;  %v9035_v4 = vld [vmem:[#allocation15_spill] sm:$0xff] }
 0x3b7   : > { %v4389_v55 = vpop.permute.xlu1 %4388 }
 0x3b8   : > { %v4625_v63 = vadd.f32 %v4624_v1, %v4594_v48  ;;  %v4557_v3 = vadd.f32 %v4556_v41, %v8575_v8  ;;  %v8610_v1 = vsel %vm4502_vm10, %v4497_v28, %v4395_v60 }
 0x3b9   : > { %v4263_v36 = vpop.permute.xlu0 %4262  ;;  %v4599_v41 = vmul.f32 %v8610_v1, %v8610_v1 }
 0x3ba   : > { %v4495_v47 = vsel %vm4469_vm9, %v9030_v21, %v4263_v36  ;;  %v4626_v33 = vadd.f32 %v4625_v63, %v4595_v22  ;;  %v9036_v22 = vld [vmem:[#allocation10_spill] sm:$0xff] }
 0x3bb   : > { %v4265_v2 = vpop.permute.xlu1 %4264  ;;  %v8585_v20 = vsel %vm4502_vm10, %v4495_v47, %v4391_v31 }
 0x3bc   : > { %v4496_v37 = vsel %vm4469_vm9, %v9032_v45, %v4265_v2  ;;  %v4597_v43 = vmul.f32 %v8585_v20, %v8585_v20  ;;  %v4465_v2 = vsel %vm4436_vm8, %v9035_v4, %v8346_v12 }
 0x3bd   : > { %v4399_v29 = vpop.permute.xlu0 %4398  ;;  %v8599_v25 = vsel %vm4502_vm10, %v4496_v37, %v4393_v0 }
 0x3be   : > { %v4598_v14 = vmul.f32 %v8599_v25, %v8599_v25 }
 0x3bf   : > { %v4261_v53 = vpop.permute.xlu1 %4260 }
 0x3c0   : > { %v4494_v59 = vsel %vm4469_vm9, %v9031_v35, %v4261_v53 }
 0x3c1   : > { %v8588_v62 = vsel %vm4502_vm10, %v4494_v59, %v4389_v55  ;;  %v4271_v39 = vpop.permute.xlu0 %4270 }
 0x3c2   : > { %v4558_v26 = vadd.f32 %v4557_v3, %v8588_v62  ;;  %v4596_v17 = vmul.f32 %v8588_v62, %v8588_v62  ;;  %v4499_v0 = vsel %vm4469_vm9, %v4466_v61, %v4271_v39 }
 0x3c3   : > { %v4397_v5 = vpop.permute.xlu1 %4396  ;;  %v8621_v57 = vsel %vm4502_vm10, %v4499_v0, %v4399_v29 }
 0x3c4   : > { %v4559_v31 = vadd.f32 %v4558_v26, %v8585_v20  ;;  %v4627_v6 = vadd.f32 %v4626_v33, %v4596_v17  ;;  %v4601_v59 = vmul.f32 %v8621_v57, %v8621_v57 }
 0x3c5   : > { %v4275_v45 = vpop.permute.xlu0 %4274 }
 0x3c6   : > { %v4628_v50 = vadd.f32 %v4627_v6, %v4597_v43  ;;  %v4560_v34 = vadd.f32 %v4559_v31, %v8599_v25  ;;  %v9037_v43 = vld [vmem:[#allocation14_spill] sm:$0xff] }
 0x3c7   : > { %v4273_v55 = vpop.permute.xlu1 %4272  ;;  %v4501_v31 = vsel %vm4469_vm9, %v9037_v43, %v4275_v45 }
 0x3c8   : > { %v4629_v36 = vadd.f32 %v4628_v50, %v4598_v14  ;;  %v4561_v21 = vadd.f32 %v4560_v34, %v8610_v1  ;;  %v4500_v3 = vsel %vm4469_vm9, %v9036_v22, %v4273_v55 }
 0x3ca   : > { %v4630_v63 = vadd.f32 %v4629_v36, %v4599_v41 }
 0x3cb   : > { %v4269_v48 = vpop.permute.xlu1 %4268 }
 0x3cc   : > { %v4498_v47 = vsel %vm4469_vm9, %v4465_v2, %v4269_v48 }
 0x3cd   : > { %v8624_v60 = vsel %vm4502_vm10, %v4498_v47, %v4397_v5 }
 0x3ce   : > { %v4562_v53 = vadd.f32 %v4561_v21, %v8624_v60  ;;  %v4600_v12 = vmul.f32 %v8624_v60, %v8624_v60 }
 0x3cf   : > { %v4401_v35 = vpop.permute.xlu1 %4400 }
 0x3d0   : > { %v4631_v37 = vadd.f32 %v4630_v63, %v4600_v12  ;;  %v8634_v29 = vsel %vm4502_vm10, %v4500_v3, %v4401_v35  ;;  %v4563_v33 = vadd.f32 %v4562_v53, %v8621_v57 }
 0x3d1   : > { %v4602_v26 = vmul.f32 %v8634_v29, %v8634_v29 }
 0x3d2   : > { %v4564_v17 = vadd.f32 %v4563_v33, %v8634_v29  ;;  %v4632_v5 = vadd.f32 %v4631_v37, %v4601_v59 }
 0x3d3   : > { %v4403_v6 = vpop.permute.xlu1 %4402 }
 0x3d4   : > { %v4633_v51 = vadd.f32 %v4632_v5, %v4602_v26  ;;  %v8643_v28 = vsel %vm4502_vm10, %v4501_v31, %v4403_v6 }
 0x3d5   : > { %v4565_v50 = vadd.f32 %v4564_v17, %v8643_v28  ;;  %v4603_v39 = vmul.f32 %v8643_v28, %v8643_v28 }
 0x3d7   : > { %v4566_v55 = vrot.slane %v4565_v50, 4  ;;  %v4634_v14 = vadd.f32 %v4633_v51, %v4603_v39 }
 0x3d9   : > { %v4567_v34 = vadd.f32 %v4566_v55, %v4565_v50  ;;  %v4635_v7 = vrot.slane %v4634_v14, 4 }
 0x3db   : > { %v4568_v61 = vrot.slane %v4567_v34, 2  ;;  %v4636_v0 = vadd.f32 %v4635_v7, %v4634_v14  ;;  %v4701_v14 = vlaneseq }
 0x3dd   : > { %v4569_v36 = vadd.f32 %v4568_v61, %v4567_v34  ;;  %v4637_v4 = vrot.slane %v4636_v0, 2  ;;  %v4702_v34 = vshrl.u32 %v4701_v14, 7 }
 0x3df   : > { %v4570_v2 = vrot.slane %v4569_v36, 1  ;;  %v4638_v48 = vadd.f32 %v4637_v4, %v4636_v0 }
 0x3e1   : > { %v4571_v41 = vadd.f32 %v4570_v2, %v4569_v36  ;;  %v4639_v21 = vrot.slane %v4638_v48, 1  ;;  %v4703_v36 = vsub.s32 0, %v4702_v34 }
 0x3e3   : > { %4642 = vrot.lane.b32.xlu0 %v4571_v41, %s6900_s5  ;;  %v4640_v47 = vadd.f32 %v4639_v21, %v4638_v48 }
 0x3e5   : > { %4647 = vrot.lane.b32.xlu1 %v4640_v47, %s6900_s5 }
 0x3e7   : > { %4651 = vrot.lane.b32.xlu0 %v4571_v41, %s6901_s22 }
 0x3e9   : > { %4655 = vrot.lane.b32.xlu1 %v4640_v47, %s6901_s22 }
 0x3eb   : > { %4659 = vrot.lane.b32.xlu0 %v4571_v41, %s6899_s21 }
 0x3ed   : > { %4663 = vrot.lane.b32.xlu1 %v4640_v47, %s6899_s21 }
 0x455   : > { %v4643_v63 = vpop.permute.xlu0 %4642 }
 0x456   : > { %v4645_v22 = vadd.f32 %v4643_v63, %v4571_v41 }
 0x457   : > { %v4648_v53 = vpop.permute.xlu1 %4647 }
 0x458   : > { %v4650_v35 = vadd.f32 %v4648_v53, %v4640_v47 }
 0x459   : > { %v4652_v12 = vpop.permute.xlu0 %4651 }
 0x45a   : > { %v4654_v59 = vadd.f32 %v4652_v12, %v4645_v22 }
 0x45b   : > { %v4656_v3 = vpop.permute.xlu1 %4655 }
 0x45c   : > { %v4658_v37 = vadd.f32 %v4656_v3, %v4650_v35 }
 0x45d   : > { %v4660_v45 = vpop.permute.xlu0 %4659 }
 0x45e   : > { %v4662_v33 = vadd.f32 %v4660_v45, %v4654_v59 }
 0x45f   : > { %v4664_v26 = vpop.permute.xlu1 %4663 }
 0x460   : > { %v4667_v17 = vmul.f32 0.0009765625, %v4662_v33  ;;  %v4666_v5 = vadd.f32 %v4664_v26, %v4658_v37 }
 0x462   : > { %v4669_v43 = vmul.f32 %v4667_v17, %v4667_v17  ;;  %v4668_v31 = vmul.f32 0.0009765625, %v4666_v5 }
 0x464   : > { %v4670_v6 = vsub.f32 %v4668_v31, %v4669_v43 }
 0x466   : > { %v4671_v51 = vmax.f32 %v4670_v6, 0.0 }
 0x468   : > { %v4672_v50 = vadd.f32 1e-05, %v4671_v51 }
 0x46a   : > { %6833 = vrsqrt.f32 %v4672_v50 }
 0x474   : > { %v6834_v39 = vpop.eup %6833 }
 0x475   : > { %4678 = vrot.lane.b32.xlu1 %v6834_v39, %s6901_s22  ;;  %4675 = vrot.lane.b32.xlu0 %v6834_v39, %s6899_s21  ;;  %v4687_v55 = vmul.f32 %v6834_v39, %v4667_v17 }
 0x479   : > { %4681 = vrot.lane.b32.xlu0 %v6834_v39, %s6900_s5  ;;  %4689 = vrot.lane.b32.xlu1 %v4687_v55, %s6899_s21 }
 0x47d   : > { %4692 = vrot.lane.b32.xlu0 %v4687_v55, %s6901_s22  ;;  %4695 = vrot.lane.b32.xlu1 %v4687_v55, %s6900_s5 }
 0x4e7   : > { %v4676_v7 = vpop.permute.xlu0 %4675  ;;  %v4679_v61 = vpop.permute.xlu1 %4678 }
 0x4e8   : > { %v4684_v0 = vsel %vm4436_vm8, %v6834_v39, %v4676_v7 }
 0x4e9   : > { %v4685_v4 = vsel %vm4469_vm9, %v4684_v0, %v4679_v61 }
 0x4eb   : > { %v4682_v2 = vpop.permute.xlu0 %4681  ;;  %v4690_v21 = vpop.permute.xlu1 %4689 }
 0x4ec   : > { %v4686_v48 = vsel %vm4502_vm10, %v4685_v4, %v4682_v2  ;;  %v4698_v12 = vsel %vm4436_vm8, %v4687_v55, %v4690_v21 }
 0x4ed   : > { %v4704_v41 = vrot.slane %v4686_v48, %v4703_v36 }
 0x4ef   : > { %v8664_v47 = vmul.f32 %v4704_v41, %v8369_v19  ;;  %v8667_v63 = vmul.f32 %v4704_v41, %v8378_v30  ;;  %v8670_v53 = vmul.f32 %v4704_v41, %v8361_v54  ;;  %v8674_v22 = vmul.f32 %v4704_v41, %v8400_v46 }
 0x4f0   : > { %v8677_v3 = vmul.f32 %v4704_v41, %v8403_v38  ;;  %v8680_v35 = vmul.f32 %v4704_v41, %v8417_v24  ;;  %v8683_v19 = vmul.f32 %v4704_v41, %v8432_v11  ;;  %v8686_v30 = vmul.f32 %v4704_v41, %v8440_v52  ;;  %v4693_v38 = vpop.permute.xlu0 %4692 }
 0x4f1   : > { %v8689_v54 = vmul.f32 %v4704_v41, %v8443_v13  ;;  %v8692_v59 = vmul.f32 %v4704_v41, %v8457_v15  ;;  %v8695_v46 = vmul.f32 %v4704_v41, %v8466_v9  ;;  %v8698_v45 = vmul.f32 %v4704_v41, %v8477_v40  ;;  %v4696_v13 = vpop.permute.xlu1 %4695 }
 0x4f2   : > { %v8701_v24 = vmul.f32 %v4704_v41, %v8480_v56  ;;  %v8704_v11 = vmul.f32 %v4704_v41, %v8494_v10  ;;  %v8707_v52 = vmul.f32 %v4704_v41, %v8501_v44  ;;  %v8710_v15 = vmul.f32 %v4704_v41, %v8512_v16 }
 0x4f3   : > { %v8713_v9 = vmul.f32 %v4704_v41, %v8515_v27  ;;  %v8716_v37 = vmul.f32 %v4704_v41, %v8526_v23  ;;  %v8719_v40 = vmul.f32 %v4704_v41, %v8534_v32  ;;  %v8722_v56 = vmul.f32 %v4704_v41, %v8543_v49 }
 0x4f4   : > { %v8725_v10 = vmul.f32 %v4704_v41, %v8548_v58  ;;  %v8728_v44 = vmul.f32 %v4704_v41, %v8559_v18  ;;  %v4699_v16 = vsel %vm4469_vm9, %v4698_v12, %v4693_v38  ;;  %v8732_v27 = vmul.f32 %v4704_v41, %v8567_v42 }
 0x4f5   : > { %v8735_v23 = vmul.f32 %v4704_v41, %v8575_v8  ;;  %v8738_v32 = vmul.f32 %v4704_v41, %v8588_v62  ;;  %v4700_v49 = vsel %vm4502_vm10, %v4699_v16, %v4696_v13  ;;  %v8742_v33 = vmul.f32 %v4704_v41, %v8585_v20 }
 0x4f6   : > { %v8745_v58 = vmul.f32 %v4704_v41, %v8599_v25  ;;  %v8748_v18 = vmul.f32 %v4704_v41, %v8610_v1  ;;  %v8750_v26 = vrot.slane %v4700_v49, %v4703_v36  ;;  %v8753_v42 = vmul.f32 %v4704_v41, %v8624_v60 }
 0x4f7   : > { %v8756_v8 = vmul.f32 %v4704_v41, %v8621_v57  ;;  %v8759_v62 = vmul.f32 %v4704_v41, %v8634_v29  ;;  %v8762_v20 = vmul.f32 %v4704_v41, %v8643_v28 }
 0x4f8   : > { %v4741_v25 = vsub.f32 %v8664_v47, %v8750_v26  ;;  %v4742_v1 = vsub.f32 %v8667_v63, %v8750_v26  ;;  %v4743_v17 = vsub.f32 %v8670_v53, %v8750_v26  ;;  %v4744_v60 = vsub.f32 %v8674_v22, %v8750_v26 }
 0x4f9   : > { %v4745_v57 = vsub.f32 %v8677_v3, %v8750_v26  ;;  %v4746_v29 = vsub.f32 %v8680_v35, %v8750_v26  ;;  %v4747_v28 = vsub.f32 %v8683_v19, %v8750_v26  ;;  %v4748_v5 = vsub.f32 %v8686_v30, %v8750_v26 }
 0x4fa   : > { %v4749_v43 = vsub.f32 %v8689_v54, %v8750_v26  ;;  %v4750_v31 = vsub.f32 %v8692_v59, %v8750_v26  ;;  %v4751_v6 = vsub.f32 %v8695_v46, %v8750_v26  ;;  %v4752_v51 = vsub.f32 %v8698_v45, %v8750_v26 }
 0x4fb   : > { %v4753_v50 = vsub.f32 %v8701_v24, %v8750_v26  ;;  %v4754_v39 = vsub.f32 %v8704_v11, %v8750_v26  ;;  %v4755_v55 = vsub.f32 %v8707_v52, %v8750_v26  ;;  %v4756_v14 = vsub.f32 %v8710_v15, %v8750_v26 }
 0x4fc   : > { %v4757_v34 = vsub.f32 %v8713_v9, %v8750_v26  ;;  %v4758_v7 = vsub.f32 %v8716_v37, %v8750_v26  ;;  %v4759_v61 = vsub.f32 %v8719_v40, %v8750_v26  ;;  %v4760_v0 = vsub.f32 %v8722_v56, %v8750_v26 }
 0x4fd   : > { %v4761_v36 = vsub.f32 %v8725_v10, %v8750_v26  ;;  %v4762_v4 = vsub.f32 %v8728_v44, %v8750_v26  ;;  %v4763_v2 = vsub.f32 %v8732_v27, %v8750_v26  ;;  %v4764_v48 = vsub.f32 %v8735_v23, %v8750_v26 }
 0x4fe   : > { %v4765_v41 = vsub.f32 %v8738_v32, %v8750_v26  ;;  %v4766_v21 = vsub.f32 %v8742_v33, %v8750_v26  ;;  %v4767_v47 = vsub.f32 %v8745_v58, %v8750_v26  ;;  %v4768_v63 = vsub.f32 %v8748_v18, %v8750_v26 }
 0x4ff   : > { %v4769_v53 = vsub.f32 %v8753_v42, %v8750_v26  ;;  %v4770_v12 = vsub.f32 %v8756_v8, %v8750_v26  ;;  %v4771_v22 = vsub.f32 %v8759_v62, %v8750_v26  ;;  %v4772_v3 = vsub.f32 %v8762_v20, %v8750_v26 }
 0x500   : > { %v4773_v35 = vmax.f32 %v4741_v25, 0.0  ;;  %v4774_v19 = vmax.f32 %v4742_v1, 0.0  ;;  %v4775_v30 = vmax.f32 %v4743_v17, 0.0  ;;  %v4776_v54 = vmax.f32 %v4744_v60, 0.0 }
 0x501   : > { %v4777_v59 = vmax.f32 %v4745_v57, 0.0  ;;  %v4778_v46 = vmax.f32 %v4746_v29, 0.0  ;;  %v4779_v38 = vmax.f32 %v4747_v28, 0.0  ;;  %v4780_v45 = vmax.f32 %v4748_v5, 0.0 }
 0x502   : > { %v4781_v24 = vmax.f32 %v4749_v43, 0.0  ;;  %v4782_v11 = vmax.f32 %v4750_v31, 0.0  ;;  %v4783_v52 = vmax.f32 %v4751_v6, 0.0  ;;  %v4784_v13 = vmax.f32 %v4752_v51, 0.0 }
 0x503   : > { %v4785_v15 = vmax.f32 %v4753_v50, 0.0  ;;  %v4786_v9 = vmax.f32 %v4754_v39, 0.0  ;;  %v4787_v37 = vmax.f32 %v4755_v55, 0.0  ;;  %v4788_v40 = vmax.f32 %v4756_v14, 0.0 }
 0x504   : > { %v4789_v56 = vmax.f32 %v4757_v34, 0.0  ;;  %v4790_v10 = vmax.f32 %v4758_v7, 0.0  ;;  %v4791_v44 = vmax.f32 %v4759_v61, 0.0  ;;  %v4792_v16 = vmax.f32 %v4760_v0, 0.0 }
 0x505   : > { %v4793_v27 = vmax.f32 %v4761_v36, 0.0  ;;  %v4794_v23 = vmax.f32 %v4762_v4, 0.0  ;;  %v4795_v32 = vmax.f32 %v4763_v2, 0.0  ;;  %v4796_v49 = vmax.f32 %v4764_v48, 0.0 }
 0x506   : > { %v4797_v33 = vmax.f32 %v4765_v41, 0.0  ;;  %v4798_v58 = vmax.f32 %v4766_v21, 0.0  ;;  %v4799_v18 = vmax.f32 %v4767_v47, 0.0  ;;  %v4800_v26 = vmax.f32 %v4768_v63, 0.0 }
 0x507   : > { %v4801_v42 = vmax.f32 %v4769_v53, 0.0  ;;  %v4802_v8 = vmax.f32 %v4770_v12, 0.0  ;;  %v4803_v62 = vmax.f32 %v4771_v22, 0.0  ;;  %v4804_v20 = vmax.f32 %v4772_v3, 0.0 }
 0x508   : > { %v5463_v25 = vpack.c.bf16 %v4774_v19, %v4773_v35  ;;  %v5468_v1 = vpack.c.bf16 %v4776_v54, %v4775_v30  ;;  %v5473_v17 = vpack.c.bf16 %v4778_v46, %v4777_v59  ;;  %v5478_v60 = vpack.c.bf16 %v4780_v45, %v4779_v38 }
 0x509   : > { %v5483_v57 = vpack.c.bf16 %v4782_v11, %v4781_v24  ;;  %v5488_v29 = vpack.c.bf16 %v4784_v13, %v4783_v52  ;;  %v5493_v28 = vpack.c.bf16 %v4786_v9, %v4785_v15  ;;  %v5498_v5 = vpack.c.bf16 %v4788_v40, %v4787_v37 }
 0x50a   : > { %5464 = vst [vmem:[%s8832_s26] sm:$0xff] %v5463_v25   ;;  %5540 = vst [vmem:[%s8832_s26 + $0x8] sm:$0xff] %v5468_v1   ;;  %v5503_v43 = vpack.c.bf16 %v4790_v10, %v4789_v56  ;;  %v5508_v31 = vpack.c.bf16 %v4792_v16, %v4791_v44  ;;  %v5513_v6 = vpack.c.bf16 %v4794_v23, %v4793_v27 }
 0x50b   : > { %5541 = vst [vmem:[%s8832_s26 + $0x10] sm:$0xff] %v5473_v17   ;;  %5542 = vst [vmem:[%s8832_s26 + $0x18] sm:$0xff] %v5478_v60   ;;  %v5518_v51 = vpack.c.bf16 %v4796_v49, %v4795_v32  ;;  %v5523_v50 = vpack.c.bf16 %v4798_v58, %v4797_v33  ;;  %v5528_v39 = vpack.c.bf16 %v4800_v26, %v4799_v18 }
 0x50c   : > { %5543 = vst [vmem:[%s8832_s26 + $0x20] sm:$0xff] %v5483_v57   ;;  %5544 = vst [vmem:[%s8832_s26 + $0x28] sm:$0xff] %v5488_v29   ;;  %v5533_v55 = vpack.c.bf16 %v4802_v8, %v4801_v42  ;;  %v5538_v14 = vpack.c.bf16 %v4804_v20, %v4803_v62 }
 0x50d   : > { %5545 = vst [vmem:[%s8832_s26 + $0x30] sm:$0xff] %v5493_v28   ;;  %5546 = vst [vmem:[%s8832_s26 + $0x38] sm:$0xff] %v5498_v5  }
 0x50e   : > { %5547 = vst [vmem:[%s8832_s26 + $0x40] sm:$0xff] %v5503_v43   ;;  %5548 = vst [vmem:[%s8832_s26 + $0x48] sm:$0xff] %v5508_v31  }
 0x50f   : > { %5549 = vst [vmem:[%s8832_s26 + $0x50] sm:$0xff] %v5513_v6   ;;  %5550 = vst [vmem:[%s8832_s26 + $0x58] sm:$0xff] %v5518_v51  }
 0x510   : > { %5551 = vst [vmem:[%s8832_s26 + $0x60] sm:$0xff] %v5523_v50   ;;  %5552 = vst [vmem:[%s8832_s26 + $0x68] sm:$0xff] %v5528_v39  }
 0x511   : > { %5553 = vst [vmem:[%s8832_s26 + $0x70] sm:$0xff] %v5533_v55   ;;  %5554 = vst [vmem:[%s8832_s26 + $0x78] sm:$0xff] %v5538_v14  }
 0x512   : > { %6848 = shalt.err (!%p6845_p3)
}
 0x513   : > { %s6849_s8 = scalar_lea.hbm %s8842_s29, 2048  ;;  %s6853_s17 = scalar_lea.hbm %s8905_s2, 4096 }
 0x514   : > { %p6850_p4 = scmp.ne.s32.totalorder %s8842_s29, %s6849_s8  ;;  %p6854_p9 = scmp.lt.u32.totalorder %s8842_s29, %s8905_s2 }
 0x515   : > { %p6855_p10 = scmp.lt.u32.totalorder %s6853_s17, %s6849_s8  ;;  %p6857_p12 = scmp.lt.u32.totalorder %s6849_s8, %s8842_s29 }
 0x516   : > { %p6851_p7 = pnand %p6850_p4, %p6957_p5 }
 0x517   : > { %p6856_p11 = por %p6855_p10, %p6854_p9 }
 0x518   : > { %p6852_p8 = pneg %p6851_p7 }
 0x519   : > { %p6858_p13 = por %p6857_p12, %p6856_p11 }
 0x51b   : > { %p6859_p0 = pnand %p6858_p13, %p6852_p8 }
 0x51d   : > { %6862 = shalt.err (!%p6859_p0)
}
 0x51e   : > { %s6903_s23 = smov 4  }
 0x51f   : > { %6772 = dma.vmem_to_hbm [thread:$0]  (%p6957_p5), %s8848_s27, 2048, %s8842_s29, %s8860_s30, %s6901_s22, %s6901_s22, %s6903_s23  }
 0x520 PF: > { %p6778_p1 = scmp.ge.s32.totalorder %s6897_s12, 2  ;;  %s4994_s24 = sand.u32 1, %s6885_s9  }
 0x521   : > { %s4995_s25 = scalar_lea.sflag [#allocation3], %s4994_s24 }
 0x522   : > { %p6775_p2 = pnand %p6778_p1, %p6961_p6 }
 0x524   : > { %6880 = dma.done.wait (!%p6775_p2), %s4995_s25, 2048  }
 0x525   : > { %6882 = vsyncadd (!%p6775_p2), %s4995_s25, 4294965248  ;;  %p12_p3 = scmp.ge.s32.totalorder %s6944_s15, 4   ;;  %s9038_s9 = smov %s6889_s10 }
 0x526   : > { %s9039_s10 = smov %s6893_s11  ;;  %s9040_s11 = smov %s6955_s18 }
 0x527   : > { %s9041_s12 = smov %s6944_s15  ;;  %14 = sbr.rel (!%p12_p3) target bundleno = 3 (0x3), region = 78 }
 0x52e   :  { %5000 = vsyncpa [#allocation3], 1 }
 0x52f   :  { %5002 = vsyncpa [#allocation3 + $0x1], 1 }

</bundles_post_ra>
